<compile_context>
chip_gen: v7x
topology: tpu7x:2x2x1
jax: 0.10.0
libtpu: 0.0.40
codegen_flags: <defaults>
</compile_context>

<pallas_src>
import numpy as np

import jax
import jax.numpy as jnp
from jax import lax
from jax.experimental import pallas as pl
from jax.experimental.pallas import tpu as pltpu

# ----------------------------- model config ---------------------------------
DIM = 32                  # transformer width
HEADS = 2
DIM_HEAD = 16
MLP_DIM = 64
SPATIAL_DEPTH = 1
TEMPORAL_DEPTH = 1
NUM_PERSON = 2
C_BACKBONE = 256
PATCH_DIM = C_BACKBONE * NUM_PERSON  # 512, as in the PyTorch module
EPS = 1e-5
SCALE = DIM_HEAD ** -0.5
NEG_INF = -1e30

LAYER_KEYS = ("ln1_g", "ln1_b", "wq", "wk", "wv", "wo", "bo",
              "ln2_g", "ln2_b", "w1", "b1", "w2", "b2")
PER_LAYER = len(LAYER_KEYS)


def _round_up(x, m):
    return ((x + m - 1) // m) * m


# ----------------------------- kernel-side math ------------------------------
def _layernorm(x, g2d, b2d):
    # x: (S, D); g2d/b2d: (1, D).  Matches torch.nn.LayerNorm (biased variance).
    mu = jnp.mean(x, axis=-1, keepdims=True)
    var = jnp.mean(jnp.square(x - mu), axis=-1, keepdims=True)
    return (x - mu) * lax.rsqrt(var + EPS) * g2d + b2d


def _gelu(x):
    # TODO(synk): PyTorch nn.GELU() is erf-exact; tanh approximation used here
    # for robust Mosaic lowering (~1e-3 relative difference).
    return 0.5 * x * (1.0 + jnp.tanh(0.7978845608028654 * (x + 0.044715 * x * x * x)))


def _transformer_block(x, layer, mask_bias):
    """Pre-norm transformer block on an (S, D) value slab.

    x = Attention(LN(x)) + x ; x = FeedForward(LN(x)) + x
    mask_bias: (S, S) additive bias, 0 where attention is allowed, -1e30 else.
    """
    (ln1g, ln1b, wq, wk, wv, wo, bo, ln2g, ln2b, w1, b1, w2, b2) = layer

    xn = _layernorm(x, ln1g[...], ln1b[...])
    attn = jnp.zeros_like(x)
    for h in range(HEADS):  # static unroll; head slicing is on the leading axis
        q = jnp.dot(xn, wq[h], preferred_element_type=jnp.float32)   # (S, dh)
        k = jnp.dot(xn, wk[h], preferred_element_type=jnp.float32)
        v = jnp.dot(xn, wv[h], preferred_element_type=jnp.float32)
        dots = lax.dot_general(q, k, (((1,), (1,)), ((), ())),
                               preferred_element_type=jnp.float32) * SCALE
        dots = dots + mask_bias
        m = jnp.max(dots, axis=-1, keepdims=True)
        e = jnp.exp(dots - m)
        p = e / jnp.sum(e, axis=-1, keepdims=True)                   # softmax
        oh = jnp.dot(p, v, preferred_element_type=jnp.float32)       # (S, dh)
        # concat-over-heads then (inner, D) projection == sum of per-head projs
        attn = attn + jnp.dot(oh, wo[h], preferred_element_type=jnp.float32)
    x = x + attn + bo[...]

    xn2 = _layernorm(x, ln2g[...], ln2b[...])
    h1 = _gelu(jnp.dot(xn2, w1[...], preferred_element_type=jnp.float32) + b1[...])
    return x + jnp.dot(h1, w2[...], preferred_element_type=jnp.float32) + b2[...]


# ----------------------------- fused kernel ----------------------------------
def _make_kernel(t, sd, td, joints, cls_off, s_sp, s_tm):
    """Fused forward for ONE batch element per grid step."""

    def kernel(*refs):
        it = iter(refs)
        x_ref = next(it)                       # (1, t*v, PATCH_DIM)
        sp_bias = next(it)                     # (s_sp, s_sp) spatial attn bias
        tm_bias = next(it)                     # (s_tm, s_tm) temporal attn bias
        lin_w, lin_b = next(it), next(it)
        s_cls, t_cls = next(it), next(it)
        sp_layers = [tuple(next(it) for _ in range(PER_LAYER)) for _ in range(sd)]
        s_ng, s_nb = next(it), next(it)
        tm_layers = [tuple(next(it) for _ in range(PER_LAYER)) for _ in range(td)]
        t_ng, t_nb = next(it), next(it)
        o_ref = next(it)                       # (1, 1, DIM)
        sp_buf = next(it)                      # VMEM (s_sp, DIM)
        tm_buf = next(it)                      # VMEM (s_tm, DIM)

        # ---- patch embedding: nn.Linear(512, dim) over all t*v joint tokens --
        emb = (jnp.dot(x_ref[0], lin_w[...], preferred_element_type=jnp.float32)
               + lin_b[...])                                       # (t*v, DIM)

        # ---- build the spatial slab in VMEM (8-aligned sublane stores only):
        #   rows [0, joints)            joint tokens (frame f -> rows f*v..)
        #   rows [cls_off, cls_off+t)   per-frame spatial cls tokens
        #   remaining rows              finite padding (masked out by sp_bias)
        g = (joints // 8) * 8
        sp_buf[g:s_sp, :] = jnp.broadcast_to(s_cls[...], (s_sp - g, DIM))
        sp_buf[0:joints, :] = emb
        xs = sp_buf[...]

        bias_sp = sp_bias[...]
        for layer in sp_layers:
            xs = _transformer_block(xs, layer, bias_sp)
        xs = _layernorm(xs, s_ng[...], s_nb[...])

        # ---- temporal slab:
        #   rows [0, t)   spatial cls outputs (one per frame)
        #   row  t        temporal cls token
        #   rows (t, s_tm) finite padding (masked out by tm_bias)
        tm_buf[0:s_tm, :] = jnp.broadcast_to(t_cls[...], (s_tm, DIM))
        tm_buf[0:t, :] = xs[cls_off:cls_off + t, :]
        xt = tm_buf[...]

        bias_tm = tm_bias[...]
        for layer in tm_layers:
            xt = _transformer_block(xt, layer, bias_tm)
        xt = _layernorm(xt, t_ng[...], t_nb[...])

        # cls pooling (pool='cls'): temporal cls token row
        o_ref[0] = xt[t:t + 1, :]

    return kernel


def _estimate_cost(b, t, v, s_sp, s_tm, sd, td):
    def block_flops(s):
        f = HEADS * 3 * 2 * s * DIM * DIM_HEAD      # q, k, v projections
        f += HEADS * 2 * 2 * s * s * DIM_HEAD       # q@k^T and p@v
        f += HEADS * 2 * s * DIM_HEAD * DIM         # per-head output proj
        f += 2 * 2 * s * DIM * MLP_DIM              # MLP matmuls
        return f

    flops = 2 * (t * v) * PATCH_DIM * DIM
    flops += sd * block_flops(s_sp) + td * block_flops(s_tm)
    trans = sd * (HEADS * s_sp * s_sp + s_sp * MLP_DIM)
    trans += td * (HEADS * s_tm * s_tm + s_tm * MLP_DIM)
    return b * flops, b * trans


# ----------------------------- forward pass ----------------------------------
def aagcn_vivit_forward(x, params):
    # x: AAGCN backbone output, (b, m, c=256, t, v), float32
    b, m, c, t, v = x.shape
    # Rearrange('b m c t v -> b t v (m c)') flattened to (b, t*v, m*c)
    x = jnp.transpose(x, (0, 3, 4, 1, 2)).reshape(b, t * v, m * c)

    joints = t * v
    cls_off = _round_up(joints, 8)          # spatial cls rows start (8-aligned)
    s_sp = cls_off + t                      # spatial slab rows (all frames)
    s_tm = _round_up(t + 1, 8)              # temporal slab rows

    # Host-precomputed block-diagonal attention biases (static numpy).
    sp_fid = np.concatenate([
        np.repeat(np.arange(t), v),                     # joint tokens
        1000 + np.arange(cls_off - joints),             # padding rows (self-only)
        np.arange(t),                                   # spatial cls tokens
    ]).astype(np.int32)
    sp_bias = np.where(sp_fid[:, None] == sp_fid[None, :],
                       0.0, NEG_INF).astype(np.float32)

    tm_fid = np.concatenate([
        np.zeros(t + 1),                                # frame tokens + temporal cls
        1000 + np.arange(s_tm - (t + 1)),               # padding rows (self-only)
    ]).astype(np.int32)
    tm_bias = np.where(tm_fid[:, None] == tm_fid[None, :],
                       0.0, NEG_INF).astype(np.float32)

    # Flatten all operands in a fixed order (matched by the kernel unpacking).
    args = [x, jnp.asarray(sp_bias), jnp.asarray(tm_bias),
            params["linear_w"], params["linear_b"],
            params["spatial_cls"], params["temporal_cls"]]
    for layer in params["spatial_layers"]:
        args += [layer[k] for k in LAYER_KEYS]
    args += [params["spatial_norm_g"], params["spatial_norm_b"]]
    for layer in params["temporal_layers"]:
        args += [layer[k] for k in LAYER_KEYS]
    args += [params["temporal_norm_g"], params["temporal_norm_b"]]

    def _full_spec(shape):
        nd = len(shape)
        return pl.BlockSpec(shape, lambda i, _nd=nd: (0,) * _nd)

    in_specs = [pl.BlockSpec((1, joints, m * c), lambda i: (i, 0, 0))]
    in_specs += [_full_spec(a.shape) for a in args[1:]]

    sd = len(params["spatial_layers"])
    td = len(params["temporal_layers"])
    kernel = _make_kernel(t, sd, td, joints, cls_off, s_sp, s_tm)

    flops, trans = _estimate_cost(b, t, v, s_sp, s_tm, sd, td)
    bytes_accessed = 4 * (sum(int(np.prod(a.shape)) for a in args) + b * DIM)

    out = pl.pallas_call(
        kernel,
        out_shape=jax.ShapeDtypeStruct((b, 1, DIM), jnp.float32),
        grid=(b,),
        in_specs=in_specs,
        out_specs=pl.BlockSpec((1, 1, DIM), lambda i: (i, 0, 0)),
        scratch_shapes=[pltpu.VMEM((s_sp, DIM), jnp.float32),
                        pltpu.VMEM((s_tm, DIM), jnp.float32)],
        compiler_params=pltpu.CompilerParams(
            dimension_semantics=("parallel",)),
        cost_estimate=pl.CostEstimate(flops=int(flops),
                                      transcendentals=int(trans),
                                      bytes_accessed=int(bytes_accessed)),
    )(*args)
    return out.reshape(b, DIM)            # to_latent = Identity


# ----------------------------- parameters ------------------------------------
def init_params(key):
    keys = iter(jax.random.split(key, 128))

    def nrm(shape, scale=0.02):
        return (scale * jax.random.normal(next(keys), shape)).astype(jnp.float32)

    def make_layer():
        return dict(
            ln1_g=jnp.ones((1, DIM), jnp.float32),
            ln1_b=jnp.zeros((1, DIM), jnp.float32),
            wq=nrm((HEADS, DIM, DIM_HEAD)),             # to_qkv (bias=False), per head
            wk=nrm((HEADS, DIM, DIM_HEAD)),
            wv=nrm((HEADS, DIM, DIM_HEAD)),
            wo=nrm((HEADS, DIM_HEAD, DIM)),             # to_out Linear, per-head slices
            bo=jnp.zeros((1, DIM), jnp.float32),
            ln2_g=jnp.ones((1, DIM), jnp.float32),
            ln2_b=jnp.zeros((1, DIM), jnp.float32),
            w1=nrm((DIM, MLP_DIM)),
            b1=jnp.zeros((1, MLP_DIM), jnp.float32),
            w2=nrm((MLP_DIM, DIM)),
            b2=jnp.zeros((1, DIM), jnp.float32),
        )

    return dict(
        linear_w=nrm((PATCH_DIM, DIM)),                 # nn.Linear(512, dim)
        linear_b=jnp.zeros((1, DIM), jnp.float32),
        spatial_cls=nrm((1, DIM), 1.0),                 # torch.randn(1,1,dim)
        temporal_cls=nrm((1, DIM), 1.0),
        spatial_layers=[make_layer() for _ in range(SPATIAL_DEPTH)],
        spatial_norm_g=jnp.ones((1, DIM), jnp.float32),
        spatial_norm_b=jnp.zeros((1, DIM), jnp.float32),
        temporal_layers=[make_layer() for _ in range(TEMPORAL_DEPTH)],
        temporal_norm_g=jnp.ones((1, DIM), jnp.float32),
        temporal_norm_b=jnp.zeros((1, DIM), jnp.float32),
    )


# ----------------------------- main -------------------------------------------
if __name__ == "__main__":
    key = jax.random.PRNGKey(0)
    kp, kx = jax.random.split(key)
    params = init_params(kp)

    b, t, v = 2, 4, 5
    x = jax.random.normal(kx, (b, NUM_PERSON, C_BACKBONE, t, v), dtype=jnp.float32)

    out = jax.jit(aagcn_vivit_forward)(x, params)
    out = jax.block_until_ready(out)
    assert out.shape == (b, DIM), out.shape
    assert bool(jnp.all(jnp.isfinite(out)))
    print("KERNEL_OK")
</pallas_src>

<mosaic_0001>
module attributes {stable_mosaic.version = 11 : i64} {
  func.func @kernel(%arg0: i32, %arg1: memref<1x20x512xf32, #tpu.memory_space<vmem>>, %arg2: memref<28x28xf32, #tpu.memory_space<vmem>>, %arg3: memref<8x8xf32, #tpu.memory_space<vmem>>, %arg4: memref<512x32xf32, #tpu.memory_space<vmem>>, %arg5: memref<1x32xf32, #tpu.memory_space<vmem>>, %arg6: memref<1x32xf32, #tpu.memory_space<vmem>>, %arg7: memref<1x32xf32, #tpu.memory_space<vmem>>, %arg8: memref<1x32xf32, #tpu.memory_space<vmem>>, %arg9: memref<1x32xf32, #tpu.memory_space<vmem>>, %arg10: memref<2x32x16xf32, #tpu.memory_space<vmem>>, %arg11: memref<2x32x16xf32, #tpu.memory_space<vmem>>, %arg12: memref<2x32x16xf32, #tpu.memory_space<vmem>>, %arg13: memref<2x16x32xf32, #tpu.memory_space<vmem>>, %arg14: memref<1x32xf32, #tpu.memory_space<vmem>>, %arg15: memref<1x32xf32, #tpu.memory_space<vmem>>, %arg16: memref<1x32xf32, #tpu.memory_space<vmem>>, %arg17: memref<32x64xf32, #tpu.memory_space<vmem>>, %arg18: memref<1x64xf32, #tpu.memory_space<vmem>>, %arg19: memref<64x32xf32, #tpu.memory_space<vmem>>, %arg20: memref<1x32xf32, #tpu.memory_space<vmem>>, %arg21: memref<1x32xf32, #tpu.memory_space<vmem>>, %arg22: memref<1x32xf32, #tpu.memory_space<vmem>>, %arg23: memref<1x32xf32, #tpu.memory_space<vmem>>, %arg24: memref<1x32xf32, #tpu.memory_space<vmem>>, %arg25: memref<2x32x16xf32, #tpu.memory_space<vmem>>, %arg26: memref<2x32x16xf32, #tpu.memory_space<vmem>>, %arg27: memref<2x32x16xf32, #tpu.memory_space<vmem>>, %arg28: memref<2x16x32xf32, #tpu.memory_space<vmem>>, %arg29: memref<1x32xf32, #tpu.memory_space<vmem>>, %arg30: memref<1x32xf32, #tpu.memory_space<vmem>>, %arg31: memref<1x32xf32, #tpu.memory_space<vmem>>, %arg32: memref<32x64xf32, #tpu.memory_space<vmem>>, %arg33: memref<1x64xf32, #tpu.memory_space<vmem>>, %arg34: memref<64x32xf32, #tpu.memory_space<vmem>>, %arg35: memref<1x32xf32, #tpu.memory_space<vmem>>, %arg36: memref<1x32xf32, #tpu.memory_space<vmem>>, %arg37: memref<1x32xf32, #tpu.memory_space<vmem>>, %arg38: memref<1x1x32xf32, #tpu.memory_space<vmem>>, %arg39: memref<28x32xf32, #tpu.memory_space<vmem>>, %arg40: memref<8x32xf32, #tpu.memory_space<vmem>>) attributes {dimension_semantics = [#tpu.dimension_semantics<parallel>], iteration_bounds = array<i64: 2>, scalar_prefetch = 0 : i64, scratch_operands = 2 : i64, tpu.core_type = #tpu.core_type<tc>, window_params = [{transform_indices = @transform_0, window_bounds = array<i64: 1, 20, 512>}, {pipeline_mode = #tpu.pipeline_mode<synchronous>, transform_indices = @transform_1, window_bounds = array<i64: 28, 28>}, {pipeline_mode = #tpu.pipeline_mode<synchronous>, transform_indices = @transform_2, window_bounds = array<i64: 8, 8>}, {pipeline_mode = #tpu.pipeline_mode<synchronous>, transform_indices = @transform_3, window_bounds = array<i64: 512, 32>}, {pipeline_mode = #tpu.pipeline_mode<synchronous>, transform_indices = @transform_4, window_bounds = array<i64: 1, 32>}, {pipeline_mode = #tpu.pipeline_mode<synchronous>, transform_indices = @transform_5, window_bounds = array<i64: 1, 32>}, {pipeline_mode = #tpu.pipeline_mode<synchronous>, transform_indices = @transform_6, window_bounds = array<i64: 1, 32>}, {pipeline_mode = #tpu.pipeline_mode<synchronous>, transform_indices = @transform_7, window_bounds = array<i64: 1, 32>}, {pipeline_mode = #tpu.pipeline_mode<synchronous>, transform_indices = @transform_8, window_bounds = array<i64: 1, 32>}, {pipeline_mode = #tpu.pipeline_mode<synchronous>, transform_indices = @transform_9, window_bounds = array<i64: 2, 32, 16>}, {pipeline_mode = #tpu.pipeline_mode<synchronous>, transform_indices = @transform_10, window_bounds = array<i64: 2, 32, 16>}, {pipeline_mode = #tpu.pipeline_mode<synchronous>, transform_indices = @transform_11, window_bounds = array<i64: 2, 32, 16>}, {pipeline_mode = #tpu.pipeline_mode<synchronous>, transform_indices = @transform_12, window_bounds = array<i64: 2, 16, 32>}, {pipeline_mode = #tpu.pipeline_mode<synchronous>, transform_indices = @transform_13, window_bounds = array<i64: 1, 32>}, {pipeline_mode = #tpu.pipeline_mode<synchronous>, transform_indices = @transform_14, window_bounds = array<i64: 1, 32>}, {pipeline_mode = #tpu.pipeline_mode<synchronous>, transform_indices = @transform_15, window_bounds = array<i64: 1, 32>}, {pipeline_mode = #tpu.pipeline_mode<synchronous>, transform_indices = @transform_16, window_bounds = array<i64: 32, 64>}, {pipeline_mode = #tpu.pipeline_mode<synchronous>, transform_indices = @transform_17, window_bounds = array<i64: 1, 64>}, {pipeline_mode = #tpu.pipeline_mode<synchronous>, transform_indices = @transform_18, window_bounds = array<i64: 64, 32>}, {pipeline_mode = #tpu.pipeline_mode<synchronous>, transform_indices = @transform_19, window_bounds = array<i64: 1, 32>}, {pipeline_mode = #tpu.pipeline_mode<synchronous>, transform_indices = @transform_20, window_bounds = array<i64: 1, 32>}, {pipeline_mode = #tpu.pipeline_mode<synchronous>, transform_indices = @transform_21, window_bounds = array<i64: 1, 32>}, {pipeline_mode = #tpu.pipeline_mode<synchronous>, transform_indices = @transform_22, window_bounds = array<i64: 1, 32>}, {pipeline_mode = #tpu.pipeline_mode<synchronous>, transform_indices = @transform_23, window_bounds = array<i64: 1, 32>}, {pipeline_mode = #tpu.pipeline_mode<synchronous>, transform_indices = @transform_24, window_bounds = array<i64: 2, 32, 16>}, {pipeline_mode = #tpu.pipeline_mode<synchronous>, transform_indices = @transform_25, window_bounds = array<i64: 2, 32, 16>}, {pipeline_mode = #tpu.pipeline_mode<synchronous>, transform_indices = @transform_26, window_bounds = array<i64: 2, 32, 16>}, {pipeline_mode = #tpu.pipeline_mode<synchronous>, transform_indices = @transform_27, window_bounds = array<i64: 2, 16, 32>}, {pipeline_mode = #tpu.pipeline_mode<synchronous>, transform_indices = @transform_28, window_bounds = array<i64: 1, 32>}, {pipeline_mode = #tpu.pipeline_mode<synchronous>, transform_indices = @transform_29, window_bounds = array<i64: 1, 32>}, {pipeline_mode = #tpu.pipeline_mode<synchronous>, transform_indices = @transform_30, window_bounds = array<i64: 1, 32>}, {pipeline_mode = #tpu.pipeline_mode<synchronous>, transform_indices = @transform_31, window_bounds = array<i64: 32, 64>}, {pipeline_mode = #tpu.pipeline_mode<synchronous>, transform_indices = @transform_32, window_bounds = array<i64: 1, 64>}, {pipeline_mode = #tpu.pipeline_mode<synchronous>, transform_indices = @transform_33, window_bounds = array<i64: 64, 32>}, {pipeline_mode = #tpu.pipeline_mode<synchronous>, transform_indices = @transform_34, window_bounds = array<i64: 1, 32>}, {pipeline_mode = #tpu.pipeline_mode<synchronous>, transform_indices = @transform_35, window_bounds = array<i64: 1, 32>}, {pipeline_mode = #tpu.pipeline_mode<synchronous>, transform_indices = @transform_36, window_bounds = array<i64: 1, 32>}, {transform_indices = @transform_37, window_bounds = array<i64: 1, 1, 32>}]} {
    %c0 = arith.constant 0 : index
    %c0_0 = arith.constant 0 : index
    %c0_1 = arith.constant 0 : index
    %0 = vector.load %arg1[%c0, %c0_0, %c0_1] : memref<1x20x512xf32, #tpu.memory_space<vmem>>, vector<1x20x512xf32>
    %1 = vector.shape_cast %0 : vector<1x20x512xf32> to vector<20x512xf32>
    %c0_2 = arith.constant 0 : index
    %c0_3 = arith.constant 0 : index
    %2 = vector.load %arg4[%c0_2, %c0_3] : memref<512x32xf32, #tpu.memory_space<vmem>>, vector<512x32xf32>
    %cst = arith.constant dense<0.000000e+00> : vector<20x32xf32>
    %3 = tpu.matmul %1, %2, %cst {dimension_numbers = #tpu.dot_dimension_numbers<[1], [0], [0], [1], [0, 0, 1, 1], [], []>} : vector<20x512xf32>, vector<512x32xf32>, vector<20x32xf32> -> vector<20x32xf32>
    %c0_4 = arith.constant 0 : index
    %c0_5 = arith.constant 0 : index
    %4 = vector.load %arg5[%c0_4, %c0_5] : memref<1x32xf32, #tpu.memory_space<vmem>>, vector<1x32xf32>
    %5 = vector.broadcast %4 : vector<1x32xf32> to vector<20x32xf32>
    %6 = arith.addf %3, %5 : vector<20x32xf32>
    %c0_6 = arith.constant 0 : index
    %c0_7 = arith.constant 0 : index
    %7 = vector.load %arg6[%c0_6, %c0_7] : memref<1x32xf32, #tpu.memory_space<vmem>>, vector<1x32xf32>
    %8 = vector.shape_cast %7 : vector<1x32xf32> to vector<1x32xf32>
    %9 = vector.broadcast %8 : vector<1x32xf32> to vector<12x32xf32>
    %c16 = arith.constant 16 : index
    %c0_8 = arith.constant 0 : index
    %10 = vector.load %arg39[%c16, %c0_8] : memref<28x32xf32, #tpu.memory_space<vmem>>, vector<12x32xf32>
    tpu.vector_store %arg39[%c16, %c0_8], %9 {strides = array<i32>} : memref<28x32xf32, #tpu.memory_space<vmem>>, vector<12x32xf32>,
    %c0_9 = arith.constant 0 : index
    %c0_10 = arith.constant 0 : index
    %11 = vector.load %arg39[%c0_9, %c0_10] : memref<28x32xf32, #tpu.memory_space<vmem>>, vector<20x32xf32>
    tpu.vector_store %arg39[%c0_9, %c0_10], %6 {strides = array<i32>} : memref<28x32xf32, #tpu.memory_space<vmem>>, vector<20x32xf32>,
    %c0_11 = arith.constant 0 : index
    %c0_12 = arith.constant 0 : index
    %12 = vector.load %arg39[%c0_11, %c0_12] : memref<28x32xf32, #tpu.memory_space<vmem>>, vector<28x32xf32>
    %c0_13 = arith.constant 0 : index
    %c0_14 = arith.constant 0 : index
    %13 = vector.load %arg2[%c0_13, %c0_14] : memref<28x28xf32, #tpu.memory_space<vmem>>, vector<28x28xf32>
    %c0_15 = arith.constant 0 : index
    %c0_16 = arith.constant 0 : index
    %14 = vector.load %arg8[%c0_15, %c0_16] : memref<1x32xf32, #tpu.memory_space<vmem>>, vector<1x32xf32>
    %c0_17 = arith.constant 0 : index
    %c0_18 = arith.constant 0 : index
    %15 = vector.load %arg9[%c0_17, %c0_18] : memref<1x32xf32, #tpu.memory_space<vmem>>, vector<1x32xf32>
    %cst_19 = arith.constant dense<0.000000e+00> : vector<28xf32>
    %16 = vector.multi_reduction <add>, %12, %cst_19 [1] : vector<28x32xf32> to vector<28xf32>
    %17 = vector.shape_cast %16 : vector<28xf32> to vector<28x1xf32>
    %cst_20 = arith.constant 3.200000e+01 : f32
    %18 = vector.broadcast %cst_20 : f32 to vector<28x1xf32>
    %19 = arith.divf %17, %18 : vector<28x1xf32>
    %20 = vector.broadcast %19 : vector<28x1xf32> to vector<28x32xf32>
    %21 = arith.subf %12, %20 : vector<28x32xf32>
    %22 = arith.mulf %21, %21 : vector<28x32xf32>
    %cst_21 = arith.constant dense<0.000000e+00> : vector<28xf32>
    %23 = vector.multi_reduction <add>, %22, %cst_21 [1] : vector<28x32xf32> to vector<28xf32>
    %24 = vector.shape_cast %23 : vector<28xf32> to vector<28x1xf32>
    %cst_22 = arith.constant 3.200000e+01 : f32
    %25 = vector.broadcast %cst_22 : f32 to vector<28x1xf32>
    %26 = arith.divf %24, %25 : vector<28x1xf32>
    %27 = vector.broadcast %19 : vector<28x1xf32> to vector<28x32xf32>
    %28 = arith.subf %12, %27 : vector<28x32xf32>
    %cst_23 = arith.constant 9.99999974E-6 : f32
    %29 = vector.broadcast %cst_23 : f32 to vector<28x1xf32>
    %30 = arith.addf %26, %29 : vector<28x1xf32>
    %31 = math.rsqrt %30 : vector<28x1xf32>
    %32 = vector.broadcast %31 : vector<28x1xf32> to vector<28x32xf32>
    %33 = arith.mulf %28, %32 : vector<28x32xf32>
    %34 = vector.broadcast %14 : vector<1x32xf32> to vector<28x32xf32>
    %35 = arith.mulf %33, %34 : vector<28x32xf32>
    %36 = vector.broadcast %15 : vector<1x32xf32> to vector<28x32xf32>
    %37 = arith.addf %35, %36 : vector<28x32xf32>
    %cst_24 = arith.constant 0.000000e+00 : f32
    %38 = vector.broadcast %cst_24 : f32 to vector<28x32xf32>
    %c0_25 = arith.constant 0 : index
    %c0_26 = arith.constant 0 : index
    %c0_27 = arith.constant 0 : index
    %39 = vector.load %arg10[%c0_25, %c0_26, %c0_27] : memref<2x32x16xf32, #tpu.memory_space<vmem>>, vector<1x32x16xf32>
    %40 = vector.shape_cast %39 : vector<1x32x16xf32> to vector<32x16xf32>
    %cst_28 = arith.constant dense<0.000000e+00> : vector<28x16xf32>
    %41 = tpu.matmul %37, %40, %cst_28 {dimension_numbers = #tpu.dot_dimension_numbers<[1], [0], [0], [1], [0, 0, 1, 1], [], []>} : vector<28x32xf32>, vector<32x16xf32>, vector<28x16xf32> -> vector<28x16xf32>
    %c0_29 = arith.constant 0 : index
    %c0_30 = arith.constant 0 : index
    %c0_31 = arith.constant 0 : index
    %42 = vector.load %arg11[%c0_29, %c0_30, %c0_31] : memref<2x32x16xf32, #tpu.memory_space<vmem>>, vector<1x32x16xf32>
    %43 = vector.shape_cast %42 : vector<1x32x16xf32> to vector<32x16xf32>
    %cst_32 = arith.constant dense<0.000000e+00> : vector<28x16xf32>
    %44 = tpu.matmul %37, %43, %cst_32 {dimension_numbers = #tpu.dot_dimension_numbers<[1], [0], [0], [1], [0, 0, 1, 1], [], []>} : vector<28x32xf32>, vector<32x16xf32>, vector<28x16xf32> -> vector<28x16xf32>
    %c0_33 = arith.constant 0 : index
    %c0_34 = arith.constant 0 : index
    %c0_35 = arith.constant 0 : index
    %45 = vector.load %arg12[%c0_33, %c0_34, %c0_35] : memref<2x32x16xf32, #tpu.memory_space<vmem>>, vector<1x32x16xf32>
    %46 = vector.shape_cast %45 : vector<1x32x16xf32> to vector<32x16xf32>
    %cst_36 = arith.constant dense<0.000000e+00> : vector<28x16xf32>
    %47 = tpu.matmul %37, %46, %cst_36 {dimension_numbers = #tpu.dot_dimension_numbers<[1], [0], [0], [1], [0, 0, 1, 1], [], []>} : vector<28x32xf32>, vector<32x16xf32>, vector<28x16xf32> -> vector<28x16xf32>
    %cst_37 = arith.constant dense<0.000000e+00> : vector<28x28xf32>
    %48 = tpu.matmul %41, %44, %cst_37 {dimension_numbers = #tpu.dot_dimension_numbers<[1], [1], [0], [0], [0, 0, 1, 0], [], []>} : vector<28x16xf32>, vector<28x16xf32>, vector<28x28xf32> -> vector<28x28xf32>
    %cst_38 = arith.constant 2.500000e-01 : f32
    %49 = vector.broadcast %cst_38 : f32 to vector<28x28xf32>
    %50 = arith.mulf %48, %49 : vector<28x28xf32>
    %51 = arith.addf %50, %13 : vector<28x28xf32>
    %cst_39 = arith.constant dense<0xFF800000> : vector<28xf32>
    %52 = vector.multi_reduction <maximumf>, %51, %cst_39 [1] : vector<28x28xf32> to vector<28xf32>
    %53 = vector.shape_cast %52 : vector<28xf32> to vector<28x1xf32>
    %54 = vector.broadcast %53 : vector<28x1xf32> to vector<28x28xf32>
    %55 = arith.subf %51, %54 : vector<28x28xf32>
    %56 = math.exp %55 : vector<28x28xf32>
    %cst_40 = arith.constant dense<0.000000e+00> : vector<28xf32>
    %57 = vector.multi_reduction <add>, %56, %cst_40 [1] : vector<28x28xf32> to vector<28xf32>
    %58 = vector.shape_cast %57 : vector<28xf32> to vector<28x1xf32>
    %59 = vector.broadcast %58 : vector<28x1xf32> to vector<28x28xf32>
    %60 = arith.divf %56, %59 : vector<28x28xf32>
    %cst_41 = arith.constant dense<0.000000e+00> : vector<28x16xf32>
    %61 = tpu.matmul %60, %47, %cst_41 {dimension_numbers = #tpu.dot_dimension_numbers<[1], [0], [0], [1], [0, 0, 1, 1], [], []>} : vector<28x28xf32>, vector<28x16xf32>, vector<28x16xf32> -> vector<28x16xf32>
    %c0_42 = arith.constant 0 : index
    %c0_43 = arith.constant 0 : index
    %c0_44 = arith.constant 0 : index
    %62 = vector.load %arg13[%c0_42, %c0_43, %c0_44] : memref<2x16x32xf32, #tpu.memory_space<vmem>>, vector<1x16x32xf32>
    %63 = vector.shape_cast %62 : vector<1x16x32xf32> to vector<16x32xf32>
    %cst_45 = arith.constant dense<0.000000e+00> : vector<28x32xf32>
    %64 = tpu.matmul %61, %63, %cst_45 {dimension_numbers = #tpu.dot_dimension_numbers<[1], [0], [0], [1], [0, 0, 1, 1], [], []>} : vector<28x16xf32>, vector<16x32xf32>, vector<28x32xf32> -> vector<28x32xf32>
    %65 = arith.addf %38, %64 : vector<28x32xf32>
    %c1 = arith.constant 1 : index
    %c0_46 = arith.constant 0 : index
    %c0_47 = arith.constant 0 : index
    %66 = vector.load %arg10[%c1, %c0_46, %c0_47] : memref<2x32x16xf32, #tpu.memory_space<vmem>>, vector<1x32x16xf32>
    %67 = vector.shape_cast %66 : vector<1x32x16xf32> to vector<32x16xf32>
    %cst_48 = arith.constant dense<0.000000e+00> : vector<28x16xf32>
    %68 = tpu.matmul %37, %67, %cst_48 {dimension_numbers = #tpu.dot_dimension_numbers<[1], [0], [0], [1], [0, 0, 1, 1], [], []>} : vector<28x32xf32>, vector<32x16xf32>, vector<28x16xf32> -> vector<28x16xf32>
    %c1_49 = arith.constant 1 : index
    %c0_50 = arith.constant 0 : index
    %c0_51 = arith.constant 0 : index
    %69 = vector.load %arg11[%c1_49, %c0_50, %c0_51] : memref<2x32x16xf32, #tpu.memory_space<vmem>>, vector<1x32x16xf32>
    %70 = vector.shape_cast %69 : vector<1x32x16xf32> to vector<32x16xf32>
    %cst_52 = arith.constant dense<0.000000e+00> : vector<28x16xf32>
    %71 = tpu.matmul %37, %70, %cst_52 {dimension_numbers = #tpu.dot_dimension_numbers<[1], [0], [0], [1], [0, 0, 1, 1], [], []>} : vector<28x32xf32>, vector<32x16xf32>, vector<28x16xf32> -> vector<28x16xf32>
    %c1_53 = arith.constant 1 : index
    %c0_54 = arith.constant 0 : index
    %c0_55 = arith.constant 0 : index
    %72 = vector.load %arg12[%c1_53, %c0_54, %c0_55] : memref<2x32x16xf32, #tpu.memory_space<vmem>>, vector<1x32x16xf32>
    %73 = vector.shape_cast %72 : vector<1x32x16xf32> to vector<32x16xf32>
    %cst_56 = arith.constant dense<0.000000e+00> : vector<28x16xf32>
    %74 = tpu.matmul %37, %73, %cst_56 {dimension_numbers = #tpu.dot_dimension_numbers<[1], [0], [0], [1], [0, 0, 1, 1], [], []>} : vector<28x32xf32>, vector<32x16xf32>, vector<28x16xf32> -> vector<28x16xf32>
    %cst_57 = arith.constant dense<0.000000e+00> : vector<28x28xf32>
    %75 = tpu.matmul %68, %71, %cst_57 {dimension_numbers = #tpu.dot_dimension_numbers<[1], [1], [0], [0], [0, 0, 1, 0], [], []>} : vector<28x16xf32>, vector<28x16xf32>, vector<28x28xf32> -> vector<28x28xf32>
    %cst_58 = arith.constant 2.500000e-01 : f32
    %76 = vector.broadcast %cst_58 : f32 to vector<28x28xf32>
    %77 = arith.mulf %75, %76 : vector<28x28xf32>
    %78 = arith.addf %77, %13 : vector<28x28xf32>
    %cst_59 = arith.constant dense<0xFF800000> : vector<28xf32>
    %79 = vector.multi_reduction <maximumf>, %78, %cst_59 [1] : vector<28x28xf32> to vector<28xf32>
    %80 = vector.shape_cast %79 : vector<28xf32> to vector<28x1xf32>
    %81 = vector.broadcast %80 : vector<28x1xf32> to vector<28x28xf32>
    %82 = arith.subf %78, %81 : vector<28x28xf32>
    %83 = math.exp %82 : vector<28x28xf32>
    %cst_60 = arith.constant dense<0.000000e+00> : vector<28xf32>
    %84 = vector.multi_reduction <add>, %83, %cst_60 [1] : vector<28x28xf32> to vector<28xf32>
    %85 = vector.shape_cast %84 : vector<28xf32> to vector<28x1xf32>
    %86 = vector.broadcast %85 : vector<28x1xf32> to vector<28x28xf32>
    %87 = arith.divf %83, %86 : vector<28x28xf32>
    %cst_61 = arith.constant dense<0.000000e+00> : vector<28x16xf32>
    %88 = tpu.matmul %87, %74, %cst_61 {dimension_numbers = #tpu.dot_dimension_numbers<[1], [0], [0], [1], [0, 0, 1, 1], [], []>} : vector<28x28xf32>, vector<28x16xf32>, vector<28x16xf32> -> vector<28x16xf32>
    %c1_62 = arith.constant 1 : index
    %c0_63 = arith.constant 0 : index
    %c0_64 = arith.constant 0 : index
    %89 = vector.load %arg13[%c1_62, %c0_63, %c0_64] : memref<2x16x32xf32, #tpu.memory_space<vmem>>, vector<1x16x32xf32>
    %90 = vector.shape_cast %89 : vector<1x16x32xf32> to vector<16x32xf32>
    %cst_65 = arith.constant dense<0.000000e+00> : vector<28x32xf32>
    %91 = tpu.matmul %88, %90, %cst_65 {dimension_numbers = #tpu.dot_dimension_numbers<[1], [0], [0], [1], [0, 0, 1, 1], [], []>} : vector<28x16xf32>, vector<16x32xf32>, vector<28x32xf32> -> vector<28x32xf32>
    %92 = arith.addf %65, %91 : vector<28x32xf32>
    %93 = arith.addf %12, %92 : vector<28x32xf32>
    %c0_66 = arith.constant 0 : index
    %c0_67 = arith.constant 0 : index
    %94 = vector.load %arg14[%c0_66, %c0_67] : memref<1x32xf32, #tpu.memory_space<vmem>>, vector<1x32xf32>
    %95 = vector.broadcast %94 : vector<1x32xf32> to vector<28x32xf32>
    %96 = arith.addf %93, %95 : vector<28x32xf32>
    %c0_68 = arith.constant 0 : index
    %c0_69 = arith.constant 0 : index
    %97 = vector.load %arg15[%c0_68, %c0_69] : memref<1x32xf32, #tpu.memory_space<vmem>>, vector<1x32xf32>
    %c0_70 = arith.constant 0 : index
    %c0_71 = arith.constant 0 : index
    %98 = vector.load %arg16[%c0_70, %c0_71] : memref<1x32xf32, #tpu.memory_space<vmem>>, vector<1x32xf32>
    %cst_72 = arith.constant dense<0.000000e+00> : vector<28xf32>
    %99 = vector.multi_reduction <add>, %96, %cst_72 [1] : vector<28x32xf32> to vector<28xf32>
    %100 = vector.shape_cast %99 : vector<28xf32> to vector<28x1xf32>
    %cst_73 = arith.constant 3.200000e+01 : f32
    %101 = vector.broadcast %cst_73 : f32 to vector<28x1xf32>
    %102 = arith.divf %100, %101 : vector<28x1xf32>
    %103 = vector.broadcast %102 : vector<28x1xf32> to vector<28x32xf32>
    %104 = arith.subf %96, %103 : vector<28x32xf32>
    %105 = arith.mulf %104, %104 : vector<28x32xf32>
    %cst_74 = arith.constant dense<0.000000e+00> : vector<28xf32>
    %106 = vector.multi_reduction <add>, %105, %cst_74 [1] : vector<28x32xf32> to vector<28xf32>
    %107 = vector.shape_cast %106 : vector<28xf32> to vector<28x1xf32>
    %cst_75 = arith.constant 3.200000e+01 : f32
    %108 = vector.broadcast %cst_75 : f32 to vector<28x1xf32>
    %109 = arith.divf %107, %108 : vector<28x1xf32>
    %110 = vector.broadcast %102 : vector<28x1xf32> to vector<28x32xf32>
    %111 = arith.subf %96, %110 : vector<28x32xf32>
    %cst_76 = arith.constant 9.99999974E-6 : f32
    %112 = vector.broadcast %cst_76 : f32 to vector<28x1xf32>
    %113 = arith.addf %109, %112 : vector<28x1xf32>
    %114 = math.rsqrt %113 : vector<28x1xf32>
    %115 = vector.broadcast %114 : vector<28x1xf32> to vector<28x32xf32>
    %116 = arith.mulf %111, %115 : vector<28x32xf32>
    %117 = vector.broadcast %97 : vector<1x32xf32> to vector<28x32xf32>
    %118 = arith.mulf %116, %117 : vector<28x32xf32>
    %119 = vector.broadcast %98 : vector<1x32xf32> to vector<28x32xf32>
    %120 = arith.addf %118, %119 : vector<28x32xf32>
    %c0_77 = arith.constant 0 : index
    %c0_78 = arith.constant 0 : index
    %121 = vector.load %arg17[%c0_77, %c0_78] : memref<32x64xf32, #tpu.memory_space<vmem>>, vector<32x64xf32>
    %cst_79 = arith.constant dense<0.000000e+00> : vector<28x64xf32>
    %122 = tpu.matmul %120, %121, %cst_79 {dimension_numbers = #tpu.dot_dimension_numbers<[1], [0], [0], [1], [0, 0, 1, 1], [], []>} : vector<28x32xf32>, vector<32x64xf32>, vector<28x64xf32> -> vector<28x64xf32>
    %c0_80 = arith.constant 0 : index
    %c0_81 = arith.constant 0 : index
    %123 = vector.load %arg18[%c0_80, %c0_81] : memref<1x64xf32, #tpu.memory_space<vmem>>, vector<1x64xf32>
    %124 = vector.broadcast %123 : vector<1x64xf32> to vector<28x64xf32>
    %125 = arith.addf %122, %124 : vector<28x64xf32>
    %cst_82 = arith.constant 5.000000e-01 : f32
    %126 = vector.broadcast %cst_82 : f32 to vector<28x64xf32>
    %127 = arith.mulf %126, %125 : vector<28x64xf32>
    %cst_83 = arith.constant 4.471500e-02 : f32
    %128 = vector.broadcast %cst_83 : f32 to vector<28x64xf32>
    %129 = arith.mulf %128, %125 : vector<28x64xf32>
    %130 = arith.mulf %129, %125 : vector<28x64xf32>
    %131 = arith.mulf %130, %125 : vector<28x64xf32>
    %132 = arith.addf %125, %131 : vector<28x64xf32>
    %cst_84 = arith.constant 0.797884583 : f32
    %133 = vector.broadcast %cst_84 : f32 to vector<28x64xf32>
    %134 = arith.mulf %133, %132 : vector<28x64xf32>
    %135 = math.tanh %134 : vector<28x64xf32>
    %cst_85 = arith.constant 1.000000e+00 : f32
    %136 = vector.broadcast %cst_85 : f32 to vector<28x64xf32>
    %137 = arith.addf %136, %135 : vector<28x64xf32>
    %138 = arith.mulf %127, %137 : vector<28x64xf32>
    %c0_86 = arith.constant 0 : index
    %c0_87 = arith.constant 0 : index
    %139 = vector.load %arg19[%c0_86, %c0_87] : memref<64x32xf32, #tpu.memory_space<vmem>>, vector<64x32xf32>
    %cst_88 = arith.constant dense<0.000000e+00> : vector<28x32xf32>
    %140 = tpu.matmul %138, %139, %cst_88 {dimension_numbers = #tpu.dot_dimension_numbers<[1], [0], [0], [1], [0, 0, 1, 1], [], []>} : vector<28x64xf32>, vector<64x32xf32>, vector<28x32xf32> -> vector<28x32xf32>
    %141 = arith.addf %96, %140 : vector<28x32xf32>
    %c0_89 = arith.constant 0 : index
    %c0_90 = arith.constant 0 : index
    %142 = vector.load %arg20[%c0_89, %c0_90] : memref<1x32xf32, #tpu.memory_space<vmem>>, vector<1x32xf32>
    %143 = vector.broadcast %142 : vector<1x32xf32> to vector<28x32xf32>
    %144 = arith.addf %141, %143 : vector<28x32xf32>
    %c0_91 = arith.constant 0 : index
    %c0_92 = arith.constant 0 : index
    %145 = vector.load %arg21[%c0_91, %c0_92] : memref<1x32xf32, #tpu.memory_space<vmem>>, vector<1x32xf32>
    %c0_93 = arith.constant 0 : index
    %c0_94 = arith.constant 0 : index
    %146 = vector.load %arg22[%c0_93, %c0_94] : memref<1x32xf32, #tpu.memory_space<vmem>>, vector<1x32xf32>
    %cst_95 = arith.constant dense<0.000000e+00> : vector<28xf32>
    %147 = vector.multi_reduction <add>, %144, %cst_95 [1] : vector<28x32xf32> to vector<28xf32>
    %148 = vector.shape_cast %147 : vector<28xf32> to vector<28x1xf32>
    %cst_96 = arith.constant 3.200000e+01 : f32
    %149 = vector.broadcast %cst_96 : f32 to vector<28x1xf32>
    %150 = arith.divf %148, %149 : vector<28x1xf32>
    %151 = vector.broadcast %150 : vector<28x1xf32> to vector<28x32xf32>
    %152 = arith.subf %144, %151 : vector<28x32xf32>
    %153 = arith.mulf %152, %152 : vector<28x32xf32>
    %cst_97 = arith.constant dense<0.000000e+00> : vector<28xf32>
    %154 = vector.multi_reduction <add>, %153, %cst_97 [1] : vector<28x32xf32> to vector<28xf32>
    %155 = vector.shape_cast %154 : vector<28xf32> to vector<28x1xf32>
    %cst_98 = arith.constant 3.200000e+01 : f32
    %156 = vector.broadcast %cst_98 : f32 to vector<28x1xf32>
    %157 = arith.divf %155, %156 : vector<28x1xf32>
    %158 = vector.broadcast %150 : vector<28x1xf32> to vector<28x32xf32>
    %159 = arith.subf %144, %158 : vector<28x32xf32>
    %cst_99 = arith.constant 9.99999974E-6 : f32
    %160 = vector.broadcast %cst_99 : f32 to vector<28x1xf32>
    %161 = arith.addf %157, %160 : vector<28x1xf32>
    %162 = math.rsqrt %161 : vector<28x1xf32>
    %163 = vector.broadcast %162 : vector<28x1xf32> to vector<28x32xf32>
    %164 = arith.mulf %159, %163 : vector<28x32xf32>
    %165 = vector.broadcast %145 : vector<1x32xf32> to vector<28x32xf32>
    %166 = arith.mulf %164, %165 : vector<28x32xf32>
    %167 = vector.broadcast %146 : vector<1x32xf32> to vector<28x32xf32>
    %168 = arith.addf %166, %167 : vector<28x32xf32>
    %c0_100 = arith.constant 0 : index
    %c0_101 = arith.constant 0 : index
    %169 = vector.load %arg7[%c0_100, %c0_101] : memref<1x32xf32, #tpu.memory_space<vmem>>, vector<1x32xf32>
    %170 = vector.shape_cast %169 : vector<1x32xf32> to vector<1x32xf32>
    %171 = vector.broadcast %170 : vector<1x32xf32> to vector<8x32xf32>
    %c0_102 = arith.constant 0 : index
    %c0_103 = arith.constant 0 : index
    %172 = vector.load %arg40[%c0_102, %c0_103] : memref<8x32xf32, #tpu.memory_space<vmem>>, vector<8x32xf32>
    tpu.vector_store %arg40[%c0_102, %c0_103], %171 {strides = array<i32>} : memref<8x32xf32, #tpu.memory_space<vmem>>, vector<8x32xf32>,
    %173 = vector.extract_strided_slice %168 {offsets = [24, 0], sizes = [4, 32], strides = [1, 1]} : vector<28x32xf32> to vector<4x32xf32>
    %c0_104 = arith.constant 0 : index
    %c0_105 = arith.constant 0 : index
    %174 = vector.load %arg40[%c0_104, %c0_105] : memref<8x32xf32, #tpu.memory_space<vmem>>, vector<4x32xf32>
    tpu.vector_store %arg40[%c0_104, %c0_105], %173 {strides = array<i32>} : memref<8x32xf32, #tpu.memory_space<vmem>>, vector<4x32xf32>,
    %c0_106 = arith.constant 0 : index
    %c0_107 = arith.constant 0 : index
    %175 = vector.load %arg40[%c0_106, %c0_107] : memref<8x32xf32, #tpu.memory_space<vmem>>, vector<8x32xf32>
    %c0_108 = arith.constant 0 : index
    %c0_109 = arith.constant 0 : index
    %176 = vector.load %arg3[%c0_108, %c0_109] : memref<8x8xf32, #tpu.memory_space<vmem>>, vector<8x8xf32>
    %c0_110 = arith.constant 0 : index
    %c0_111 = arith.constant 0 : index
    %177 = vector.load %arg23[%c0_110, %c0_111] : memref<1x32xf32, #tpu.memory_space<vmem>>, vector<1x32xf32>
    %c0_112 = arith.constant 0 : index
    %c0_113 = arith.constant 0 : index
    %178 = vector.load %arg24[%c0_112, %c0_113] : memref<1x32xf32, #tpu.memory_space<vmem>>, vector<1x32xf32>
    %cst_114 = arith.constant dense<0.000000e+00> : vector<8xf32>
    %179 = vector.multi_reduction <add>, %175, %cst_114 [1] : vector<8x32xf32> to vector<8xf32>
    %180 = vector.shape_cast %179 : vector<8xf32> to vector<8x1xf32>
    %cst_115 = arith.constant 3.200000e+01 : f32
    %181 = vector.broadcast %cst_115 : f32 to vector<8x1xf32>
    %182 = arith.divf %180, %181 : vector<8x1xf32>
    %183 = vector.broadcast %182 : vector<8x1xf32> to vector<8x32xf32>
    %184 = arith.subf %175, %183 : vector<8x32xf32>
    %185 = arith.mulf %184, %184 : vector<8x32xf32>
    %cst_116 = arith.constant dense<0.000000e+00> : vector<8xf32>
    %186 = vector.multi_reduction <add>, %185, %cst_116 [1] : vector<8x32xf32> to vector<8xf32>
    %187 = vector.shape_cast %186 : vector<8xf32> to vector<8x1xf32>
    %cst_117 = arith.constant 3.200000e+01 : f32
    %188 = vector.broadcast %cst_117 : f32 to vector<8x1xf32>
    %189 = arith.divf %187, %188 : vector<8x1xf32>
    %190 = vector.broadcast %182 : vector<8x1xf32> to vector<8x32xf32>
    %191 = arith.subf %175, %190 : vector<8x32xf32>
    %cst_118 = arith.constant 9.99999974E-6 : f32
    %192 = vector.broadcast %cst_118 : f32 to vector<8x1xf32>
    %193 = arith.addf %189, %192 : vector<8x1xf32>
    %194 = math.rsqrt %193 : vector<8x1xf32>
    %195 = vector.broadcast %194 : vector<8x1xf32> to vector<8x32xf32>
    %196 = arith.mulf %191, %195 : vector<8x32xf32>
    %197 = vector.broadcast %177 : vector<1x32xf32> to vector<8x32xf32>
    %198 = arith.mulf %196, %197 : vector<8x32xf32>
    %199 = vector.broadcast %178 : vector<1x32xf32> to vector<8x32xf32>
    %200 = arith.addf %198, %199 : vector<8x32xf32>
    %cst_119 = arith.constant 0.000000e+00 : f32
    %201 = vector.broadcast %cst_119 : f32 to vector<8x32xf32>
    %c0_120 = arith.constant 0 : index
    %c0_121 = arith.constant 0 : index
    %c0_122 = arith.constant 0 : index
    %202 = vector.load %arg25[%c0_120, %c0_121, %c0_122] : memref<2x32x16xf32, #tpu.memory_space<vmem>>, vector<1x32x16xf32>
    %203 = vector.shape_cast %202 : vector<1x32x16xf32> to vector<32x16xf32>
    %cst_123 = arith.constant dense<0.000000e+00> : vector<8x16xf32>
    %204 = tpu.matmul %200, %203, %cst_123 {dimension_numbers = #tpu.dot_dimension_numbers<[1], [0], [0], [1], [0, 0, 1, 1], [], []>} : vector<8x32xf32>, vector<32x16xf32>, vector<8x16xf32> -> vector<8x16xf32>
    %c0_124 = arith.constant 0 : index
    %c0_125 = arith.constant 0 : index
    %c0_126 = arith.constant 0 : index
    %205 = vector.load %arg26[%c0_124, %c0_125, %c0_126] : memref<2x32x16xf32, #tpu.memory_space<vmem>>, vector<1x32x16xf32>
    %206 = vector.shape_cast %205 : vector<1x32x16xf32> to vector<32x16xf32>
    %cst_127 = arith.constant dense<0.000000e+00> : vector<8x16xf32>
    %207 = tpu.matmul %200, %206, %cst_127 {dimension_numbers = #tpu.dot_dimension_numbers<[1], [0], [0], [1], [0, 0, 1, 1], [], []>} : vector<8x32xf32>, vector<32x16xf32>, vector<8x16xf32> -> vector<8x16xf32>
    %c0_128 = arith.constant 0 : index
    %c0_129 = arith.constant 0 : index
    %c0_130 = arith.constant 0 : index
    %208 = vector.load %arg27[%c0_128, %c0_129, %c0_130] : memref<2x32x16xf32, #tpu.memory_space<vmem>>, vector<1x32x16xf32>
    %209 = vector.shape_cast %208 : vector<1x32x16xf32> to vector<32x16xf32>
    %cst_131 = arith.constant dense<0.000000e+00> : vector<8x16xf32>
    %210 = tpu.matmul %200, %209, %cst_131 {dimension_numbers = #tpu.dot_dimension_numbers<[1], [0], [0], [1], [0, 0, 1, 1], [], []>} : vector<8x32xf32>, vector<32x16xf32>, vector<8x16xf32> -> vector<8x16xf32>
    %cst_132 = arith.constant dense<0.000000e+00> : vector<8x8xf32>
    %211 = tpu.matmul %204, %207, %cst_132 {dimension_numbers = #tpu.dot_dimension_numbers<[1], [1], [0], [0], [0, 0, 1, 0], [], []>} : vector<8x16xf32>, vector<8x16xf32>, vector<8x8xf32> -> vector<8x8xf32>
    %cst_133 = arith.constant 2.500000e-01 : f32
    %212 = vector.broadcast %cst_133 : f32 to vector<8x8xf32>
    %213 = arith.mulf %211, %212 : vector<8x8xf32>
    %214 = arith.addf %213, %176 : vector<8x8xf32>
    %cst_134 = arith.constant dense<0xFF800000> : vector<8xf32>
    %215 = vector.multi_reduction <maximumf>, %214, %cst_134 [1] : vector<8x8xf32> to vector<8xf32>
    %216 = vector.shape_cast %215 : vector<8xf32> to vector<8x1xf32>
    %217 = vector.broadcast %216 : vector<8x1xf32> to vector<8x8xf32>
    %218 = arith.subf %214, %217 : vector<8x8xf32>
    %219 = math.exp %218 : vector<8x8xf32>
    %cst_135 = arith.constant dense<0.000000e+00> : vector<8xf32>
    %220 = vector.multi_reduction <add>, %219, %cst_135 [1] : vector<8x8xf32> to vector<8xf32>
    %221 = vector.shape_cast %220 : vector<8xf32> to vector<8x1xf32>
    %222 = vector.broadcast %221 : vector<8x1xf32> to vector<8x8xf32>
    %223 = arith.divf %219, %222 : vector<8x8xf32>
    %cst_136 = arith.constant dense<0.000000e+00> : vector<8x16xf32>
    %224 = tpu.matmul %223, %210, %cst_136 {dimension_numbers = #tpu.dot_dimension_numbers<[1], [0], [0], [1], [0, 0, 1, 1], [], []>} : vector<8x8xf32>, vector<8x16xf32>, vector<8x16xf32> -> vector<8x16xf32>
    %c0_137 = arith.constant 0 : index
    %c0_138 = arith.constant 0 : index
    %c0_139 = arith.constant 0 : index
    %225 = vector.load %arg28[%c0_137, %c0_138, %c0_139] : memref<2x16x32xf32, #tpu.memory_space<vmem>>, vector<1x16x32xf32>
    %226 = vector.shape_cast %225 : vector<1x16x32xf32> to vector<16x32xf32>
    %cst_140 = arith.constant dense<0.000000e+00> : vector<8x32xf32>
    %227 = tpu.matmul %224, %226, %cst_140 {dimension_numbers = #tpu.dot_dimension_numbers<[1], [0], [0], [1], [0, 0, 1, 1], [], []>} : vector<8x16xf32>, vector<16x32xf32>, vector<8x32xf32> -> vector<8x32xf32>
    %228 = arith.addf %201, %227 : vector<8x32xf32>
    %c1_141 = arith.constant 1 : index
    %c0_142 = arith.constant 0 : index
    %c0_143 = arith.constant 0 : index
    %229 = vector.load %arg25[%c1_141, %c0_142, %c0_143] : memref<2x32x16xf32, #tpu.memory_space<vmem>>, vector<1x32x16xf32>
    %230 = vector.shape_cast %229 : vector<1x32x16xf32> to vector<32x16xf32>
    %cst_144 = arith.constant dense<0.000000e+00> : vector<8x16xf32>
    %231 = tpu.matmul %200, %230, %cst_144 {dimension_numbers = #tpu.dot_dimension_numbers<[1], [0], [0], [1], [0, 0, 1, 1], [], []>} : vector<8x32xf32>, vector<32x16xf32>, vector<8x16xf32> -> vector<8x16xf32>
    %c1_145 = arith.constant 1 : index
    %c0_146 = arith.constant 0 : index
    %c0_147 = arith.constant 0 : index
    %232 = vector.load %arg26[%c1_145, %c0_146, %c0_147] : memref<2x32x16xf32, #tpu.memory_space<vmem>>, vector<1x32x16xf32>
    %233 = vector.shape_cast %232 : vector<1x32x16xf32> to vector<32x16xf32>
    %cst_148 = arith.constant dense<0.000000e+00> : vector<8x16xf32>
    %234 = tpu.matmul %200, %233, %cst_148 {dimension_numbers = #tpu.dot_dimension_numbers<[1], [0], [0], [1], [0, 0, 1, 1], [], []>} : vector<8x32xf32>, vector<32x16xf32>, vector<8x16xf32> -> vector<8x16xf32>
    %c1_149 = arith.constant 1 : index
    %c0_150 = arith.constant 0 : index
    %c0_151 = arith.constant 0 : index
    %235 = vector.load %arg27[%c1_149, %c0_150, %c0_151] : memref<2x32x16xf32, #tpu.memory_space<vmem>>, vector<1x32x16xf32>
    %236 = vector.shape_cast %235 : vector<1x32x16xf32> to vector<32x16xf32>
    %cst_152 = arith.constant dense<0.000000e+00> : vector<8x16xf32>
    %237 = tpu.matmul %200, %236, %cst_152 {dimension_numbers = #tpu.dot_dimension_numbers<[1], [0], [0], [1], [0, 0, 1, 1], [], []>} : vector<8x32xf32>, vector<32x16xf32>, vector<8x16xf32> -> vector<8x16xf32>
    %cst_153 = arith.constant dense<0.000000e+00> : vector<8x8xf32>
    %238 = tpu.matmul %231, %234, %cst_153 {dimension_numbers = #tpu.dot_dimension_numbers<[1], [1], [0], [0], [0, 0, 1, 0], [], []>} : vector<8x16xf32>, vector<8x16xf32>, vector<8x8xf32> -> vector<8x8xf32>
    %cst_154 = arith.constant 2.500000e-01 : f32
    %239 = vector.broadcast %cst_154 : f32 to vector<8x8xf32>
    %240 = arith.mulf %238, %239 : vector<8x8xf32>
    %241 = arith.addf %240, %176 : vector<8x8xf32>
    %cst_155 = arith.constant dense<0xFF800000> : vector<8xf32>
    %242 = vector.multi_reduction <maximumf>, %241, %cst_155 [1] : vector<8x8xf32> to vector<8xf32>
    %243 = vector.shape_cast %242 : vector<8xf32> to vector<8x1xf32>
    %244 = vector.broadcast %243 : vector<8x1xf32> to vector<8x8xf32>
    %245 = arith.subf %241, %244 : vector<8x8xf32>
    %246 = math.exp %245 : vector<8x8xf32>
    %cst_156 = arith.constant dense<0.000000e+00> : vector<8xf32>
    %247 = vector.multi_reduction <add>, %246, %cst_156 [1] : vector<8x8xf32> to vector<8xf32>
    %248 = vector.shape_cast %247 : vector<8xf32> to vector<8x1xf32>
    %249 = vector.broadcast %248 : vector<8x1xf32> to vector<8x8xf32>
    %250 = arith.divf %246, %249 : vector<8x8xf32>
    %cst_157 = arith.constant dense<0.000000e+00> : vector<8x16xf32>
    %251 = tpu.matmul %250, %237, %cst_157 {dimension_numbers = #tpu.dot_dimension_numbers<[1], [0], [0], [1], [0, 0, 1, 1], [], []>} : vector<8x8xf32>, vector<8x16xf32>, vector<8x16xf32> -> vector<8x16xf32>
    %c1_158 = arith.constant 1 : index
    %c0_159 = arith.constant 0 : index
    %c0_160 = arith.constant 0 : index
    %252 = vector.load %arg28[%c1_158, %c0_159, %c0_160] : memref<2x16x32xf32, #tpu.memory_space<vmem>>, vector<1x16x32xf32>
    %253 = vector.shape_cast %252 : vector<1x16x32xf32> to vector<16x32xf32>
    %cst_161 = arith.constant dense<0.000000e+00> : vector<8x32xf32>
    %254 = tpu.matmul %251, %253, %cst_161 {dimension_numbers = #tpu.dot_dimension_numbers<[1], [0], [0], [1], [0, 0, 1, 1], [], []>} : vector<8x16xf32>, vector<16x32xf32>, vector<8x32xf32> -> vector<8x32xf32>
    %255 = arith.addf %228, %254 : vector<8x32xf32>
    %256 = arith.addf %175, %255 : vector<8x32xf32>
    %c0_162 = arith.constant 0 : index
    %c0_163 = arith.constant 0 : index
    %257 = vector.load %arg29[%c0_162, %c0_163] : memref<1x32xf32, #tpu.memory_space<vmem>>, vector<1x32xf32>
    %258 = vector.broadcast %257 : vector<1x32xf32> to vector<8x32xf32>
    %259 = arith.addf %256, %258 : vector<8x32xf32>
    %c0_164 = arith.constant 0 : index
    %c0_165 = arith.constant 0 : index
    %260 = vector.load %arg30[%c0_164, %c0_165] : memref<1x32xf32, #tpu.memory_space<vmem>>, vector<1x32xf32>
    %c0_166 = arith.constant 0 : index
    %c0_167 = arith.constant 0 : index
    %261 = vector.load %arg31[%c0_166, %c0_167] : memref<1x32xf32, #tpu.memory_space<vmem>>, vector<1x32xf32>
    %cst_168 = arith.constant dense<0.000000e+00> : vector<8xf32>
    %262 = vector.multi_reduction <add>, %259, %cst_168 [1] : vector<8x32xf32> to vector<8xf32>
    %263 = vector.shape_cast %262 : vector<8xf32> to vector<8x1xf32>
    %cst_169 = arith.constant 3.200000e+01 : f32
    %264 = vector.broadcast %cst_169 : f32 to vector<8x1xf32>
    %265 = arith.divf %263, %264 : vector<8x1xf32>
    %266 = vector.broadcast %265 : vector<8x1xf32> to vector<8x32xf32>
    %267 = arith.subf %259, %266 : vector<8x32xf32>
    %268 = arith.mulf %267, %267 : vector<8x32xf32>
    %cst_170 = arith.constant dense<0.000000e+00> : vector<8xf32>
    %269 = vector.multi_reduction <add>, %268, %cst_170 [1] : vector<8x32xf32> to vector<8xf32>
    %270 = vector.shape_cast %269 : vector<8xf32> to vector<8x1xf32>
    %cst_171 = arith.constant 3.200000e+01 : f32
    %271 = vector.broadcast %cst_171 : f32 to vector<8x1xf32>
    %272 = arith.divf %270, %271 : vector<8x1xf32>
    %273 = vector.broadcast %265 : vector<8x1xf32> to vector<8x32xf32>
    %274 = arith.subf %259, %273 : vector<8x32xf32>
    %cst_172 = arith.constant 9.99999974E-6 : f32
    %275 = vector.broadcast %cst_172 : f32 to vector<8x1xf32>
    %276 = arith.addf %272, %275 : vector<8x1xf32>
    %277 = math.rsqrt %276 : vector<8x1xf32>
    %278 = vector.broadcast %277 : vector<8x1xf32> to vector<8x32xf32>
    %279 = arith.mulf %274, %278 : vector<8x32xf32>
    %280 = vector.broadcast %260 : vector<1x32xf32> to vector<8x32xf32>
    %281 = arith.mulf %279, %280 : vector<8x32xf32>
    %282 = vector.broadcast %261 : vector<1x32xf32> to vector<8x32xf32>
    %283 = arith.addf %281, %282 : vector<8x32xf32>
    %c0_173 = arith.constant 0 : index
    %c0_174 = arith.constant 0 : index
    %284 = vector.load %arg32[%c0_173, %c0_174] : memref<32x64xf32, #tpu.memory_space<vmem>>, vector<32x64xf32>
    %cst_175 = arith.constant dense<0.000000e+00> : vector<8x64xf32>
    %285 = tpu.matmul %283, %284, %cst_175 {dimension_numbers = #tpu.dot_dimension_numbers<[1], [0], [0], [1], [0, 0, 1, 1], [], []>} : vector<8x32xf32>, vector<32x64xf32>, vector<8x64xf32> -> vector<8x64xf32>
    %c0_176 = arith.constant 0 : index
    %c0_177 = arith.constant 0 : index
    %286 = vector.load %arg33[%c0_176, %c0_177] : memref<1x64xf32, #tpu.memory_space<vmem>>, vector<1x64xf32>
    %287 = vector.broadcast %286 : vector<1x64xf32> to vector<8x64xf32>
    %288 = arith.addf %285, %287 : vector<8x64xf32>
    %cst_178 = arith.constant 5.000000e-01 : f32
    %289 = vector.broadcast %cst_178 : f32 to vector<8x64xf32>
    %290 = arith.mulf %289, %288 : vector<8x64xf32>
    %cst_179 = arith.constant 4.471500e-02 : f32
    %291 = vector.broadcast %cst_179 : f32 to vector<8x64xf32>
    %292 = arith.mulf %291, %288 : vector<8x64xf32>
    %293 = arith.mulf %292, %288 : vector<8x64xf32>
    %294 = arith.mulf %293, %288 : vector<8x64xf32>
    %295 = arith.addf %288, %294 : vector<8x64xf32>
    %cst_180 = arith.constant 0.797884583 : f32
    %296 = vector.broadcast %cst_180 : f32 to vector<8x64xf32>
    %297 = arith.mulf %296, %295 : vector<8x64xf32>
    %298 = math.tanh %297 : vector<8x64xf32>
    %cst_181 = arith.constant 1.000000e+00 : f32
    %299 = vector.broadcast %cst_181 : f32 to vector<8x64xf32>
    %300 = arith.addf %299, %298 : vector<8x64xf32>
    %301 = arith.mulf %290, %300 : vector<8x64xf32>
    %c0_182 = arith.constant 0 : index
    %c0_183 = arith.constant 0 : index
    %302 = vector.load %arg34[%c0_182, %c0_183] : memref<64x32xf32, #tpu.memory_space<vmem>>, vector<64x32xf32>
    %cst_184 = arith.constant dense<0.000000e+00> : vector<8x32xf32>
    %303 = tpu.matmul %301, %302, %cst_184 {dimension_numbers = #tpu.dot_dimension_numbers<[1], [0], [0], [1], [0, 0, 1, 1], [], []>} : vector<8x64xf32>, vector<64x32xf32>, vector<8x32xf32> -> vector<8x32xf32>
    %304 = arith.addf %259, %303 : vector<8x32xf32>
    %c0_185 = arith.constant 0 : index
    %c0_186 = arith.constant 0 : index
    %305 = vector.load %arg35[%c0_185, %c0_186] : memref<1x32xf32, #tpu.memory_space<vmem>>, vector<1x32xf32>
    %306 = vector.broadcast %305 : vector<1x32xf32> to vector<8x32xf32>
    %307 = arith.addf %304, %306 : vector<8x32xf32>
    %c0_187 = arith.constant 0 : index
    %c0_188 = arith.constant 0 : index
    %308 = vector.load %arg36[%c0_187, %c0_188] : memref<1x32xf32, #tpu.memory_space<vmem>>, vector<1x32xf32>
    %c0_189 = arith.constant 0 : index
    %c0_190 = arith.constant 0 : index
    %309 = vector.load %arg37[%c0_189, %c0_190] : memref<1x32xf32, #tpu.memory_space<vmem>>, vector<1x32xf32>
    %cst_191 = arith.constant dense<0.000000e+00> : vector<8xf32>
    %310 = vector.multi_reduction <add>, %307, %cst_191 [1] : vector<8x32xf32> to vector<8xf32>
    %311 = vector.shape_cast %310 : vector<8xf32> to vector<8x1xf32>
    %cst_192 = arith.constant 3.200000e+01 : f32
    %312 = vector.broadcast %cst_192 : f32 to vector<8x1xf32>
    %313 = arith.divf %311, %312 : vector<8x1xf32>
    %314 = vector.broadcast %313 : vector<8x1xf32> to vector<8x32xf32>
    %315 = arith.subf %307, %314 : vector<8x32xf32>
    %316 = arith.mulf %315, %315 : vector<8x32xf32>
    %cst_193 = arith.constant dense<0.000000e+00> : vector<8xf32>
    %317 = vector.multi_reduction <add>, %316, %cst_193 [1] : vector<8x32xf32> to vector<8xf32>
    %318 = vector.shape_cast %317 : vector<8xf32> to vector<8x1xf32>
    %cst_194 = arith.constant 3.200000e+01 : f32
    %319 = vector.broadcast %cst_194 : f32 to vector<8x1xf32>
    %320 = arith.divf %318, %319 : vector<8x1xf32>
    %321 = vector.broadcast %313 : vector<8x1xf32> to vector<8x32xf32>
    %322 = arith.subf %307, %321 : vector<8x32xf32>
    %cst_195 = arith.constant 9.99999974E-6 : f32
    %323 = vector.broadcast %cst_195 : f32 to vector<8x1xf32>
    %324 = arith.addf %320, %323 : vector<8x1xf32>
    %325 = math.rsqrt %324 : vector<8x1xf32>
    %326 = vector.broadcast %325 : vector<8x1xf32> to vector<8x32xf32>
    %327 = arith.mulf %322, %326 : vector<8x32xf32>
    %328 = vector.broadcast %308 : vector<1x32xf32> to vector<8x32xf32>
    %329 = arith.mulf %327, %328 : vector<8x32xf32>
    %330 = vector.broadcast %309 : vector<1x32xf32> to vector<8x32xf32>
    %331 = arith.addf %329, %330 : vector<8x32xf32>
    %332 = vector.extract_strided_slice %331 {offsets = [4, 0], sizes = [1, 32], strides = [1, 1]} : vector<8x32xf32> to vector<1x32xf32>
    %c0_196 = arith.constant 0 : index
    %c0_197 = arith.constant 0 : index
    %c0_198 = arith.constant 0 : index
    %333 = vector.load %arg38[%c0_196, %c0_197, %c0_198] : memref<1x1x32xf32, #tpu.memory_space<vmem>>, vector<1x1x32xf32>
    %334 = vector.shape_cast %333 : vector<1x1x32xf32> to vector<1x32xf32>
    %335 = vector.shape_cast %332 : vector<1x32xf32> to vector<1x1x32xf32>
    tpu.vector_store %arg38[%c0_196, %c0_197, %c0_198], %335 {strides = array<i32>} : memref<1x1x32xf32, #tpu.memory_space<vmem>>, vector<1x1x32xf32>,
    return
  }
  func.func @transform_0(%arg0: i32) -> (i32, i32, i32) {
    %c0_i32 = arith.constant 0 : i32
    %c0_i32_0 = arith.constant 0 : i32
    %c0_i32_1 = arith.constant 0 : i32
    return %arg0, %c0_i32, %c0_i32_0 : i32, i32, i32
  }
  func.func @transform_1(%arg0: i32) -> (i32, i32) {
    %c0_i32 = arith.constant 0 : i32
    %c0_i32_0 = arith.constant 0 : i32
    %c0_i32_1 = arith.constant 0 : i32
    return %c0_i32, %c0_i32_0 : i32, i32
  }
  func.func @transform_2(%arg0: i32) -> (i32, i32) {
    %c0_i32 = arith.constant 0 : i32
    %c0_i32_0 = arith.constant 0 : i32
    %c0_i32_1 = arith.constant 0 : i32
    return %c0_i32, %c0_i32_0 : i32, i32
  }
  func.func @transform_3(%arg0: i32) -> (i32, i32) {
    %c0_i32 = arith.constant 0 : i32
    %c0_i32_0 = arith.constant 0 : i32
    %c0_i32_1 = arith.constant 0 : i32
    return %c0_i32, %c0_i32_0 : i32, i32
  }
  func.func @transform_4(%arg0: i32) -> (i32, i32) {
    %c0_i32 = arith.constant 0 : i32
    %c0_i32_0 = arith.constant 0 : i32
    %c0_i32_1 = arith.constant 0 : i32
    return %c0_i32, %c0_i32_0 : i32, i32
  }
  func.func @transform_5(%arg0: i32) -> (i32, i32) {
    %c0_i32 = arith.constant 0 : i32
    %c0_i32_0 = arith.constant 0 : i32
    %c0_i32_1 = arith.constant 0 : i32
    return %c0_i32, %c0_i32_0 : i32, i32
  }
  func.func @transform_6(%arg0: i32) -> (i32, i32) {
    %c0_i32 = arith.constant 0 : i32
    %c0_i32_0 = arith.constant 0 : i32
    %c0_i32_1 = arith.constant 0 : i32
    return %c0_i32, %c0_i32_0 : i32, i32
  }
  func.func @transform_7(%arg0: i32) -> (i32, i32) {
    %c0_i32 = arith.constant 0 : i32
    %c0_i32_0 = arith.constant 0 : i32
    %c0_i32_1 = arith.constant 0 : i32
    return %c0_i32, %c0_i32_0 : i32, i32
  }
  func.func @transform_8(%arg0: i32) -> (i32, i32) {
    %c0_i32 = arith.constant 0 : i32
    %c0_i32_0 = arith.constant 0 : i32
    %c0_i32_1 = arith.constant 0 : i32
    return %c0_i32, %c0_i32_0 : i32, i32
  }
  func.func @transform_9(%arg0: i32) -> (i32, i32, i32) {
    %c0_i32 = arith.constant 0 : i32
    %c0_i32_0 = arith.constant 0 : i32
    %c0_i32_1 = arith.constant 0 : i32
    %c0_i32_2 = arith.constant 0 : i32
    return %c0_i32, %c0_i32_0, %c0_i32_1 : i32, i32, i32
  }
  func.func @transform_10(%arg0: i32) -> (i32, i32, i32) {
    %c0_i32 = arith.constant 0 : i32
    %c0_i32_0 = arith.constant 0 : i32
    %c0_i32_1 = arith.constant 0 : i32
    %c0_i32_2 = arith.constant 0 : i32
    return %c0_i32, %c0_i32_0, %c0_i32_1 : i32, i32, i32
  }
  func.func @transform_11(%arg0: i32) -> (i32, i32, i32) {
    %c0_i32 = arith.constant 0 : i32
    %c0_i32_0 = arith.constant 0 : i32
    %c0_i32_1 = arith.constant 0 : i32
    %c0_i32_2 = arith.constant 0 : i32
    return %c0_i32, %c0_i32_0, %c0_i32_1 : i32, i32, i32
  }
  func.func @transform_12(%arg0: i32) -> (i32, i32, i32) {
    %c0_i32 = arith.constant 0 : i32
    %c0_i32_0 = arith.constant 0 : i32
    %c0_i32_1 = arith.constant 0 : i32
    %c0_i32_2 = arith.constant 0 : i32
    return %c0_i32, %c0_i32_0, %c0_i32_1 : i32, i32, i32
  }
  func.func @transform_13(%arg0: i32) -> (i32, i32) {
    %c0_i32 = arith.constant 0 : i32
    %c0_i32_0 = arith.constant 0 : i32
    %c0_i32_1 = arith.constant 0 : i32
    return %c0_i32, %c0_i32_0 : i32, i32
  }
  func.func @transform_14(%arg0: i32) -> (i32, i32) {
    %c0_i32 = arith.constant 0 : i32
    %c0_i32_0 = arith.constant 0 : i32
    %c0_i32_1 = arith.constant 0 : i32
    return %c0_i32, %c0_i32_0 : i32, i32
  }
  func.func @transform_15(%arg0: i32) -> (i32, i32) {
    %c0_i32 = arith.constant 0 : i32
    %c0_i32_0 = arith.constant 0 : i32
    %c0_i32_1 = arith.constant 0 : i32
    return %c0_i32, %c0_i32_0 : i32, i32
  }
  func.func @transform_16(%arg0: i32) -> (i32, i32) {
    %c0_i32 = arith.constant 0 : i32
    %c0_i32_0 = arith.constant 0 : i32
    %c0_i32_1 = arith.constant 0 : i32
    return %c0_i32, %c0_i32_0 : i32, i32
  }
  func.func @transform_17(%arg0: i32) -> (i32, i32) {
    %c0_i32 = arith.constant 0 : i32
    %c0_i32_0 = arith.constant 0 : i32
    %c0_i32_1 = arith.constant 0 : i32
    return %c0_i32, %c0_i32_0 : i32, i32
  }
  func.func @transform_18(%arg0: i32) -> (i32, i32) {
    %c0_i32 = arith.constant 0 : i32
    %c0_i32_0 = arith.constant 0 : i32
    %c0_i32_1 = arith.constant 0 : i32
    return %c0_i32, %c0_i32_0 : i32, i32
  }
  func.func @transform_19(%arg0: i32) -> (i32, i32) {
    %c0_i32 = arith.constant 0 : i32
    %c0_i32_0 = arith.constant 0 : i32
    %c0_i32_1 = arith.constant 0 : i32
    return %c0_i32, %c0_i32_0 : i32, i32
  }
  func.func @transform_20(%arg0: i32) -> (i32, i32) {
    %c0_i32 = arith.constant 0 : i32
    %c0_i32_0 = arith.constant 0 : i32
    %c0_i32_1 = arith.constant 0 : i32
    return %c0_i32, %c0_i32_0 : i32, i32
  }
  func.func @transform_21(%arg0: i32) -> (i32, i32) {
    %c0_i32 = arith.constant 0 : i32
    %c0_i32_0 = arith.constant 0 : i32
    %c0_i32_1 = arith.constant 0 : i32
    return %c0_i32, %c0_i32_0 : i32, i32
  }
  func.func @transform_22(%arg0: i32) -> (i32, i32) {
    %c0_i32 = arith.constant 0 : i32
    %c0_i32_0 = arith.constant 0 : i32
    %c0_i32_1 = arith.constant 0 : i32
    return %c0_i32, %c0_i32_0 : i32, i32
  }
  func.func @transform_23(%arg0: i32) -> (i32, i32) {
    %c0_i32 = arith.constant 0 : i32
    %c0_i32_0 = arith.constant 0 : i32
    %c0_i32_1 = arith.constant 0 : i32
    return %c0_i32, %c0_i32_0 : i32, i32
  }
  func.func @transform_24(%arg0: i32) -> (i32, i32, i32) {
    %c0_i32 = arith.constant 0 : i32
    %c0_i32_0 = arith.constant 0 : i32
    %c0_i32_1 = arith.constant 0 : i32
    %c0_i32_2 = arith.constant 0 : i32
    return %c0_i32, %c0_i32_0, %c0_i32_1 : i32, i32, i32
  }
  func.func @transform_25(%arg0: i32) -> (i32, i32, i32) {
    %c0_i32 = arith.constant 0 : i32
    %c0_i32_0 = arith.constant 0 : i32
    %c0_i32_1 = arith.constant 0 : i32
    %c0_i32_2 = arith.constant 0 : i32
    return %c0_i32, %c0_i32_0, %c0_i32_1 : i32, i32, i32
  }
  func.func @transform_26(%arg0: i32) -> (i32, i32, i32) {
    %c0_i32 = arith.constant 0 : i32
    %c0_i32_0 = arith.constant 0 : i32
    %c0_i32_1 = arith.constant 0 : i32
    %c0_i32_2 = arith.constant 0 : i32
    return %c0_i32, %c0_i32_0, %c0_i32_1 : i32, i32, i32
  }
  func.func @transform_27(%arg0: i32) -> (i32, i32, i32) {
    %c0_i32 = arith.constant 0 : i32
    %c0_i32_0 = arith.constant 0 : i32
    %c0_i32_1 = arith.constant 0 : i32
    %c0_i32_2 = arith.constant 0 : i32
    return %c0_i32, %c0_i32_0, %c0_i32_1 : i32, i32, i32
  }
  func.func @transform_28(%arg0: i32) -> (i32, i32) {
    %c0_i32 = arith.constant 0 : i32
    %c0_i32_0 = arith.constant 0 : i32
    %c0_i32_1 = arith.constant 0 : i32
    return %c0_i32, %c0_i32_0 : i32, i32
  }
  func.func @transform_29(%arg0: i32) -> (i32, i32) {
    %c0_i32 = arith.constant 0 : i32
    %c0_i32_0 = arith.constant 0 : i32
    %c0_i32_1 = arith.constant 0 : i32
    return %c0_i32, %c0_i32_0 : i32, i32
  }
  func.func @transform_30(%arg0: i32) -> (i32, i32) {
    %c0_i32 = arith.constant 0 : i32
    %c0_i32_0 = arith.constant 0 : i32
    %c0_i32_1 = arith.constant 0 : i32
    return %c0_i32, %c0_i32_0 : i32, i32
  }
  func.func @transform_31(%arg0: i32) -> (i32, i32) {
    %c0_i32 = arith.constant 0 : i32
    %c0_i32_0 = arith.constant 0 : i32
    %c0_i32_1 = arith.constant 0 : i32
    return %c0_i32, %c0_i32_0 : i32, i32
  }
  func.func @transform_32(%arg0: i32) -> (i32, i32) {
    %c0_i32 = arith.constant 0 : i32
    %c0_i32_0 = arith.constant 0 : i32
    %c0_i32_1 = arith.constant 0 : i32
    return %c0_i32, %c0_i32_0 : i32, i32
  }
  func.func @transform_33(%arg0: i32) -> (i32, i32) {
    %c0_i32 = arith.constant 0 : i32
    %c0_i32_0 = arith.constant 0 : i32
    %c0_i32_1 = arith.constant 0 : i32
    return %c0_i32, %c0_i32_0 : i32, i32
  }
  func.func @transform_34(%arg0: i32) -> (i32, i32) {
    %c0_i32 = arith.constant 0 : i32
    %c0_i32_0 = arith.constant 0 : i32
    %c0_i32_1 = arith.constant 0 : i32
    return %c0_i32, %c0_i32_0 : i32, i32
  }
  func.func @transform_35(%arg0: i32) -> (i32, i32) {
    %c0_i32 = arith.constant 0 : i32
    %c0_i32_0 = arith.constant 0 : i32
    %c0_i32_1 = arith.constant 0 : i32
    return %c0_i32, %c0_i32_0 : i32, i32
  }
  func.func @transform_36(%arg0: i32) -> (i32, i32) {
    %c0_i32 = arith.constant 0 : i32
    %c0_i32_0 = arith.constant 0 : i32
    %c0_i32_1 = arith.constant 0 : i32
    return %c0_i32, %c0_i32_0 : i32, i32
  }
  func.func @transform_37(%arg0: i32) -> (i32, i32, i32) {
    %c0_i32 = arith.constant 0 : i32
    %c0_i32_0 = arith.constant 0 : i32
    %c0_i32_1 = arith.constant 0 : i32
    return %arg0, %c0_i32, %c0_i32_0 : i32, i32, i32
  }
}

</mosaic_0001>

<bundles_post_ra>
// kernel: aagcn_vivit_forward.1
= control target key start
LH: loop header
LB: loop body
LE: loop exit
PB: predicated region body
PF: predicated region fallthrough
CT: control target
= control target key end

     0   :  { %s5623_s6 = smov 1   ;;  %s5624_s10 = smov 2   ;;  %s6473_s0 = inlined_call_operand.smem [shape: u32[38], index: -1, kind: input, shape index: {}] }
   0x1   :  { %s5673_s5 = sld [smem:[%s6473_s0]]   ;;  %s5625_s14 = smov 3  }
   0x2   :  { %s5678_s9 = sld [smem:[%s6473_s0 + %s5623_s6]]   ;;  %s5626_s18 = smov 4  }
   0x3   :  { %s5683_s13 = sld [smem:[%s6473_s0 + %s5624_s10]]   ;;  %s5627_s22 = smov 5  }
   0x4   :  { %s5688_s17 = sld [smem:[%s6473_s0 + %s5625_s14]]   ;;  %s5628_s26 = smov 6  }
   0x5   :  { %s5693_s21 = sld [smem:[%s6473_s0 + %s5626_s18]]   ;;  %s5629_s30 = smov 7  }
   0x6   :  { %s5698_s25 = sld [smem:[%s6473_s0 + %s5627_s22]]   ;;  %s5630_s4 = smov 8  }
   0x7   :  { %6487 = sst [smem:[#allocation7_spill]] %s5673_s5  ;;  %s5631_s10 = smov 9  }
   0x8   :  { %6488 = sst [smem:[#allocation8_spill]] %s5678_s9  ;;  %s5632_s15 = smov 10  }
   0x9   :  { %6489 = sst [smem:[#allocation9_spill]] %s5683_s13  ;;  %s5633_s20 = smov 11  }
   0xa   :  { %s5703_s29 = sld [smem:[%s6473_s0 + %s5628_s26]]   ;;  %s5634_s26 = smov 12  }
   0xb   :  { %s5708_s3 = sld [smem:[%s6473_s0 + %s5629_s30]]   ;;  %s5635_s1 = smov 13  }
   0xc   :  { %s5713_s8 = sld [smem:[%s6473_s0 + %s5630_s4]]   ;;  %s5636_s7 = smov 14  }
   0xd   :  { %s5718_s14 = sld [smem:[%s6473_s0 + %s5631_s10]]   ;;  %s5638_s22 = smov 16  }
   0xe   :  { %s5723_s19 = sld [smem:[%s6473_s0 + %s5632_s15]]   ;;  %s5637_s15 = smov 15  }
   0xf   :  { %s5728_s24 = sld [smem:[%s6473_s0 + %s5633_s20]]   ;;  %s5639_s28 = smov 17  }
  0x10   :  { %6490 = sst [smem:[#allocation10_spill]] %s5703_s29 }
  0x11   :  { %6491 = sst [smem:[#allocation11_spill]] %s5708_s3 }
  0x12   :  { %6492 = sst [smem:[#allocation12_spill]] %s5713_s8 }
  0x13   :  { %6493 = sst [smem:[#allocation13_spill]] %s5718_s14 }
  0x14   :  { %s5733_s30 = sld [smem:[%s6473_s0 + %s5634_s26]]  }
  0x15   :  { %s5738_s6 = sld [smem:[%s6473_s0 + %s5635_s1]]  }
  0x16   :  { %s5743_s12 = sld [smem:[%s6473_s0 + %s5636_s7]]   ;;  %s5640_s7 = smov 18  }
  0x17   :  { %s5748_s20 = sld [smem:[%s6473_s0 + %s5637_s15]]   ;;  %s5641_s15 = smov 19  }
  0x18   :  { %s5753_s27 = sld [smem:[%s6473_s0 + %s5638_s22]]   ;;  %s5642_s22 = smov 20  }
  0x19   :  { %s5758_s4 = sld [smem:[%s6473_s0 + %s5639_s28]]   ;;  %s5643_s28 = smov 21  }
  0x1a   :  { %s5763_s13 = sld [smem:[%s6473_s0 + %s5640_s7]]   ;;  %s5644_s7 = smov 22  }
  0x1b   :  { %6494 = sst [smem:[#allocation14_spill]] %s5738_s6 }
  0x1c   :  { %6495 = sst [smem:[#allocation15_spill]] %s5743_s12 }
  0x1d   :  { %6496 = sst [smem:[#allocation16_spill]] %s5748_s20 }
  0x1e   :  { %s5768_s29 = sld [smem:[%s6473_s0 + %s5641_s15]]   ;;  %s5645_s15 = smov 23  }
  0x1f   :  { %6497 = sst [smem:[#allocation17_spill]] %s5758_s4 }
  0x20   :  { %6498 = sst [smem:[#allocation18_spill]] %s5763_s13 }
  0x21   :  { %s5773_s20 = sld [smem:[%s6473_s0 + %s5642_s22]]   ;;  %s5646_s22 = smov 24  }
  0x22   :  { %s5778_s4 = sld [smem:[%s6473_s0 + %s5643_s28]]   ;;  %s5647_s28 = smov 25  }
  0x23   :  { %s5783_s13 = sld [smem:[%s6473_s0 + %s5644_s7]]   ;;  %s5648_s7 = smov 26  }
  0x24   :  { %6499 = sst [smem:[#allocation19_spill]] %s5768_s29 }
  0x25   :  { %s5788_s29 = sld [smem:[%s6473_s0 + %s5645_s15]]   ;;  %s5649_s15 = smov 27  }
  0x27   :  { %6500 = sst [smem:[#allocation20_spill]] %s5773_s20 }
  0x28   :  { %6501 = sst [smem:[#allocation21_spill]] %s5778_s4 }
  0x29   :  { %6502 = sst [smem:[#allocation22_spill]] %s5783_s13 }
  0x2a   :  { %s5793_s20 = sld [smem:[%s6473_s0 + %s5646_s22]]   ;;  %s5650_s22 = smov 28  }
  0x2b   :  { %6503 = sst [smem:[#allocation23_spill]] %s5788_s29 }
  0x2c   :  { %s5798_s4 = sld [smem:[%s6473_s0 + %s5647_s28]]   ;;  %s5651_s28 = smov 29  }
  0x2d   :  { %s5803_s13 = sld [smem:[%s6473_s0 + %s5648_s7]]   ;;  %s5652_s7 = smov 30  }
  0x2e   :  { %s5808_s29 = sld [smem:[%s6473_s0 + %s5649_s15]]   ;;  %s5653_s15 = smov 31  }
  0x30   :  { %6504 = sst [smem:[#allocation24_spill]] %s5793_s20 }
  0x31   :  { %s5813_s20 = sld [smem:[%s6473_s0 + %s5650_s22]]   ;;  %s5654_s22 = smov 32  }
  0x32   :  { %6505 = sst [smem:[#allocation25_spill]] %s5798_s4 }
  0x33   :  { %6506 = sst [smem:[#allocation26_spill]] %s5803_s13 }
  0x34   :  { %6507 = sst [smem:[#allocation27_spill]] %s5808_s29 }
  0x35   :  { %s5818_s4 = sld [smem:[%s6473_s0 + %s5651_s28]]   ;;  %s5655_s28 = smov 33  }
  0x36   :  { %s5823_s13 = sld [smem:[%s6473_s0 + %s5652_s7]]   ;;  %s5656_s7 = smov 34  }
  0x37   :  { %6508 = sst [smem:[#allocation28_spill]] %s5813_s20 }
  0x38   :  { %s5828_s29 = sld [smem:[%s6473_s0 + %s5653_s15]]   ;;  %s5657_s15 = smov 35  }
  0x39   :  { %s5833_s20 = sld [smem:[%s6473_s0 + %s5654_s22]]   ;;  %s5658_s22 = smov 36  }
  0x3b   :  { %6509 = sst [smem:[#allocation29_spill]] %s5818_s4 }
  0x3c   :  { %6510 = sst [smem:[#allocation30_spill]] %s5823_s13 }
  0x3d   :  { %s5838_s4 = sld [smem:[%s6473_s0 + %s5655_s28]]   ;;  %s5659_s28 = smov 37  }
  0x3e   :  { %6511 = sst [smem:[#allocation31_spill]] %s5828_s29 }
  0x3f   :  { %6512 = sst [smem:[#allocation32_spill]] %s5833_s20 }
  0x40   :  { %s5843_s13 = sld [smem:[%s6473_s0 + %s5656_s7]]  }
  0x41   :  { %s5848_s29 = sld [smem:[%s6473_s0 + %s5657_s15]]  }
  0x42   :  { %s5853_s20 = sld [smem:[%s6473_s0 + %s5658_s22]]  }
  0x43   :  { %6513 = sst [smem:[#allocation33_spill]] %s5838_s4 }
  0x44   :  { %s5858_s4 = sld [smem:[%s6473_s0 + %s5659_s28]]  }
  0x46   :  { %6514 = sst [smem:[#allocation34_spill]] %s5843_s13 }
  0x47   :  { %80 = vsyncpa [#allocation5], 0 }
  0x48   :  { %82 = vsyncpa [#allocation5 + $0x1], 0  ;;  %s5860_s7 = smov 0   ;;  %s5862_s10 = smov 0  }
  0x49   :  { %s5864_s11 = smov 0   ;;  %s5866_s15 = smov 0  }
  0x4a LB: > { %s6515_s14 = sld [smem:[#allocation13_spill]]  ;;  %s6516_s9 = sld [smem:[#allocation8_spill]]  ;;  %s5613_s10 = sphi %s5862_s10, %s6550_s10   ;;  %s5609_s7 = sphi %s5860_s7, %s6549_s7   ;;  %s5621_s15 = sphi %s5866_s15, %s6552_s15   ;;  %s5617_s11 = sphi %s5864_s11, %s6551_s11  }
  0x4b   : > { %s5881_s0 = sadd.s32 4294967295, %s5621_s15   ;;  %s4435_s16 = sadd.s32 4294967294, %s5621_s15  }
  0x4c   : > { %s5885_s18 = sadd.s32 1, %s5621_s15   ;;  %s877_s22 = sadd.s32 1, %s5617_s11 }
  0x4d   : > { %s874_s23 = ssub.s32 %s5621_s15, %s5885_s18  ;;  %p887_p0 = scmp.ne.s32.totalorder %s5617_s11, %s5613_s10 }
  0x4e   : > { %p875_p1 = scmp.eq.s32.totalorder %s874_s23, 0  ;;  %p888_p2 = scmp.eq.s32.totalorder %s5881_s0, 1 }
  0x4f   : > { %p893_p3 = scmp.ne.s32.totalorder %s5613_s10, %s5609_s7  ;;  %p894_p4 = scmp.eq.s32.totalorder %s4435_s16, 1 }
  0x50   : > { %s5896_s26 = scalar_select %p875_p1, %s5617_s11, %s877_s22  }
  0x51   : > { %p5898_p5 = por %p888_p2, %p887_p0  ;;  %p5902_p6 = por %p894_p4, %p893_p3 }
  0x52   : > { %p4438_p7 = scmp.ge.s32.totalorder %s5621_s15, 1  ;;  %p1028_p8 = scmp.lt.s32.totalorder %s5621_s15, 3 }
  0x54   : > { %p1029_p9 = pnand %p4438_p7, %p1028_p8 }
  0x55   : > { %v1152_v0 = vld [vmem:[%s5688_s17 + $0x80] sm:$0xff] (!%p1029_p9)  ;;  %v1153_v1 = vld [vmem:[%s5688_s17 + $0x88] sm:$0xff] (!%p1029_p9)  ;;  %v1154_v11 = vld [vmem:[%s5688_s17 + $0x90] sm:$0xff] (!%p1029_p9)  ;;  %p1119_p10 = scmp.lt.s32.totalorder (!%p1029_p9), %s5881_s0, 1  ;;  %s6519_s5 = sld [smem:[#allocation7_spill]] (!%p1029_p9)  ;;  %vm1374_vm0 = vcmask (!%p1029_p9), 261120  }
  0x56   : > { %1032 = sbr.rel (%p1029_p9) target bundleno = 7057 (0x1b91), region = 168  ;;  %v1136_v2 = vld [vmem:[%s5688_s17] sm:$0xff] (!%p1029_p9)  ;;  %v5152_v3 = vpack.c.bf16 (!%p1029_p9), %v1153_v1, %v1152_v0  ;;  %v1137_v4 = vld [vmem:[%s5688_s17 + $0x8] sm:$0xff] (!%p1029_p9)  ;;  %v1155_v13 = vld [vmem:[%s5688_s17 + $0x98] sm:$0xff] (!%p1029_p9)  ;;  %vm1376_vm1 = vcmask (!%p1029_p9), 257024   ;;  %s6520_s3 = sld [smem:[#allocation11_spill]] (!%p1029_p9) }
  0x57   : > { %v1184_v5 = vld [vmem:[%s5688_s17 + $0x180] sm:$0xff] (!%p1029_p9)  ;;  %v1185_v6 = vld [vmem:[%s5688_s17 + $0x188] sm:$0xff] (!%p1029_p9)  ;;  %v5154_v7 = vpack.c.bf16 (!%p1029_p9), %v1137_v4, %v1136_v2  ;;  %v1138_v14 = vld [vmem:[%s5688_s17 + $0x10] sm:$0xff] (!%p1029_p9)  ;;  %v5156_v16 = vpack.c.bf16 (!%p1029_p9), %v1155_v13, %v1154_v11  ;;  %s6521_s8 = sld [smem:[#allocation12_spill]] (!%p1029_p9)  ;;  %vm1743_vm2 = vcmask (!%p1029_p9), 130048   ;;  %vm1919_vm4 = vcmask (!%p1029_p9), 1043456  }
  0x58   : > { %v5184_v8 = vpack.c.bf16 (!%p1029_p9), %v1185_v6, %v1184_v5  ;;  %v1168_v9 = vld [vmem:[%s5688_s17 + $0x100] sm:$0xff] (!%p1029_p9)  ;;  %v1169_v10 = vld [vmem:[%s5688_s17 + $0x108] sm:$0xff] (!%p1029_p9)  ;;  %5153 = vmatprep.subr.bf16.mxu0 (!%p1029_p9), %v5152_v3  ;;  %v1139_v15 = vld [vmem:[%s5688_s17 + $0x18] sm:$0xff] (!%p1029_p9)  ;;  %vm5660_vm5 = vmmov (!%p1029_p9), 1   ;;  %vm1861_vm7 = vcmask (!%p1029_p9), 228352   ;;  %vm1871_vm8 = vcmask (!%p1029_p9), 224256  }
  0x59   : > { %v5186_v12 = vpack.c.bf16 (!%p1029_p9), %v1169_v10, %v1168_v9  ;;  %5155 = vmatpush3.bf16.msra.mxu0 (!%p1029_p9), %v5154_v7  ;;  %v5158_v17 = vpack.c.bf16 (!%p1029_p9), %v1139_v15, %v1138_v14  ;;  %v1186_v18 = vld [vmem:[%s5688_s17 + $0x190] sm:$0xff] (!%p1029_p9)  ;;  %v1187_v19 = vld [vmem:[%s5688_s17 + $0x198] sm:$0xff] (!%p1029_p9)  ;;  %v1156_v23 = vld [vmem:[%s5688_s17 + $0xa0] sm:$0xff] (!%p1029_p9)  ;;  %s6526_s6 = sld [smem:[#allocation14_spill]] (!%p1029_p9)  ;;  %s6527_s12 = sld [smem:[#allocation15_spill]] (!%p1029_p9)  ;;  %vm2979_vm9 = vcmask (!%p1029_p9), 523264  }
  0x5a   : > { %5185 = vmatprep.subr.bf16.mxu1 (!%p1029_p9), %v5184_v8  ;;  %v1170_v20 = vld [vmem:[%s5688_s17 + $0x110] sm:$0xff] (!%p1029_p9)  ;;  %v5188_v21 = vpack.c.bf16 (!%p1029_p9), %v1187_v19, %v1186_v18  ;;  %v1171_v22 = vld [vmem:[%s5688_s17 + $0x118] sm:$0xff] (!%p1029_p9)  ;;  %v1157_v24 = vld [vmem:[%s5688_s17 + $0xa8] sm:$0xff] (!%p1029_p9)  ;;  %5157 = vmatprep.subr.bf16.mxu0 (!%p1029_p9), %v5156_v16  ;;  %s6528_s23 = sld [smem:[#allocation16_spill]] (!%p1029_p9)  ;;  %vm5662_vm10 = vmmov (!%p1029_p9), 0   ;;  %vm3455_vm11 = vcmask (!%p1029_p9), 64512  }
  0x5b   : > { %5187 = vmatpush3.bf16.msra.mxu1 (!%p1029_p9), %v5186_v12  ;;  %v5190_v25 = vpack.c.bf16 (!%p1029_p9), %v1171_v22, %v1170_v20  ;;  %v5160_v26 = vpack.c.bf16 (!%p1029_p9), %v1157_v24, %v1156_v23  ;;  %v1140_v27 = vld [vmem:[%s5688_s17 + $0x20] sm:$0xff] (!%p1029_p9)  ;;  %v1141_v28 = vld [vmem:[%s5688_s17 + $0x28] sm:$0xff] (!%p1029_p9)  ;;  %v1158_v35 = vld [vmem:[%s5688_s17 + $0xb0] sm:$0xff] (!%p1029_p9)  ;;  %s6548_s13 = sld [smem:[#allocation34_spill]] (!%p1029_p9)  ;;  %vm4328_vm12 = vcmask (!%p1029_p9), 258052  }
  0x5c   : > { %v1188_v29 = vld [vmem:[%s5688_s17 + $0x1a0] sm:$0xff] (!%p1029_p9)  ;;  %5189 = vmatprep.subr.bf16.mxu1 (!%p1029_p9), %v5188_v21  ;;  %v1189_v30 = vld [vmem:[%s5688_s17 + $0x1a8] sm:$0xff] (!%p1029_p9)  ;;  %v5162_v33 = vpack.c.bf16 (!%p1029_p9), %v1141_v28, %v1140_v27  ;;  %v1159_v36 = vld [vmem:[%s5688_s17 + $0xb8] sm:$0xff] (!%p1029_p9) }
  0x5d   : > { %v1172_v31 = vld [vmem:[%s5688_s17 + $0x120] sm:$0xff]  ;;  %v1173_v32 = vld [vmem:[%s5688_s17 + $0x128] sm:$0xff]  ;;  %5159 = vmatpush3.bf16.msra.mxu0 %v5158_v17  ;;  %v5192_v34 = vpack.c.bf16 %v1189_v30, %v1188_v29  ;;  %v1142_v37 = vld [vmem:[%s5688_s17 + $0x30] sm:$0xff]  ;;  %v5164_v39 = vpack.c.bf16 %v1159_v36, %v1158_v35  ;;  %s5945_s2 = scalar_select %p1119_p10, %s5881_s0, 1 }
  0x5e   : > { %5161 = vmatprep.subr.bf16.mxu0 %v5160_v26  ;;  %v5194_v38 = vpack.c.bf16 %v1173_v32, %v1172_v31  ;;  %v1143_v40 = vld [vmem:[%s5688_s17 + $0x38] sm:$0xff]  ;;  %v1190_v41 = vld [vmem:[%s5688_s17 + $0x1b0] sm:$0xff]  ;;  %v1160_v46 = vld [vmem:[%s5688_s17 + $0xc0] sm:$0xff] }
  0x5f   : > { %5191 = vmatpush3.bf16.msra.mxu1 %v5190_v25  ;;  %v1191_v42 = vld [vmem:[%s5688_s17 + $0x1b8] sm:$0xff]  ;;  %v1174_v44 = vld [vmem:[%s5688_s17 + $0x130] sm:$0xff]  ;;  %v1161_v47 = vld [vmem:[%s5688_s17 + $0xc8] sm:$0xff]  ;;  %v5166_v48 = vpack.c.bf16 %v1143_v40, %v1142_v37  ;;  %s5404_s16 = smul.u32 96, %s5945_s2  ;;  %s6529_s2 = sld [smem:[#allocation18_spill]] }
  0x60   : > { %5193 = vmatprep.subr.bf16.mxu1 %v5192_v34  ;;  %v5196_v43 = vpack.c.bf16 %v1191_v42, %v1190_v41  ;;  %v1175_v45 = vld [vmem:[%s5688_s17 + $0x138] sm:$0xff]  ;;  %v1192_v49 = vld [vmem:[%s5688_s17 + $0x1c0] sm:$0xff]  ;;  %v1193_v50 = vld [vmem:[%s5688_s17 + $0x1c8] sm:$0xff]  ;;  %v5168_v52 = vpack.c.bf16 %v1161_v47, %v1160_v46 }
  0x61   : > { %5163 = vmatpush3.bf16.msra.mxu0 %v5162_v33  ;;  %v5198_v51 = vpack.c.bf16 %v1175_v45, %v1174_v44  ;;  %v1144_v53 = vld [vmem:[%s5688_s17 + $0x40] sm:$0xff]  ;;  %v1145_v54 = vld [vmem:[%s5688_s17 + $0x48] sm:$0xff]  ;;  %v5200_v56 = vpack.c.bf16 %v1193_v50, %v1192_v49  ;;  %v1162_v58 = vld [vmem:[%s5688_s17 + $0xd0] sm:$0xff]  ;;  %s5966_s22 = scalar_lea.vmem %s6519_s5, %s5404_s16  ;;  %s6530_s16 = sld [smem:[#allocation17_spill]] }
  0x62   : > { %5165 = vmatprep.subr.bf16.mxu0 %v5164_v39  ;;  %v1176_v55 = vld [vmem:[%s5688_s17 + $0x140] sm:$0xff]  ;;  %v1177_v57 = vld [vmem:[%s5688_s17 + $0x148] sm:$0xff]  ;;  %v1163_v59 = vld [vmem:[%s5688_s17 + $0xd8] sm:$0xff]  ;;  %v5170_v62 = vpack.c.bf16 %v1145_v54, %v1144_v53  ;;  %s6544_s5 = sld [smem:[#allocation29_spill]] }
  0x63   : > { %5195 = vmatpush3.bf16.msra.mxu1 %v5194_v38  ;;  %v1194_v60 = vld [vmem:[%s5688_s17 + $0x1d0] sm:$0xff]  ;;  %v1195_v61 = vld [vmem:[%s5688_s17 + $0x1d8] sm:$0xff]  ;;  %v5202_v63 = vpack.c.bf16 %v1177_v57, %v1176_v55  ;;  %v5172_v0 = vpack.c.bf16 %v1163_v59, %v1162_v58  ;;  %v1164_v6 = vld [vmem:[%s5688_s17 + $0xe0] sm:$0xff] }
  0x64   : > { %5197 = vmatprep.subr.bf16.mxu1 %v5196_v43  ;;  %v1146_v1 = vld [vmem:[%s5688_s17 + $0x50] sm:$0xff]  ;;  %v1147_v2 = vld [vmem:[%s5688_s17 + $0x58] sm:$0xff]  ;;  %v5204_v4 = vpack.c.bf16 %v1195_v61, %v1194_v60  ;;  %v1165_v7 = vld [vmem:[%s5688_s17 + $0xe8] sm:$0xff] }
  0x65   : > { %5167 = vmatpush3.bf16.msra.mxu0 %v5166_v48  ;;  %v1178_v3 = vld [vmem:[%s5688_s17 + $0x150] sm:$0xff]  ;;  %v1179_v5 = vld [vmem:[%s5688_s17 + $0x158] sm:$0xff]  ;;  %v1196_v8 = vld [vmem:[%s5688_s17 + $0x1e0] sm:$0xff]  ;;  %v5174_v10 = vpack.c.bf16 %v1147_v2, %v1146_v1  ;;  %v5176_v14 = vpack.c.bf16 %v1165_v7, %v1164_v6 }
  0x66   : > { %5169 = vmatprep.subr.bf16.mxu0 %v5168_v52  ;;  %v1197_v9 = vld [vmem:[%s5688_s17 + $0x1e8] sm:$0xff]  ;;  %v1148_v11 = vld [vmem:[%s5688_s17 + $0x60] sm:$0xff]  ;;  %v5206_v13 = vpack.c.bf16 %v1179_v5, %v1178_v3  ;;  %v1166_v19 = vld [vmem:[%s5688_s17 + $0xf0] sm:$0xff] }
  0x67   : > { %5199 = vmatpush3.bf16.msra.mxu1 %v5198_v51  ;;  %v1149_v12 = vld [vmem:[%s5688_s17 + $0x68] sm:$0xff]  ;;  %v1180_v15 = vld [vmem:[%s5688_s17 + $0x160] sm:$0xff]  ;;  %v5208_v18 = vpack.c.bf16 %v1197_v9, %v1196_v8  ;;  %v1167_v20 = vld [vmem:[%s5688_s17 + $0xf8] sm:$0xff] }
  0x68   : > { %5201 = vmatprep.subr.bf16.mxu1 %v5200_v56  ;;  %v1181_v16 = vld [vmem:[%s5688_s17 + $0x168] sm:$0xff]  ;;  %v1127_v21 = vld [vmem:[%s5966_s22 + $0x18] sm:$0xff]  ;;  %v1198_v22 = vld [vmem:[%s5688_s17 + $0x1f0] sm:$0xff]  ;;  %v5178_v24 = vpack.c.bf16 %v1149_v12, %v1148_v11  ;;  %v5180_v26 = vpack.c.bf16 %v1167_v20, %v1166_v19 }
  0x69   : > { %5171 = vmatpush3.bf16.msra.mxu0 %v5170_v62  ;;  %v1125_v17 = vld [vmem:[%s5966_s22 + $0x8] sm:$0xff]  ;;  %v1199_v23 = vld [vmem:[%s5688_s17 + $0x1f8] sm:$0xff]  ;;  %1351 = vmatprep.mubr.f32.mxu1 %v1127_v21  ;;  %v5210_v25 = vpack.c.bf16 %v1181_v16, %v1180_v15  ;;  %v1150_v27 = vld [vmem:[%s5688_s17 + $0x70] sm:$0xff] }
  0x6a   : > { %5173 = vmatprep.subr.bf16.mxu0 %v5172_v0  ;;  %1271 = vmatprep.mubr.f32.mxu0 %v1125_v17  ;;  %v1151_v28 = vld [vmem:[%s5688_s17 + $0x78] sm:$0xff]  ;;  %v5212_v29 = vpack.c.bf16 %v1199_v23, %v1198_v22  ;;  %v1182_v30 = vld [vmem:[%s5688_s17 + $0x170] sm:$0xff]  ;;  %v1124_v34 = vld [vmem:[%s5966_s22] sm:$0xff] }
  0x6b   : > { %5203 = vmatpush3.bf16.msra.mxu1 %v5202_v63  ;;  %v1183_v31 = vld [vmem:[%s5688_s17 + $0x178] sm:$0xff]  ;;  %v5182_v32 = vpack.c.bf16 %v1151_v28, %v1150_v27  ;;  %v1126_v35 = vld [vmem:[%s5966_s22 + $0x10] sm:$0xff]  ;;  %v1129_v36 = vld [vmem:[%s5966_s22 + $0x28] sm:$0xff] }
  0x6c   : > { %5205 = vmatprep.subr.bf16.mxu1 %v5204_v4  ;;  %v5214_v33 = vpack.c.bf16 %v1183_v31, %v1182_v30  ;;  %v1131_v37 = vld [vmem:[%s5966_s22 + $0x38] sm:$0xff]  ;;  %v1128_v38 = vld [vmem:[%s5966_s22 + $0x20] sm:$0xff]  ;;  %v1130_v39 = vld [vmem:[%s5966_s22 + $0x30] sm:$0xff] }
  0x6d   : > { %5175 = vmatpush3.bf16.msra.mxu0 %v5174_v10  ;;  %v1133_v40 = vld [vmem:[%s5966_s22 + $0x48] sm:$0xf]  ;;  %v1135_v41 = vld [vmem:[%s5966_s22 + $0x58] sm:$0xf]  ;;  %v1132_v42 = vld [vmem:[%s5966_s22 + $0x40] sm:$0xf] }
  0x6e   : > { %5177 = vmatprep.subr.bf16.mxu0 %v5176_v14  ;;  %v1134_v43 = vld [vmem:[%s5966_s22 + $0x50] sm:$0xf]  ;;  %v4441_v44 = vld [vmem:[%s5698_s25] ss:$0 sm:$0xff]  ;;  %vm6093_vm3 = vmpackc.low %vm1743_vm2, %vm1743_vm2  ;;  %s6531_s22 = sld [smem:[#allocation19_spill]] }
  0x6f   : > { %5207 = vmatpush3.bf16.msra.mxu1 %v5206_v13  ;;  %1375 = vst.msk [vmem:[#allocation2 + $0x10] sm:$0xff] %vm1374_vm0, %v4441_v44  ;;  %v4440_v46 = vld [vmem:[%s5693_s21] ss:$0 sm:$0xff]  ;;  %vm6110_vm6 = vmpackc.low %vm1919_vm4, %vm5660_vm5 }
  0x70   : > { %5209 = vmatprep.subr.bf16.mxu1 %v5208_v18  ;;  %1377 = vst.msk [vmem:[#allocation2 + $0x18] sm:$0xf] %vm1376_vm1, %v4441_v44  ;;  %v1467_v44 = vld [vmem:[%s6515_s14 + $0x18] sm:$0xff] }
  0x71   : > { %5179 = vmatpush3.bf16.msra.mxu0 %v5178_v24 }
  0x72   : > { %5181 = vmatprep.subr.bf16.mxu0 %v5180_v26 }
  0x73   : > { %5211 = vmatpush3.bf16.msra.mxu1 %v5210_v25 }
  0x74   : > { %5213 = vmatprep.subr.bf16.mxu1 %v5212_v29 }
  0x75   : > { %5183 = vmatpush3.bf16.msra.mxu0 %v5182_v32 }
  0x77   : > { %5215 = vmatpush3.bf16.msra.mxu1 %v5214_v33  ;;  %v6011_v11 = vld [vmem:[#allocation2 + $0x18] sm:$0xf] }
  0x78   : > { %1272 = vmatmul.mubr.f32.vlgmr.msra.gmra.mrb[0].mxu0 %v1124_v34  ;;  %v1400_v13 = vsel %vm1376_vm1, %v6011_v11, 0.0  ;;  %v1565_v34 = vld [vmem:[%s5723_s19] sm:$0xff] }
  0x79   : > { %1276 = vmatprep.mubr.f32.mxu0 %v1129_v36  ;;  %v1464_v36 = vld [vmem:[%s6515_s14] sm:$0xff] }
  0x7a   : > { %1352 = vmatmul.mubr.f32.vlgmr.msra.gmra.mrb[0].mxu1 %v1126_v35  ;;  %v1566_v35 = vld [vmem:[%s5723_s19 + $0x8] sm:$0xff] }
  0x7b   : > { %1356 = vmatprep.mubr.f32.mxu1 %v1131_v37  ;;  %v5224_v37 = vpack.c.bf16 %v1566_v35, %v1565_v34 }
  0x7c   : > { %1277 = vmatmul.mubr.f32.gmra.mrb[2].mxu0 %v1128_v38  ;;  %v1465_v38 = vld [vmem:[%s6515_s14 + $0x8] sm:$0xff] }
  0x7d   : > { %1281 = vmatprep.mubr.f32.mxu0 %v1133_v40  ;;  %5225 = vmatprep.subr.bf16.mxu1 %v5224_v37  ;;  %v1567_v40 = vld [vmem:[%s5723_s19 + $0x10] sm:$0xff] }
  0x7e   : > { %1357 = vmatmul.mubr.f32.gmra.mrb[2].mxu1 %v1130_v39  ;;  %v5216_v39 = vpack.c.bf16 %v1465_v38, %v1464_v36 }
  0x7f   : > { %1361 = vmatprep.mubr.f32.mxu1 %v1135_v41  ;;  %5227 = vmatpush3.bf16.msra.mxu1 %v5224_v37  ;;  %v1568_v41 = vld [vmem:[%s5723_s19 + $0x18] sm:$0xff] }
  0x80   : > { %1282 = vmatmul.mubr.f32.gmra.mrb[4].mxu0 %v1132_v42  ;;  %5217 = vmatprep.subr.bf16.mxu0 %v5216_v39  ;;  %v1466_v42 = vld [vmem:[%s6515_s14 + $0x10] sm:$0xff] }
  0x81   : > { %5219 = vmatpush3.bf16.msra.mxu0 %v5216_v39 }
  0x82   : > { %1362 = vmatmul.mubr.f32.gmra.mrb[4].mxu1 %v1134_v43  ;;  %v5228_v43 = vpack.c.bf16 %v1568_v41, %v1567_v40  ;;  %v4479_v40 = vld [vmem:[%s5723_s19 + $0x30] sm:$0xff]  ;;  %v4480_v41 = vld [vmem:[%s5723_s19 + $0x38] sm:$0xff] }
  0x84   : > { %5229 = vmatprep.subr.bf16.mxu1 %v5228_v43 }
  0x85   : > { %5231 = vmatpush3.bf16.msra.mxu1 %v5228_v43 }
 0x14b   : > { %v4606_v45 = vpop.f32.mrb[0].mxu0 }
 0x14c   : > { %v4607_v47 = vpop.f32.mrb[1].mxu0 }
 0x14d   : > { %v4647_v48 = vpop.f32.mrb[0].mxu1  ;;  %v4608_v49 = vadd.f32 %v4607_v47, %v4606_v45  ;;  %v5220_v45 = vpack.c.bf16 %v1467_v44, %v1466_v42  ;;  %v1655_v47 = vld [vmem:[%s5728_s24 + $0x8] sm:$0xff] }
 0x14e   : > { %v4648_v50 = vpop.f32.mrb[1].mxu1 }
 0x14f   : > { %v4649_v51 = vadd.f32 %v4648_v50, %v4647_v48  ;;  %v1274_v52 = vadd.f32 %v4608_v49, %v4440_v46  ;;  %v4609_v53 = vpop.f32.mrb[2].mxu0  ;;  %5221 = vmatprep.subr.bf16.mxu0 %v5220_v45 }
 0x150   : > { %v4610_v54 = vpop.f32.mrb[3].mxu0  ;;  %5223 = vmatpush3.bf16.msra.mxu0 %v5220_v45  ;;  %v5274_v45 = vpack.c.bf16 %v4480_v41, %v4479_v40 }
 0x151   : > { %v4650_v55 = vpop.f32.mrb[2].mxu1  ;;  %v1354_v56 = vadd.f32 %v4649_v51, %v1274_v52  ;;  %v4611_v57 = vadd.f32 %v4610_v54, %v4609_v53 }
 0x152   : > { %v4651_v58 = vpop.f32.mrb[3].mxu1 }
 0x153   : > { %v4652_v59 = vadd.f32 %v4651_v58, %v4650_v55  ;;  %1378 = vst.msk [vmem:[#allocation2] sm:$0xff] %vm1374_vm0, %v1354_v56  ;;  %v1279_v60 = vadd.f32 %v4611_v57, %v4440_v46  ;;  %v4612_v61 = vpop.f32.mrb[4].mxu0 }
 0x154   : > { %v4613_v62 = vpop.f32.mrb[5].mxu0 }
 0x155   : > { %v4653_v63 = vpop.f32.mrb[4].mxu1  ;;  %v1359_v0 = vadd.f32 %v4652_v59, %v1279_v60  ;;  %v4614_v1 = vadd.f32 %v4613_v62, %v4612_v61  ;;  %v4442_v61 = vld [vmem:[%s6520_s3] ss:$0 sm:$0xff]  ;;  %s6536_s3 = sld [smem:[#allocation26_spill]] }
 0x156   : > { %v4654_v2 = vpop.f32.mrb[5].mxu1 }
 0x157   : > { %v4655_v3 = vadd.f32 %v4654_v2, %v4653_v63  ;;  %1379 = vst.msk [vmem:[#allocation2 + $0x8] sm:$0xff] %vm1374_vm0, %v1359_v0  ;;  %v1284_v4 = vadd.f32 %v4614_v1, %v4440_v46  ;;  %v1654_v46 = vld [vmem:[%s5728_s24] sm:$0xff] }
 0x158   : > { %v5232_v48 = vpack.c.bf16 %v1655_v47, %v1654_v46  ;;  %v4443_v0 = vld [vmem:[%s6521_s8] ss:$0 sm:$0xff]  ;;  %v6130_v47 = vld [vmem:[%s6516_s9 + $0x8] sm:$0xff] }
 0x159   : > { %v1364_v5 = vadd.f32 %v4655_v3, %v1284_v4 }
 0x15a   : > { %v6000_v6 = vld [vmem:[#allocation2] sm:$0xff]  ;;  %5233 = vmatprep.subr.bf16.mxu0 %v5232_v48 }
 0x15b   : > { %1380 = vst.msk [vmem:[#allocation2 + $0x10] sm:$0xf] %vm1376_vm1, %v1364_v5  ;;  %v1391_v7 = vsel %vm1374_vm0, %v6000_v6, 0.0  ;;  %v1656_v5 = vld [vmem:[%s5728_s24 + $0x10] sm:$0xff] }
 0x15c   : > { %1392 = vadd.xlane.f32.xlu0 %v1391_v7  ;;  %v1657_v7 = vld [vmem:[%s5728_s24 + $0x18] sm:$0xff] }
 0x15e   : > { %v6005_v8 = vld [vmem:[#allocation2 + $0x8] sm:$0xff] }
 0x15f   : > { %v1394_v9 = vsel %vm1374_vm0, %v6005_v8, 0.0 }
 0x160   : > { %1395 = vadd.xlane.f32.xlu0 %v1394_v9 }
 0x162   : > { %v6009_v10 = vld [vmem:[#allocation2 + $0x10] sm:$0xff] }
 0x163   : > { %v1397_v12 = vsel %vm1374_vm0, %v6009_v10, 0.0 }
 0x164   : > { %1398 = vadd.xlane.f32.xlu1 %v1397_v12 }
 0x168   : > { %1401 = vadd.xlane.f32.xlu1 %v1400_v13 }
 0x1e9   : > { %v1393_v14 = vpop.xlane.xlu0 %1392 }
 0x1ea   : > { %v1404_v15 = vmul.f32 0.03125, %v1393_v14 }
 0x1ec   : > { %v6018_v16 = vsub.f32 %v6000_v6, %v1404_v15  ;;  %v5236_v15 = vpack.c.bf16 %v1657_v7, %v1656_v5 }
 0x1ed   : > { %v1396_v17 = vpop.xlane.xlu0 %1395 }
 0x1ee   : > { %v1405_v18 = vmul.f32 0.03125, %v1396_v17  ;;  %v1412_v19 = vmul.f32 %v6018_v16, %v6018_v16 }
 0x1f0   : > { %v6023_v20 = vsub.f32 %v6005_v8, %v1405_v18  ;;  %v1416_v21 = vsel %vm1374_vm0, %v1412_v19, 0.0 }
 0x1f1   : > { %v1399_v22 = vpop.xlane.xlu1 %1398  ;;  %1417 = vadd.xlane.f32.xlu0 %v1416_v21 }
 0x1f2   : > { %v1406_v23 = vmul.f32 0.03125, %v1399_v22  ;;  %v1413_v24 = vmul.f32 %v6023_v20, %v6023_v20 }
 0x1f4   : > { %v6029_v25 = vsub.f32 %v6009_v10, %v1406_v23  ;;  %v1419_v26 = vsel %vm1374_vm0, %v1413_v24, 0.0 }
 0x1f5   : > { %v1402_v27 = vpop.xlane.xlu1 %1401  ;;  %1420 = vadd.xlane.f32.xlu1 %v1419_v26 }
 0x1f6   : > { %v1407_v28 = vmul.f32 0.03125, %v1402_v27  ;;  %v1414_v29 = vmul.f32 %v6029_v25, %v6029_v25 }
 0x1f8   : > { %v6035_v30 = vsub.f32 %v6011_v11, %v1407_v28  ;;  %v1422_v31 = vsel %vm1374_vm0, %v1414_v29, 0.0  ;;  %v4477_v28 = vld [vmem:[%s5723_s19 + $0x20] sm:$0xff]  ;;  %v4478_v29 = vld [vmem:[%s5723_s19 + $0x28] sm:$0xff] }
 0x1f9   : > { %1423 = vadd.xlane.f32.xlu0 %v1422_v31  ;;  %v5270_v35 = vpack.c.bf16 %v4478_v29, %v4477_v28 }
 0x1fa   : > { %v1415_v32 = vmul.f32 %v6035_v30, %v6035_v30 }
 0x1fc   : > { %v1425_v33 = vsel %vm1376_vm1, %v1415_v32, 0.0 }
 0x1fd   : > { %1426 = vadd.xlane.f32.xlu1 %v1425_v33 }
 0x27e   : > { %v1418_v49 = vpop.xlane.xlu0 %1417 }
 0x27f   : > { %v1428_v50 = vmul.f32 0.03125, %v1418_v49 }
 0x281   : > { %v1432_v51 = vadd.f32 1e-05, %v1428_v50  ;;  %v6133_v50 = vld [vmem:[%s6516_s9] sm:$0xff] }
 0x282   : > { %v1421_v52 = vpop.xlane.xlu1 %1420 }
 0x283   : > { %5485 = vrsqrt.f32 %v1432_v51  ;;  %v1429_v53 = vmul.f32 0.03125, %v1421_v52 }
 0x285   : > { %v1433_v54 = vadd.f32 1e-05, %v1429_v53 }
 0x286   : > { %v1424_v55 = vpop.xlane.xlu0 %1423 }
 0x287   : > { %5487 = vrsqrt.f32 %v1433_v54  ;;  %v1430_v56 = vmul.f32 0.03125, %v1424_v55  ;;  %v6138_v55 = vld [vmem:[%s6516_s9 + $0x18] sm:$0xf] }
 0x289   : > { %v1434_v57 = vadd.f32 1e-05, %v1430_v56 }
 0x28a   : > { %v1427_v58 = vpop.xlane.xlu1 %1426 }
 0x28b   : > { %5489 = vrsqrt.f32 %v1434_v57  ;;  %v1431_v59 = vmul.f32 0.03125, %v1427_v58 }
 0x28d   : > { %v5486_v60 = vpop.eup %5485  ;;  %v1435_v62 = vadd.f32 1e-05, %v1431_v59  ;;  %v6142_v59 = vld [vmem:[%s6516_s9 + $0x10] sm:$0xff] }
 0x28e   : > { %v1440_v63 = vmul.f32 %v5486_v60, %v6018_v16 }
 0x28f   : > { %5491 = vrsqrt.f32 %v1435_v62 }
 0x290   : > { %v1450_v1 = vmul.f32 %v4442_v61, %v1440_v63 }
 0x291   : > { %v5488_v2 = vpop.eup %5487 }
 0x292   : > { %v6054_v3 = vadd.f32 %v4443_v0, %v1450_v1  ;;  %v1441_v4 = vmul.f32 %v5488_v2, %v6023_v20 }
 0x294   : > { %v1451_v9 = vmul.f32 %v4442_v61, %v1441_v4  ;;  %4834 = vmatprep.mubr.msk.f32.mxu0 %vm1374_vm0, %v6054_v3  ;;  %4848 = vmatprep.mubr.msk.f32.mxu1 %vm1374_vm0, %v6054_v3 }
 0x295   : > { %v5490_v12 = vpop.eup %5489 }
 0x296   : > { %v6063_v13 = vadd.f32 %v4443_v0, %v1451_v9  ;;  %v1442_v14 = vmul.f32 %v5490_v12, %v6029_v25 }
 0x298   : > { %v1452_v16 = vmul.f32 %v4442_v61, %v1442_v14  ;;  %4835 = vmatmul.mubr.msk.f32.vlgmr.msra.gmra.mrb[6].mxu0 %vm1374_vm0, %v6063_v13  ;;  %4849 = vmatmul.mubr.msk.f32.vlgmr.msra.gmra.mrb[6].mxu1 %vm1374_vm0, %v6063_v13 }
 0x299   : > { %v5492_v17 = vpop.eup %5491  ;;  %5235 = vmatpush3.bf16.msra.mxu0 %v5232_v48 }
 0x29a   : > { %v6070_v18 = vadd.f32 %v4443_v0, %v1452_v16  ;;  %v1443_v19 = vmul.f32 %v5492_v17, %v6035_v30  ;;  %5237 = vmatprep.subr.bf16.mxu0 %v5236_v15 }
 0x29c   : > { %v1453_v20 = vmul.f32 %v4442_v61, %v1443_v19  ;;  %4837 = vmatprep.mubr.msk.f32.mxu0 %vm1374_vm0, %v6070_v18  ;;  %4851 = vmatprep.mubr.msk.f32.mxu1 %vm1374_vm0, %v6070_v18 }
 0x29d   : > { %5239 = vmatpush3.bf16.msra.mxu0 %v5236_v15 }
 0x29e   : > { %v6077_v21 = vadd.f32 %v4443_v0, %v1453_v20 }
 0x2a0   : > { %4838 = vmatmul.mubr.msk.f32.gmra.mrb[8].mxu0 %vm1374_vm0, %v6077_v21  ;;  %4852 = vmatmul.mubr.msk.f32.gmra.mrb[8].mxu1 %vm1374_vm0, %v6077_v21 }
 0x2a1   : > { %4862 = vmatprep.mubr.msk.f32.mxu0 %vm1374_vm0, %v6054_v3 }
 0x2a4   : > { %4863 = vmatmul.mubr.msk.f32.vlgmr.msra.gmra.mrb[10].mxu0 %vm1374_vm0, %v6063_v13 }
 0x2a5   : > { %4865 = vmatprep.mubr.msk.f32.mxu0 %vm1374_vm0, %v6070_v18 }
 0x2a8   : > { %4866 = vmatmul.mubr.msk.f32.gmra.mrb[12].mxu0 %vm1374_vm0, %v6077_v21 }
 0x36b   : > { %v4836_v22 = vpop.f32.mrb[6].mxu0  ;;  %v4850_v23 = vpop.f32.mrb[6].mxu1 }
 0x36c   : > { %v1546_v24 = vpop.f32.mrb[7].mxu0  ;;  %v1635_v25 = vpop.f32.mrb[7].mxu1 }
 0x36d   : > { %v5240_v27 = vpack.c.bf16 %v4850_v23, %v1635_v25  ;;  %4876 = vmatprep.mubr.msk.f32.mxu1 %vm1743_vm2, %v1546_v24 }
 0x36f   : > { %5242 = vmatprep.subr.msk.bf16.mxu1 %vm6093_vm3, %v5240_v27 }
 0x370   : > { %5245 = vmatpush3.bf16.xpose.msk.msra.mxu1 %vm6093_vm3, %v5240_v27 }
 0x373   : > { %v4839_v30 = vpop.f32.mrb[8].mxu0  ;;  %v4853_v31 = vpop.f32.mrb[8].mxu1 }
 0x374   : > { %v1556_v32 = vpop.f32.mrb[9].mxu0  ;;  %v1645_v33 = vpop.f32.mrb[9].mxu1 }
 0x375   : > { %v5246_v34 = vpack.c.bf16 %v4853_v31, %v1645_v33 }
 0x377   : > { %v4864_v36 = vpop.f32.mrb[10].mxu0  ;;  %5248 = vmatprep.subr.msk.bf16.mxu1 %vm6093_vm3, %v5246_v34 }
 0x378   : > { %v1724_v37 = vpop.f32.mrb[11].mxu0  ;;  %5251 = vmatpush3.bf16.xpose.msk.msra.mxu1 %vm6093_vm3, %v5246_v34 }
 0x379   : > { %v5252_v38 = vpack.c.bf16 %v4864_v36, %v1724_v37  ;;  %5271 = vmatprep.subr.bf16.mxu1 %v5270_v35  ;;  %v4469_v36 = vld [vmem:[%s6515_s14 + $0x20] sm:$0xff]  ;;  %v4470_v37 = vld [vmem:[%s6515_s14 + $0x28] sm:$0xff] }
 0x37b   : > { %v4867_v39 = vpop.f32.mrb[12].mxu0  ;;  %5253 = vmatprep.subr.bf16.mxu0 %v5252_v38 }
 0x37c   : > { %v1734_v42 = vpop.f32.mrb[13].mxu0  ;;  %5255 = vmatpush3.bf16.msra.mxu0 %v5252_v38  ;;  %v5262_v38 = vpack.c.bf16 %v4470_v37, %v4469_v36 }
 0x37d   : > { %v5256_v44 = vpack.c.bf16 %v4867_v39, %v1734_v42 }
 0x37f   : > { %4877 = vmatmul.mubr.msk.f32.vlgmr.msra.gmra.mrb[10].mxu1 %vm1743_vm2, %v4836_v22  ;;  %5258 = vmatprep.subr.msk.bf16.mxu0 %vm6110_vm6, %v5256_v44 }
 0x380   : > { %4879 = vmatprep.mubr.msk.f32.mxu1 %vm1743_vm2, %v1556_v32  ;;  %5261 = vmatpush3.bf16.msk.msra.mxu0 %vm6110_vm6, %v5256_v44 }
 0x381   : > { %5273 = vmatpush3.bf16.msra.mxu1 %v5270_v35  ;;  %5263 = vmatprep.subr.bf16.mxu0 %v5262_v38 }
 0x382   : > { %5275 = vmatprep.subr.bf16.mxu1 %v5274_v45 }
 0x383   : > { %4880 = vmatmul.mubr.msk.f32.gmra.mrb[12].mxu1 %vm1743_vm2, %v4839_v30 }
 0x384   : > { %4918 = vmatprep.mubr.msk.f32.mxu1 %vm1374_vm0, %v6054_v3 }
 0x385   : > { %5277 = vmatpush3.bf16.msra.mxu1 %v5274_v45  ;;  %v4471_v45 = vld [vmem:[%s6515_s14 + $0x30] sm:$0xff] }
 0x388   : > { %4919 = vmatmul.mubr.msk.f32.vlgmr.msra.gmra.mrb[14].mxu1 %vm1374_vm0, %v6063_v13 }
 0x389   : > { %4921 = vmatprep.mubr.msk.f32.mxu1 %vm1374_vm0, %v6070_v18 }
 0x38c   : > { %4922 = vmatmul.mubr.msk.f32.gmra.mrb[16].mxu1 %vm1374_vm0, %v6077_v21 }
 0x452   : > { %v4878_v46 = vpop.f32.mrb[10].mxu1 }
 0x453   : > { %v1854_v48 = vmul.f32 0.25, %v4878_v46  ;;  %v1834_v49 = vpop.f32.mrb[11].mxu1  ;;  %v4472_v46 = vld [vmem:[%s6515_s14 + $0x38] sm:$0xff] }
 0x454   : > { %v1853_v51 = vmul.f32 0.25, %v1834_v49 }
 0x455   : > { %v1858_v52 = vadd.f32 %v1854_v48, %v6130_v47 }
 0x456   : > { %v4881_v53 = vpop.f32.mrb[12].mxu1  ;;  %v1857_v54 = vadd.f32 %v1853_v51, %v6133_v50 }
 0x457   : > { %v1856_v56 = vmul.f32 0.25, %v4881_v53  ;;  %v1844_v57 = vpop.f32.mrb[13].mxu1  ;;  %v1865_v58 = vsel %vm1861_vm7, %v1858_v52, -inf }
 0x458   : > { %v1855_v60 = vmul.f32 0.25, %v1844_v57  ;;  %1866 = vmax.xlane.f32.xlu1 %v1865_v58  ;;  %v1862_v61 = vsel %vm1861_vm7, %v1857_v54, -inf }
 0x459   : > { %1863 = vmax.xlane.f32.xlu0 %v1862_v61  ;;  %v1860_v62 = vadd.f32 %v1856_v56, %v6138_v55  ;;  %v4486_v56 = vld [vmem:[%s5728_s24 + $0x28] sm:$0xff] }
 0x45a   : > { %v1859_v63 = vadd.f32 %v1855_v60, %v6142_v59 }
 0x45b   : > { %v4920_v0 = vpop.f32.mrb[14].mxu1  ;;  %v1872_v1 = vsel %vm1871_vm8, %v1860_v62, -inf }
 0x45c   : > { %v2171_v2 = vpop.f32.mrb[15].mxu1  ;;  %1873 = vmax.xlane.f32.xlu1 %v1872_v1  ;;  %v1868_v4 = vsel %vm1861_vm7, %v1859_v63, -inf }
 0x45d   : > { %v5286_v5 = vpack.c.bf16 %v4920_v0, %v2171_v2  ;;  %1869 = vmax.xlane.f32.xlu0 %v1868_v4 }
 0x45f   : > { %v4923_v7 = vpop.f32.mrb[16].mxu1  ;;  %5288 = vmatprep.subr.msk.bf16.mxu1 %vm6093_vm3, %v5286_v5 }
 0x460   : > { %v2181_v9 = vpop.f32.mrb[17].mxu1  ;;  %5291 = vmatpush3.bf16.xpose.msk.msra.mxu1 %vm6093_vm3, %v5286_v5 }
 0x461   : > { %v5292_v12 = vpack.c.bf16 %v4923_v7, %v2181_v9 }
 0x463   : > { %5294 = vmatprep.subr.msk.bf16.mxu1 %vm6093_vm3, %v5292_v12 }
 0x468   : > { %5297 = vmatpush3.bf16.xpose.msk.msra.mxu1 %vm6093_vm3, %v5292_v12 }
 0x4e5   : > { %v1867_v14 = vpop.xlane.xlu1 %1866 }
 0x4e6   : > { %v1876_v15 = vsub.f32 %v1858_v52, %v1867_v14  ;;  %v1864_v16 = vpop.xlane.xlu0 %1863  ;;  %v5266_v52 = vpack.c.bf16 %v4472_v46, %v4471_v45 }
 0x4e7   : > { %v1875_v17 = vsub.f32 %v1857_v54, %v1864_v16  ;;  %v4485_v54 = vld [vmem:[%s5728_s24 + $0x20] sm:$0xff] }
 0x4e8   : > { %v1881_v19 = vmul.f32 1.442695, %v1876_v15  ;;  %v5278_v61 = vpack.c.bf16 %v4486_v56, %v4485_v54  ;;  %v4507_v54 = vld [vmem:[%s5733_s30 + $0x18] sm:$0xff] }
 0x4e9   : > { %v1879_v20 = vmul.f32 1.442695, %v1875_v17  ;;  %v1874_v22 = vpop.xlane.xlu1 %1873 }
 0x4ea   : > { %5493 = vpow2.f32 %v1881_v19  ;;  %v1878_v23 = vsub.f32 %v1860_v62, %v1874_v22  ;;  %v1870_v24 = vpop.xlane.xlu0 %1869  ;;  %v4487_v62 = vld [vmem:[%s5728_s24 + $0x30] sm:$0xff] }
 0x4eb   : > { %5495 = vpow2.f32 %v1879_v20  ;;  %v1877_v25 = vsub.f32 %v1859_v63, %v1870_v24  ;;  %v4488_v63 = vld [vmem:[%s5728_s24 + $0x38] sm:$0xff] }
 0x4ec   : > { %v1885_v27 = vmul.f32 1.442695, %v1878_v23  ;;  %v5282_v0 = vpack.c.bf16 %v4488_v63, %v4487_v62 }
 0x4ed   : > { %v1883_v28 = vmul.f32 1.442695, %v1877_v25 }
 0x4ee   : > { %5497 = vpow2.f32 %v1885_v27 }
 0x4ef   : > { %5499 = vpow2.f32 %v1883_v28 }
 0x4f4   : > { %v5494_v26 = vpop.eup %5493 }
 0x4f5   : > { %v5496_v29 = vpop.eup %5495  ;;  %v1890_v30 = vsel %vm1861_vm7, %v5494_v26, 0.0 }
 0x4f6   : > { %1891 = vadd.xlane.f32.xlu1 %v1890_v30  ;;  %v1887_v31 = vsel %vm1861_vm7, %v5496_v29, 0.0 }
 0x4f7   : > { %1888 = vadd.xlane.f32.xlu0 %v1887_v31 }
 0x4f8   : > { %v5498_v32 = vpop.eup %5497 }
 0x4f9   : > { %v5500_v33 = vpop.eup %5499  ;;  %v1896_v34 = vsel %vm1871_vm8, %v5498_v32, 0.0 }
 0x4fa   : > { %1897 = vadd.xlane.f32.xlu1 %v1896_v34  ;;  %v1893_v35 = vsel %vm1861_vm7, %v5500_v33, 0.0 }
 0x4fb   : > { %1894 = vadd.xlane.f32.xlu0 %v1893_v35 }
 0x583   : > { %v1892_v39 = vpop.xlane.xlu1 %1891 }
 0x584   : > { %5501 = vrcp.f32 %v1892_v39  ;;  %v1889_v40 = vpop.xlane.xlu0 %1888 }
 0x585   : > { %5503 = vrcp.f32 %v1889_v40 }
 0x587   : > { %v1898_v41 = vpop.xlane.xlu1 %1897 }
 0x588   : > { %5505 = vrcp.f32 %v1898_v41  ;;  %v1895_v42 = vpop.xlane.xlu0 %1894 }
 0x589   : > { %5507 = vrcp.f32 %v1895_v42 }
 0x58e   : > { %v5502_v44 = vpop.eup %5501 }
 0x58f   : > { %v5504_v48 = vpop.eup %5503  ;;  %v1902_v51 = vmul.f32 %v5502_v44, %v5494_v26 }
 0x590   : > { %v1900_v49 = vmul.f32 %v5504_v48, %v5496_v29 }
 0x592   : > { %v5506_v53 = vpop.eup %5505  ;;  %4890 = vmatprep.mubr.msk.f32.mxu0 %vm1861_vm7, %v1900_v49 }
 0x593   : > { %v5508_v57 = vpop.eup %5507  ;;  %4891 = vmatmul.mubr.msk.f32.vlgmr.msra.gmra.mrb[14].mxu0 %vm1861_vm7, %v1902_v51  ;;  %v1906_v60 = vmul.f32 %v5506_v53, %v5498_v32  ;;  %v4506_v53 = vld [vmem:[%s5733_s30 + $0x10] sm:$0xff] }
 0x594   : > { %5265 = vmatpush3.bf16.msra.mxu0 %v5262_v38  ;;  %v1904_v58 = vmul.f32 %v5508_v57, %v5500_v33  ;;  %v5308_v56 = vpack.c.bf16 %v4507_v54, %v4506_v53 }
 0x595   : > { %5267 = vmatprep.subr.bf16.mxu0 %v5266_v52 }
 0x596   : > { %4893 = vmatprep.mubr.msk.f32.mxu0 %vm1861_vm7, %v1904_v58 }
 0x597   : > { %4894 = vmatmul.mubr.msk.f32.gmra.mrb[16].mxu0 %vm1861_vm7, %v1906_v60 }
 0x598   : > { %5269 = vmatpush3.bf16.msra.mxu0 %v5266_v52  ;;  %4904 = vmatprep.mubr.msk.f32.mxu0 %vm1374_vm0, %v6054_v3 }
 0x599   : > { %5279 = vmatprep.subr.bf16.mxu0 %v5278_v61 }
 0x59b   : > { %4905 = vmatmul.mubr.msk.f32.vlgmr.msra.gmra.mrb[18].mxu0 %vm1374_vm0, %v6063_v13 }
 0x59c   : > { %4907 = vmatprep.mubr.msk.f32.mxu0 %vm1374_vm0, %v6070_v18  ;;  %5281 = vmatpush3.bf16.msra.mxu0 %v5278_v61 }
 0x59d   : > { %5283 = vmatprep.subr.bf16.mxu0 %v5282_v0 }
 0x59f   : > { %4908 = vmatmul.mubr.msk.f32.gmra.mrb[20].mxu0 %vm1374_vm0, %v6077_v21 }
 0x5a0   : > { %5285 = vmatpush3.bf16.msra.mxu0 %v5282_v0  ;;  %4932 = vmatprep.mubr.msk.f32.mxu0 %vm1374_vm0, %v6054_v3 }
 0x5a3   : > { %4933 = vmatmul.mubr.msk.f32.vlgmr.msra.gmra.mrb[22].mxu0 %vm1374_vm0, %v6063_v13 }
 0x5a4   : > { %4935 = vmatprep.mubr.msk.f32.mxu0 %vm1374_vm0, %v6070_v18 }
 0x5a7   : > { %4936 = vmatmul.mubr.msk.f32.gmra.mrb[24].mxu0 %vm1374_vm0, %v6077_v21 }
 0x666   : > { %v6189_v1 = vpop.f32.mrb[14].mxu0 }
 0x667   : > { %v6191_v2 = vpop.f32.mrb[15].mxu0 }
 0x66a   : > { %v6193_v4 = vpop.f32.mrb[16].mxu0 }
 0x66b   : > { %v6195_v5 = vpop.f32.mrb[17].mxu0 }
 0x66e   : > { %v4906_v7 = vpop.f32.mrb[18].mxu0 }
 0x66f   : > { %v2081_v9 = vpop.f32.mrb[19].mxu0 }
 0x670   : > { %4946 = vmatprep.mubr.msk.f32.mxu1 %vm1743_vm2, %v2081_v9 }
 0x671   : > { %4947 = vmatmul.mubr.msk.f32.vlgmr.msra.gmra.mrb[18].mxu1 %vm1743_vm2, %v4906_v7 }
 0x672   : > { %v4909_v3 = vpop.f32.mrb[20].mxu0 }
 0x673   : > { %v2091_v13 = vpop.f32.mrb[21].mxu0 }
 0x674   : > { %4949 = vmatprep.mubr.msk.f32.mxu1 %vm1743_vm2, %v2091_v13 }
 0x675   : > { %4950 = vmatmul.mubr.msk.f32.gmra.mrb[20].mxu1 %vm1743_vm2, %v4909_v3 }
 0x676   : > { %v4934_v18 = vpop.f32.mrb[22].mxu0 }
 0x677   : > { %v2261_v21 = vpop.f32.mrb[23].mxu0 }
 0x678   : > { %v5298_v12 = vpack.c.bf16 %v4934_v18, %v2261_v21  ;;  %v2008_v21 = vld [vmem:[%s5733_s30] sm:$0xff] }
 0x67a   : > { %v4937_v14 = vpop.f32.mrb[24].mxu0  ;;  %5299 = vmatprep.subr.bf16.mxu0 %v5298_v12 }
 0x67b   : > { %v2271_v15 = vpop.f32.mrb[25].mxu0  ;;  %5301 = vmatpush3.bf16.msra.mxu0 %v5298_v12  ;;  %v2009_v12 = vld [vmem:[%s5733_s30 + $0x8] sm:$0xff] }
 0x67c   : > { %v5302_v16 = vpack.c.bf16 %v4937_v14, %v2271_v15  ;;  %v5312_v14 = vpack.c.bf16 %v2009_v12, %v2008_v21 }
 0x67e   : > { %5304 = vmatprep.subr.msk.bf16.mxu0 %vm6110_vm6, %v5302_v16 }
 0x67f   : > { %5307 = vmatpush3.bf16.msk.msra.mxu0 %vm6110_vm6, %v5302_v16 }
 0x680   : > { %5309 = vmatprep.subr.bf16.mxu0 %v5308_v56 }
 0x744   : > { %v4948_v17 = vpop.f32.mrb[18].mxu1 }
 0x745   : > { %v2390_v19 = vmul.f32 0.25, %v4948_v17  ;;  %v2370_v20 = vpop.f32.mrb[19].mxu1 }
 0x746   : > { %v2389_v22 = vmul.f32 0.25, %v2370_v20 }
 0x747   : > { %v2394_v23 = vadd.f32 %v2390_v19, %v6130_v47 }
 0x748   : > { %v4951_v24 = vpop.f32.mrb[20].mxu1  ;;  %v2393_v25 = vadd.f32 %v2389_v22, %v6133_v50  ;;  %v4516_v22 = vld [vmem:[%s6526_s6] ss:$0 sm:$0xff]  ;;  %s6546_s6 = sld [smem:[#allocation33_spill]] }
 0x749   : > { %v2392_v27 = vmul.f32 0.25, %v4951_v24  ;;  %v2380_v28 = vpop.f32.mrb[21].mxu1  ;;  %v2400_v26 = vsel %vm1861_vm7, %v2394_v23, -inf }
 0x74a   : > { %v2391_v29 = vmul.f32 0.25, %v2380_v28  ;;  %2401 = vmax.xlane.f32.xlu1 %v2400_v26  ;;  %v2397_v30 = vsel %vm1861_vm7, %v2393_v25, -inf }
 0x74b   : > { %2398 = vmax.xlane.f32.xlu0 %v2397_v30  ;;  %v2396_v43 = vadd.f32 %v2392_v27, %v6138_v55 }
 0x74c   : > { %v2395_v31 = vadd.f32 %v2391_v29, %v6142_v59 }
 0x74d   : > { %v2406_v32 = vsel %vm1871_vm8, %v2396_v43, -inf }
 0x74e   : > { %2407 = vmax.xlane.f32.xlu1 %v2406_v32  ;;  %v2403_v47 = vsel %vm1861_vm7, %v2395_v31, -inf }
 0x74f   : > { %2404 = vmax.xlane.f32.xlu0 %v2403_v47 }
 0x7d7   : > { %v2402_v50 = vpop.xlane.xlu1 %2401 }
 0x7d8   : > { %v2410_v33 = vsub.f32 %v2394_v23, %v2402_v50  ;;  %v2399_v34 = vpop.xlane.xlu0 %2398 }
 0x7d9   : > { %v2409_v35 = vsub.f32 %v2393_v25, %v2399_v34 }
 0x7da   : > { %v2415_v36 = vmul.f32 1.442695, %v2410_v33 }
 0x7db   : > { %v2413_v37 = vmul.f32 1.442695, %v2409_v35  ;;  %v2408_v38 = vpop.xlane.xlu1 %2407 }
 0x7dc   : > { %5509 = vpow2.f32 %v2415_v36  ;;  %v2412_v39 = vsub.f32 %v2396_v43, %v2408_v38  ;;  %v2405_v40 = vpop.xlane.xlu0 %2404 }
 0x7dd   : > { %5511 = vpow2.f32 %v2413_v37  ;;  %v2411_v55 = vsub.f32 %v2395_v31, %v2405_v40 }
 0x7de   : > { %v2419_v41 = vmul.f32 1.442695, %v2412_v39 }
 0x7df   : > { %v2417_v59 = vmul.f32 1.442695, %v2411_v55 }
 0x7e0   : > { %5513 = vpow2.f32 %v2419_v41 }
 0x7e1   : > { %5515 = vpow2.f32 %v2417_v59 }
 0x7e6   : > { %v5510_v42 = vpop.eup %5509 }
 0x7e7   : > { %v5512_v44 = vpop.eup %5511  ;;  %v2424_v45 = vsel %vm1861_vm7, %v5510_v42, 0.0 }
 0x7e8   : > { %2425 = vadd.xlane.f32.xlu1 %v2424_v45  ;;  %v2421_v46 = vsel %vm1861_vm7, %v5512_v44, 0.0 }
 0x7e9   : > { %2422 = vadd.xlane.f32.xlu0 %v2421_v46  ;;  %v2827_v46 = vld [vmem:[%s5753_s27] sm:$0xff] }
 0x7ea   : > { %v5514_v48 = vpop.eup %5513 }
 0x7eb   : > { %v5516_v49 = vpop.eup %5515  ;;  %v2430_v51 = vsel %vm1871_vm8, %v5514_v48, 0.0 }
 0x7ec   : > { %2431 = vadd.xlane.f32.xlu1 %v2430_v51  ;;  %v2427_v52 = vsel %vm1861_vm7, %v5516_v49, 0.0  ;;  %v2829_v51 = vld [vmem:[%s5753_s27 + $0x10] sm:$0xff] }
 0x7ed   : > { %2428 = vadd.xlane.f32.xlu0 %v2427_v52  ;;  %v2830_v52 = vld [vmem:[%s5753_s27 + $0x18] sm:$0xff] }
 0x7ee   : > { %v5320_v53 = vpack.c.bf16 %v2830_v52, %v2829_v51 }
 0x875   : > { %v2426_v57 = vpop.xlane.xlu1 %2425 }
 0x876   : > { %5517 = vrcp.f32 %v2426_v57  ;;  %v2423_v58 = vpop.xlane.xlu0 %2422 }
 0x877   : > { %5519 = vrcp.f32 %v2423_v58 }
 0x879   : > { %v2432_v60 = vpop.xlane.xlu1 %2431 }
 0x87a   : > { %5521 = vrcp.f32 %v2432_v60  ;;  %v2429_v61 = vpop.xlane.xlu0 %2428 }
 0x87b   : > { %5523 = vrcp.f32 %v2429_v61 }
 0x880   : > { %v5518_v62 = vpop.eup %5517 }
 0x881   : > { %v5520_v63 = vpop.eup %5519  ;;  %v2436_v7 = vmul.f32 %v5518_v62, %v5510_v42 }
 0x882   : > { %v2434_v0 = vmul.f32 %v5520_v63, %v5512_v44 }
 0x884   : > { %v5522_v9 = vpop.eup %5521  ;;  %4960 = vmatprep.mubr.msk.f32.mxu0 %vm1861_vm7, %v2434_v0 }
 0x885   : > { %v5524_v3 = vpop.eup %5523  ;;  %4961 = vmatmul.mubr.msk.f32.vlgmr.msra.gmra.mrb[26].mxu0 %vm1861_vm7, %v2436_v7  ;;  %v2440_v18 = vmul.f32 %v5522_v9, %v5514_v48  ;;  %v2828_v48 = vld [vmem:[%s5753_s27 + $0x8] sm:$0xff] }
 0x886   : > { %v2438_v13 = vmul.f32 %v5524_v3, %v5516_v49  ;;  %5311 = vmatpush3.bf16.msra.mxu0 %v5308_v56  ;;  %v5316_v49 = vpack.c.bf16 %v2828_v48, %v2827_v46 }
 0x887   : > { %5313 = vmatprep.subr.bf16.mxu0 %v5312_v14 }
 0x888   : > { %4963 = vmatprep.mubr.msk.f32.mxu0 %vm1861_vm7, %v2438_v13  ;;  %5317 = vmatprep.subr.bf16.mxu1 %v5316_v49 }
 0x889   : > { %4964 = vmatmul.mubr.msk.f32.gmra.mrb[28].mxu0 %vm1861_vm7, %v2440_v18  ;;  %5319 = vmatpush3.bf16.msra.mxu1 %v5316_v49  ;;  %v4517_v18 = vld [vmem:[%s6527_s12] ss:$0 sm:$0xff] }
 0x88a   : > { %5321 = vmatprep.subr.bf16.mxu1 %v5320_v53 }
 0x88d   : > { %5323 = vmatpush3.bf16.msra.mxu1 %v5320_v53 }
 0x958   : > { %v4962_v15 = vpop.f32.mrb[26].mxu0 }
 0x959   : > { %v2522_v16 = vpop.f32.mrb[27].mxu0 }
 0x95a   : > { %4970 = vmatprep.mubr.msk.f32.mxu0 %vm1743_vm2, %v2522_v16 }
 0x95b   : > { %4971 = vmatmul.mubr.msk.f32.vlgmr.msra.gmra.mrb[30].mxu0 %vm1743_vm2, %v4962_v15  ;;  %v4518_v15 = vld [vmem:[%s6528_s23] ss:$0 sm:$0xff]  ;;  %s6532_s23 = sld [smem:[#allocation10_spill]] }
 0x95c   : > { %v4965_v17 = vpop.f32.mrb[28].mxu0  ;;  %5315 = vmatpush3.bf16.msra.mxu0 %v5312_v14 }
 0x95d   : > { %v2532_v19 = vpop.f32.mrb[29].mxu0 }
 0x95e   : > { %4973 = vmatprep.mubr.msk.f32.mxu0 %vm1743_vm2, %v2532_v19 }
 0x95f   : > { %4974 = vmatmul.mubr.msk.f32.gmra.mrb[32].mxu0 %vm1743_vm2, %v4965_v17 }
 0x960   : > { %4980 = vmatprep.mubr.msk.f32.mxu0 %vm1743_vm2, %v6191_v2 }
 0x963   : > { %4981 = vmatmul.mubr.msk.f32.vlgmr.msra.gmra.mrb[30].mxu0 %vm1743_vm2, %v6189_v1 }
 0x964   : > { %4983 = vmatprep.mubr.msk.f32.mxu0 %vm1743_vm2, %v6195_v5 }
 0x967   : > { %4984 = vmatmul.mubr.msk.f32.gmra.mrb[32].mxu0 %vm1743_vm2, %v6193_v4 }
 0xa36   : > { %v4982_v20 = vpop.f32.mrb[30].mxu0 }
 0xa37   : > { %v2739_v23 = vadd.f32 %v4982_v20, %v6005_v8  ;;  %v2719_v24 = vpop.f32.mrb[31].mxu0 }
 0xa38   : > { %v2738_v25 = vadd.f32 %v2719_v24, %v6000_v6 }
 0xa39   : > { %v2750_v27 = vadd.f32 %v4516_v22, %v2739_v23 }
 0xa3a   : > { %v4985_v28 = vpop.f32.mrb[32].mxu0  ;;  %v2749_v26 = vadd.f32 %v4516_v22, %v2738_v25 }
 0xa3b   : > { %v2741_v2 = vadd.f32 %v4985_v28, %v6011_v11  ;;  %v2729_v29 = vpop.f32.mrb[33].mxu0  ;;  %v2758_v1 = vsel %vm1374_vm0, %v2750_v27, 0.0 }
 0xa3c   : > { %v2740_v5 = vadd.f32 %v2729_v29, %v6009_v10  ;;  %2759 = vadd.xlane.f32.xlu1 %v2758_v1  ;;  %v2755_v4 = vsel %vm1374_vm0, %v2749_v26, 0.0  ;;  %v2971_v29 = vld [vmem:[%s6529_s2] sm:$0xff]  ;;  %v2972_v1 = vld [vmem:[%s6529_s2 + $0x8] sm:$0xff] }
 0xa3d   : > { %v6244_v30 = vadd.f32 %v4516_v22, %v2741_v2  ;;  %2756 = vadd.xlane.f32.xlu0 %v2755_v4  ;;  %v2973_v4 = vld [vmem:[%s6529_s2 + $0x10] sm:$0xff] }
 0xa3e   : > { %v2751_v8 = vadd.f32 %v4516_v22, %v2740_v5  ;;  %v5324_v5 = vpack.c.bf16 %v2972_v1, %v2971_v29 }
 0xa3f   : > { %v2764_v6 = vsel %vm1376_vm1, %v6244_v30, 0.0 }
 0xa40   : > { %2765 = vadd.xlane.f32.xlu1 %v2764_v6  ;;  %v2761_v43 = vsel %vm1374_vm0, %v2751_v8, 0.0  ;;  %5325 = vmatprep.subr.bf16.mxu1 %v5324_v5 }
 0xa41   : > { %2762 = vadd.xlane.f32.xlu0 %v2761_v43  ;;  %v2975_v43 = vld [vmem:[%s6529_s2 + $0x20] sm:$0xff] }
 0xac9   : > { %v2760_v11 = vpop.xlane.xlu1 %2759 }
 0xaca   : > { %v2768_v31 = vmul.f32 0.03125, %v2760_v11  ;;  %v2757_v32 = vpop.xlane.xlu0 %2756  ;;  %v2976_v11 = vld [vmem:[%s6529_s2 + $0x28] sm:$0xff] }
 0xacb   : > { %v2767_v47 = vmul.f32 0.03125, %v2757_v32  ;;  %v2977_v32 = vld [vmem:[%s6529_s2 + $0x30] sm:$0xff] }
 0xacc   : > { %v2772_v50 = vsub.f32 %v2750_v27, %v2768_v31  ;;  %v5332_v31 = vpack.c.bf16 %v2976_v11, %v2975_v43 }
 0xacd   : > { %v2771_v10 = vsub.f32 %v2749_v26, %v2767_v47  ;;  %v2766_v33 = vpop.xlane.xlu1 %2765  ;;  %v2978_v47 = vld [vmem:[%s6529_s2 + $0x38] sm:$0xff] }
 0xace   : > { %v2770_v34 = vmul.f32 0.03125, %v2766_v33  ;;  %v2763_v35 = vpop.xlane.xlu0 %2762  ;;  %v2776_v36 = vmul.f32 %v2772_v50, %v2772_v50 }
 0xacf   : > { %v2769_v37 = vmul.f32 0.03125, %v2763_v35  ;;  %v2775_v38 = vmul.f32 %v2771_v10, %v2771_v10 }
 0xad0   : > { %v2774_v39 = vsub.f32 %v6244_v30, %v2770_v34  ;;  %v2782_v40 = vsel %vm1374_vm0, %v2776_v36, 0.0 }
 0xad1   : > { %v2773_v55 = vsub.f32 %v2751_v8, %v2769_v37  ;;  %2783 = vadd.xlane.f32.xlu1 %v2782_v40  ;;  %v2779_v41 = vsel %vm1374_vm0, %v2775_v38, 0.0  ;;  %v2974_v8 = vld [vmem:[%s6529_s2 + $0x18] sm:$0xff]  ;;  %s6534_s2 = sld [smem:[#allocation21_spill]] }
 0xad2   : > { %2780 = vadd.xlane.f32.xlu0 %v2779_v41  ;;  %v2778_v59 = vmul.f32 %v2774_v39, %v2774_v39  ;;  %v5328_v6 = vpack.c.bf16 %v2974_v8, %v2973_v4 }
 0xad3   : > { %v2777_v42 = vmul.f32 %v2773_v55, %v2773_v55 }
 0xad4   : > { %v2788_v44 = vsel %vm1376_vm1, %v2778_v59, 0.0 }
 0xad5   : > { %2789 = vadd.xlane.f32.xlu1 %v2788_v44  ;;  %v2785_v45 = vsel %vm1374_vm0, %v2777_v42, 0.0 }
 0xad6   : > { %2786 = vadd.xlane.f32.xlu0 %v2785_v45 }
 0xb5e   : > { %v2784_v54 = vpop.xlane.xlu1 %2783 }
 0xb5f   : > { %v2792_v56 = vmul.f32 0.03125, %v2784_v54  ;;  %v2781_v57 = vpop.xlane.xlu0 %2780 }
 0xb60   : > { %v2791_v58 = vmul.f32 0.03125, %v2781_v57 }
 0xb61   : > { %v2796_v60 = vadd.f32 1e-05, %v2792_v56 }
 0xb62   : > { %v2795_v61 = vadd.f32 1e-05, %v2791_v58  ;;  %v2790_v62 = vpop.xlane.xlu1 %2789 }
 0xb63   : > { %5525 = vrsqrt.f32 %v2796_v60  ;;  %v2794_v63 = vmul.f32 0.03125, %v2790_v62  ;;  %v2787_v0 = vpop.xlane.xlu0 %2786 }
 0xb64   : > { %5527 = vrsqrt.f32 %v2795_v61  ;;  %v2793_v7 = vmul.f32 0.03125, %v2787_v0 }
 0xb65   : > { %v2798_v9 = vadd.f32 1e-05, %v2794_v63 }
 0xb66   : > { %v2797_v3 = vadd.f32 1e-05, %v2793_v7 }
 0xb67   : > { %5529 = vrsqrt.f32 %v2798_v9 }
 0xb68   : > { %5531 = vrsqrt.f32 %v2797_v3 }
 0xb6d   : > { %v5526_v13 = vpop.eup %5525 }
 0xb6e   : > { %v5528_v21 = vpop.eup %5527  ;;  %v2804_v12 = vmul.f32 %v5526_v13, %v2772_v50  ;;  %v5336_v50 = vpack.c.bf16 %v2978_v47, %v2977_v32 }
 0xb6f   : > { %v2803_v14 = vmul.f32 %v5528_v21, %v2771_v10  ;;  %v4519_v10 = vld [vmem:[%s6530_s16] ss:$0 sm:$0xff]  ;;  %s6533_s16 = sld [smem:[#allocation20_spill]] }
 0xb70   : > { %v2814_v16 = vmul.f32 %v4517_v18, %v2804_v12 }
 0xb71   : > { %v5530_v17 = vpop.eup %5529  ;;  %v2813_v19 = vmul.f32 %v4517_v18, %v2803_v14 }
 0xb72   : > { %v5532_v20 = vpop.eup %5531  ;;  %v2806_v22 = vmul.f32 %v5530_v17, %v2774_v39  ;;  %v2824_v25 = vadd.f32 %v4518_v15, %v2814_v16 }
 0xb73   : > { %v2823_v23 = vadd.f32 %v4518_v15, %v2813_v19  ;;  %v2805_v24 = vmul.f32 %v5532_v20, %v2773_v55 }
 0xb74   : > { %v2816_v27 = vmul.f32 %v4517_v18, %v2806_v22 }
 0xb75   : > { %4994 = vmatprep.mubr.msk.f32.mxu1 %vm1374_vm0, %v2823_v23  ;;  %v2815_v28 = vmul.f32 %v4517_v18, %v2805_v24 }
 0xb76   : > { %4995 = vmatmul.mubr.msk.f32.vlgmr.msra.gmra.mrb[22].mxu1 %vm1374_vm0, %v2824_v25  ;;  %v2826_v2 = vadd.f32 %v4518_v15, %v2816_v27 }
 0xb77   : > { %v2825_v26 = vadd.f32 %v4518_v15, %v2815_v28  ;;  %5327 = vmatpush3.bf16.msra.mxu1 %v5324_v5  ;;  %v4528_v28 = vld [vmem:[%s6531_s22] ss:$0 sm:$0xff]  ;;  %s6535_s22 = sld [smem:[#allocation24_spill]] }
 0xb78   : > { %5329 = vmatprep.subr.bf16.mxu1 %v5328_v6  ;;  %v4531_v5 = vld [vmem:[%s6532_s23] ss:$0 sm:$0xff]  ;;  %s6538_s23 = sld [smem:[#allocation25_spill]] }
 0xb79   : > { %4997 = vmatprep.mubr.msk.f32.mxu1 %vm1374_vm0, %v2825_v26  ;;  %3119 = vst.msk [vmem:[#allocation3] sm:$0xff] %vm1374_vm0, %v4531_v5 }
 0xb7a   : > { %4998 = vmatmul.mubr.msk.f32.gmra.mrb[24].mxu1 %vm1374_vm0, %v2826_v2 }
 0xb7b   : > { %5331 = vmatpush3.bf16.msra.mxu1 %v5328_v6 }
 0xb7c   : > { %5333 = vmatprep.subr.bf16.mxu1 %v5332_v31 }
 0xb7f   : > { %5335 = vmatpush3.bf16.msra.mxu1 %v5332_v31 }
 0xb80   : > { %5337 = vmatprep.subr.bf16.mxu1 %v5336_v50 }
 0xb83   : > { %5339 = vmatpush3.bf16.msra.mxu1 %v5336_v50  ;;  %v4529_v50 = vld [vmem:[%s6533_s16] ss:$0 sm:$0xff]  ;;  %s6539_s16 = sld [smem:[#allocation23_spill]] }
 0xc49   : > { %v4996_v33 = vpop.f32.mrb[22].mxu1 }
 0xc4a   : > { %v2922_v34 = vadd.f32 %v4996_v33, %v4519_v10  ;;  %v2916_v35 = vpop.f32.mrb[23].mxu1  ;;  %v4530_v33 = vld [vmem:[%s6534_s2] ss:$0 sm:$0xff]  ;;  %s6537_s2 = sld [smem:[#allocation22_spill]] }
 0xc4b   : > { %v2917_v36 = vadd.f32 %v4519_v10, %v2916_v35 }
 0xc4c   : > { %v2940_v37 = vmul.f32 0.044715, %v2922_v34  ;;  %v2936_v18 = vmul.f32 0.5, %v2922_v34 }
 0xc4d   : > { %v2939_v38 = vmul.f32 0.044715, %v2917_v36  ;;  %v4999_v39 = vpop.f32.mrb[24].mxu1  ;;  %v2935_v3 = vmul.f32 0.5, %v2917_v36 }
 0xc4e   : > { %v2944_v40 = vmul.f32 %v2940_v37, %v2922_v34  ;;  %v2932_v55 = vadd.f32 %v4999_v39, %v4519_v10  ;;  %v2926_v41 = vpop.f32.mrb[25].mxu1 }
 0xc4f   : > { %v2943_v59 = vmul.f32 %v2939_v38, %v2917_v36  ;;  %v2927_v42 = vadd.f32 %v4519_v10, %v2926_v41 }
 0xc50   : > { %v2948_v44 = vmul.f32 %v2944_v40, %v2922_v34  ;;  %v2942_v45 = vmul.f32 0.044715, %v2932_v55  ;;  %v2938_v20 = vmul.f32 0.5, %v2932_v55 }
 0xc51   : > { %v2947_v46 = vmul.f32 %v2943_v59, %v2917_v36  ;;  %v2941_v48 = vmul.f32 0.044715, %v2927_v42  ;;  %v2937_v17 = vmul.f32 0.5, %v2927_v42  ;;  %v3152_v59 = vld [vmem:[%s6535_s22] sm:$0xff] }
 0xc52   : > { %v2952_v49 = vadd.f32 %v2948_v44, %v2922_v34  ;;  %v2946_v51 = vmul.f32 %v2942_v45, %v2932_v55  ;;  %v3303_v44 = vld [vmem:[%s6536_s3] sm:$0xff] }
 0xc53   : > { %v2951_v52 = vadd.f32 %v2947_v46, %v2917_v36  ;;  %v2945_v53 = vmul.f32 %v2941_v48, %v2927_v42  ;;  %v3304_v46 = vld [vmem:[%s6536_s3 + $0x8] sm:$0xff]  ;;  %v5661_v48 = vmov 0.0|0.0  }
 0xc54   : > { %v2956_v54 = vmul.f32 0.7978846, %v2952_v49  ;;  %v2950_v56 = vmul.f32 %v2946_v51, %v2932_v55  ;;  %5340 = vmatprep.subr.bf16.mxu0 %v5661_v48  ;;  %5352 = vmatprep.subr.bf16.mxu1 %v5661_v48  ;;  %v5353_v49 = vpack.c.bf16 %v3304_v46, %v3303_v44  ;;  %v3154_v51 = vld [vmem:[%s6535_s22 + $0x10] sm:$0xff]  ;;  %v4553_v46 = vld [vmem:[%s6536_s3 + $0x38] sm:$0xff] }
 0xc55   : > { %v2949_v57 = vmul.f32 %v2945_v53, %v2927_v42  ;;  %v2955_v58 = vmul.f32 0.7978846, %v2951_v52  ;;  %v3155_v52 = vld [vmem:[%s6535_s22 + $0x18] sm:$0xff]  ;;  %v3305_v53 = vld [vmem:[%s6536_s3 + $0x10] sm:$0xff] }
 0xc56   : > { %5533 = vtanh.f32 %v2956_v54  ;;  %v2954_v60 = vadd.f32 %v2950_v56, %v2932_v55  ;;  %v5344_v54 = vpack.c.bf16 %v3155_v52, %v3154_v51  ;;  %v3306_v56 = vld [vmem:[%s6536_s3 + $0x18] sm:$0xff] }
 0xc57   : > { %v2953_v61 = vadd.f32 %v2949_v57, %v2927_v42  ;;  %5535 = vtanh.f32 %v2955_v58  ;;  %v3153_v42 = vld [vmem:[%s6535_s22 + $0x8] sm:$0xff]  ;;  %v5356_v57 = vpack.c.bf16 %v3306_v56, %v3305_v53  ;;  %v5663_v58 = vmov 0.0  }
 0xc58   : > { %v2958_v62 = vmul.f32 0.7978846, %v2954_v60  ;;  %v5341_v45 = vpack.c.bf16 %v3153_v42, %v3152_v59  ;;  %5030 = vmatprep.mubr.msk.f32.mxu0 %vm5662_vm10, %v5663_v58  ;;  %v4550_v59 = vld [vmem:[%s6536_s3 + $0x20] sm:$0xff]  ;;  %v4551_v42 = vld [vmem:[%s6536_s3 + $0x28] sm:$0xff] }
 0xc59   : > { %v2957_v63 = vmul.f32 0.7978846, %v2953_v61  ;;  %v5371_v44 = vpack.c.bf16 %v4551_v42, %v4550_v59  ;;  %v4210_v59 = vld [vmem:[%s6546_s6 + $0x8] sm:$0xff] }
 0xc5a   : > { %5537 = vtanh.f32 %v2958_v62  ;;  %5342 = vmatpush3.bf16.msra.mxu0 %v5341_v45  ;;  %v4552_v45 = vld [vmem:[%s6536_s3 + $0x30] sm:$0xff]  ;;  %s6543_s3 = sld [smem:[#allocation31_spill]] }
 0xc5b   : > { %5539 = vtanh.f32 %v2957_v63  ;;  %5343 = vmatprep.subr.bf16.mxu0 %v5661_v48 }
 0xc5e   : > { %5345 = vmatpush3.bf16.msra.mxu0 %v5344_v54 }
 0xc5f   : > { %5346 = vmatprep.subr.bf16.mxu0 %v5661_v48 }
 0xc60   : > { %v5534_v0 = vpop.eup %5533 }
 0xc61   : > { %v5536_v7 = vpop.eup %5535  ;;  %v2964_v9 = vadd.f32 1.0, %v5534_v0  ;;  %v4532_v0 = vld [vmem:[%s6537_s2] ss:$0 sm:$0xff]  ;;  %s6540_s2 = sld [smem:[#allocation9_spill]] }
 0xc62   : > { %v2963_v13 = vadd.f32 1.0, %v5536_v7  ;;  %v3229_v7 = vld [vmem:[%s6538_s23] sm:$0xff] }
 0xc63   : > { %v2968_v15 = vmul.f32 %v2964_v9, %v2936_v18  ;;  %v4546_v18 = vld [vmem:[%s6538_s23 + $0x28] sm:$0xff] }
 0xc64   : > { %v5538_v21 = vpop.eup %5537  ;;  %v2967_v12 = vmul.f32 %v2963_v13, %v2935_v3  ;;  %v3230_v3 = vld [vmem:[%s6538_s23 + $0x8] sm:$0xff]  ;;  %v4545_v13 = vld [vmem:[%s6538_s23 + $0x20] sm:$0xff] }
 0xc65   : > { %v5540_v14 = vpop.eup %5539  ;;  %v2966_v16 = vadd.f32 1.0, %v5538_v21  ;;  %v4533_v21 = vld [vmem:[%s6539_s16] ss:$0 sm:$0xff]  ;;  %s6541_s16 = sld [smem:[#allocation27_spill]] }
 0xc66   : > { %5016 = vmatprep.mubr.msk.f32.mxu1 %vm2979_vm9, %v2967_v12  ;;  %v2965_v19 = vadd.f32 1.0, %v5540_v14  ;;  %v5347_v14 = vpack.c.bf16 %v3230_v3, %v3229_v7 }
 0xc67   : > { %5017 = vmatmul.mubr.msk.f32.vlgmr.msra.gmra.mrb[26].mxu1 %vm2979_vm9, %v2968_v15  ;;  %v2970_v23 = vmul.f32 %v2966_v16, %v2938_v20  ;;  %v5365_v15 = vpack.c.bf16 %v4546_v18, %v4545_v13  ;;  %v3231_v16 = vld [vmem:[%s6538_s23 + $0x10] sm:$0xff] }
 0xc68   : > { %v2969_v22 = vmul.f32 %v2965_v19, %v2937_v17  ;;  %5354 = vmatpush3.bf16.msra.mxu1 %v5353_v49  ;;  %v3232_v19 = vld [vmem:[%s6538_s23 + $0x18] sm:$0xff]  ;;  %v4547_v20 = vld [vmem:[%s6538_s23 + $0x30] sm:$0xff]  ;;  %v5374_v49 = vpack.c.bf16 %v4553_v46, %v4552_v45 }
 0xc69   : > { %5355 = vmatprep.subr.bf16.mxu1 %v5661_v48  ;;  %v4212_v45 = vld [vmem:[%s6546_s6 + $0x18] sm:$0xff] }
 0xc6a   : > { %5019 = vmatprep.mubr.msk.f32.mxu1 %vm2979_vm9, %v2969_v22  ;;  %v4548_v22 = vld [vmem:[%s6538_s23 + $0x38] sm:$0xff] }
 0xc6b   : > { %5020 = vmatmul.mubr.msk.f32.gmra.mrb[28].mxu1 %vm2979_vm9, %v2970_v23  ;;  %v5350_v23 = vpack.c.bf16 %v3232_v19, %v3231_v16  ;;  %v3540_v16 = vld [vmem:[%s6541_s16] sm:$0xff] }
 0xc6c   : > { %5357 = vmatpush3.bf16.msra.mxu1 %v5356_v57  ;;  %5052 = vmatprep.mubr.msk.f32.mxu1 %vm5662_vm10, %v5663_v58 }
 0xc6d   : > { %5364 = vmatprep.subr.bf16.mxu1 %v5661_v48 }
 0xd3a   : > { %v5018_v24 = vpop.f32.mrb[26].mxu1 }
 0xd3b   : > { %v3058_v25 = vpop.f32.mrb[27].mxu1  ;;  %v5368_v24 = vpack.c.bf16 %v4548_v22, %v4547_v20 }
 0xd3e   : > { %v5021_v27 = vpop.f32.mrb[28].mxu1 }
 0xd3f   : > { %v3074_v26 = vadd.f32 %v5021_v27, %v6244_v30  ;;  %v3066_v2 = vpop.f32.mrb[29].mxu1 }
 0xd41   : > { %v3082_v29 = vadd.f32 %v4528_v28, %v3074_v26 }
 0xd43   : > { %v3085_v1 = vsel %vm1376_vm1, %v3082_v29, 0.0 }
 0xd44   : > { %3086 = vadd.xlane.f32.xlu0 %v3085_v1 }
 0xdd1   : > { %v3087_v4 = vpop.xlane.xlu0 %3086 }
 0xdd2   : > { %v3088_v8 = vmul.f32 0.03125, %v3087_v4 }
 0xdd4   : > { %v3089_v6 = vsub.f32 %v3082_v29, %v3088_v8  ;;  %v3122_v8 = vld [vmem:[%s6540_s2] sm:$0xff]  ;;  %s6542_s2 = sld [smem:[#allocation28_spill]] }
 0xdd6   : > { %v3090_v43 = vmul.f32 %v3089_v6, %v3089_v6 }
 0xdd8   : > { %v3091_v11 = vsel %vm1376_vm1, %v3090_v43, 0.0 }
 0xdd9   : > { %3092 = vadd.xlane.f32.xlu1 %v3091_v11 }
 0xe66   : > { %v3093_v31 = vpop.xlane.xlu1 %3092 }
 0xe67   : > { %v3094_v32 = vmul.f32 0.03125, %v3093_v31 }
 0xe69   : > { %v3095_v30 = vadd.f32 1e-05, %v3094_v32 }
 0xe6b   : > { %5541 = vrsqrt.f32 %v3095_v30 }
 0xe75   : > { %v5542_v47 = vpop.eup %5541 }
 0xe76   : > { %v3097_v10 = vmul.f32 %v5542_v47, %v3089_v6 }
 0xe78   : > { %v3104_v34 = vmul.f32 %v4529_v50, %v3097_v10 }
 0xe7a   : > { %v3111_v35 = vadd.f32 %v4530_v33, %v3104_v34  ;;  %v4540_v34 = vld [vmem:[%s6535_s22 + $0x20] sm:$0xff] }
 0xe7c   : > { %3120 = vst.msk [vmem:[#allocation3] sm:$0xf] %vm1376_vm1, %v3111_v35  ;;  %v4541_v35 = vld [vmem:[%s6535_s22 + $0x28] sm:$0xff] }
 0xe83   : > { %v6286_v36 = vld [vmem:[#allocation3] sm:$0xff] }
 0xe84   : > { %v3125_v37 = vsel %vm1374_vm0, %v6286_v36, 0.0 }
 0xe85   : > { %3126 = vadd.xlane.f32.xlu0 %v3125_v37 }
 0xf12   : > { %v3127_v38 = vpop.xlane.xlu0 %3126 }
 0xf13   : > { %v3128_v39 = vmul.f32 0.03125, %v3127_v38  ;;  %v5359_v38 = vpack.c.bf16 %v4541_v35, %v4540_v34 }
 0xf15   : > { %v3129_v40 = vsub.f32 %v6286_v36, %v3128_v39 }
 0xf17   : > { %v3130_v55 = vmul.f32 %v3129_v40, %v3129_v40 }
 0xf19   : > { %v3131_v41 = vsel %vm1374_vm0, %v3130_v55, 0.0  ;;  %v4543_v55 = vld [vmem:[%s6535_s22 + $0x38] sm:$0xff] }
 0xf1a   : > { %3132 = vadd.xlane.f32.xlu1 %v3131_v41 }
 0xfa7   : > { %v3133_v60 = vpop.xlane.xlu1 %3132 }
 0xfa8   : > { %v3134_v61 = vmul.f32 0.03125, %v3133_v60 }
 0xfaa   : > { %v3135_v62 = vadd.f32 1e-05, %v3134_v61 }
 0xfac   : > { %5543 = vrsqrt.f32 %v3135_v62 }
 0xfb6   : > { %v5544_v63 = vpop.eup %5543 }
 0xfb7   : > { %v3137_v9 = vmul.f32 %v5544_v63, %v3129_v40  ;;  %v4542_v40 = vld [vmem:[%s6535_s22 + $0x30] sm:$0xff] }
 0xfb8   : > { %v5362_v41 = vpack.c.bf16 %v4543_v55, %v4542_v40 }
 0xfb9   : > { %v3144_v12 = vmul.f32 %v4532_v0, %v3137_v9 }
 0xfbb   : > { %v6317_v17 = vadd.f32 %v4533_v21, %v3144_v12  ;;  %v4558_v21 = vld [vmem:[%s6541_s16 + $0x10] sm:$0xff]  ;;  %v4559_v12 = vld [vmem:[%s6541_s16 + $0x18] sm:$0xff] }
 0xfbd   : > { %5031 = vmatmul.mubr.msk.f32.vlgmr.msra.gmra.mrb[34].mxu0 %vm1374_vm0, %v6317_v17  ;;  %5053 = vmatmul.mubr.msk.f32.vlgmr.msra.gmra.mrb[30].mxu1 %vm1374_vm0, %v6317_v17 }
 0xfbe   : > { %5348 = vmatpush3.bf16.msra.mxu0 %v5347_v14  ;;  %5366 = vmatpush3.bf16.msra.mxu1 %v5365_v15  ;;  %v5377_v14 = vpack.c.bf16 %v4559_v12, %v4558_v21 }
 0xfbf   : > { %5349 = vmatprep.subr.bf16.mxu0 %v5661_v48  ;;  %5367 = vmatprep.subr.bf16.mxu1 %v5661_v48 }
 0xfc0   : > { %5041 = vmatprep.mubr.msk.f32.mxu0 %vm5662_vm10, %v5663_v58  ;;  %5084 = vmatprep.mubr.msk.f32.mxu1 %vm5662_vm10, %v5663_v58 }
 0xfc2   : > { %5351 = vmatpush3.bf16.msra.mxu0 %v5350_v23  ;;  %5369 = vmatpush3.bf16.msra.mxu1 %v5368_v24 }
 0xfc3   : > { %5055 = vmatprep.subr.mxu0 %v5663_v58  ;;  %5098 = vmatprep.subr.mxu1 %v5663_v58 }
 0xfc5   : > { %5042 = vmatmul.mubr.msk.f32.vlgmr.msra.gmra.mrb[36].mxu0 %vm1374_vm0, %v6317_v17  ;;  %5085 = vmatmul.mubr.msk.f32.vlgmr.msra.gmra.mrb[32].mxu1 %vm1374_vm0, %v6317_v17 }
 0xfc6   : > { %5057 = vmatprep.mubr.msk.f32.mxu0 %vm5662_vm10, %v5663_v58  ;;  %5100 = vmatprep.mubr.msk.f32.mxu1 %vm5662_vm10, %v5663_v58 }
0x1090   : > { %v3225_v25 = vpop.f32.mrb[34].mxu0  ;;  %v3373_v27 = vpop.f32.mrb[30].mxu1 }
0x1091   : > { %v5032_v28 = vpop.f32.mrb[35].mxu0  ;;  %v5054_v26 = vpop.f32.mrb[31].mxu1 }
0x1098   : > { %v3299_v2 = vpop.f32.mrb[36].mxu0  ;;  %v3688_v29 = vpop.f32.mrb[32].mxu1 }
0x1099   : > { %v5043_v1 = vpop.f32.mrb[37].mxu0  ;;  %5056 = vmatpush3.xpose.msk.msra.mxu0 %vm1743_vm2, %v3299_v2  ;;  %v5086_v5 = vpop.f32.mrb[33].mxu1  ;;  %5099 = vmatpush3.xpose.msk.msra.mxu1 %vm1743_vm2, %v3688_v29  ;;  %v4562_v29 = vld [vmem:[%s6542_s2] ss:$0 sm:$0xff]  ;;  %s6545_s2 = sld [smem:[#allocation30_spill]] }
0x109a   : > { %5060 = vmatprep.subr.mxu0 %v5663_v58  ;;  %5103 = vmatprep.subr.mxu1 %v5663_v58 }
0x109c   : > { %5058 = vmatmul.mubr.msk.f32.vlgmr.msra.gmra.mrb[38].mxu0 %vm1743_vm2, %v3225_v25 }
0x109d   : > { %5061 = vmatpush3.msra.mxu0 %v3373_v27  ;;  %5062 = vmatprep.mubr.msk.f32.mxu0 %vm5662_vm10, %v5663_v58 }
0x109e   : > { %5358 = vmatprep.subr.bf16.mxu0 %v5661_v48 }
0x116f   : > { %v3449_v4 = vpop.f32.mrb[38].mxu0 }
0x1170   : > { %v3453_v6 = vmul.f32 0.25, %v3449_v4  ;;  %v5059_v43 = vpop.f32.mrb[39].mxu0 }
0x1172   : > { %v3454_v11 = vadd.f32 %v3453_v6, %v3122_v8 }
0x1174   : > { %v3456_v31 = vsel %vm3455_vm11, %v3454_v11, -inf }
0x1175   : > { %3457 = vmax.xlane.f32.xlu0 %v3456_v31  ;;  %v4116_v31 = vld [vmem:[%s6543_s3] sm:$0xff] }
0x1202   : > { %v3458_v32 = vpop.xlane.xlu0 %3457 }
0x1203   : > { %v3459_v30 = vsub.f32 %v3454_v11, %v3458_v32  ;;  %v4117_v32 = vld [vmem:[%s6543_s3 + $0x8] sm:$0xff] }
0x1205   : > { %v3460_v47 = vmul.f32 1.442695, %v3459_v30  ;;  %v4118_v30 = vld [vmem:[%s6543_s3 + $0x10] sm:$0xff] }
0x1207   : > { %5545 = vpow2.f32 %v3460_v47  ;;  %v4119_v47 = vld [vmem:[%s6543_s3 + $0x18] sm:$0xff]  ;;  %s6547_s3 = sld [smem:[#allocation32_spill]] }
0x1211   : > { %v5546_v50 = vpop.eup %5545 }
0x1212   : > { %v3462_v10 = vsel %vm3455_vm11, %v5546_v50, 0.0 }
0x1213   : > { %3463 = vadd.xlane.f32.xlu1 %v3462_v10 }
0x12a0   : > { %v3464_v33 = vpop.xlane.xlu1 %3463 }
0x12a1   : > { %5547 = vrcp.f32 %v3464_v33 }
0x12ab   : > { %v5548_v37 = vpop.eup %5547 }
0x12ac   : > { %v3466_v39 = vmul.f32 %v5548_v37, %v5546_v50  ;;  %v5386_v50 = vpack.c.bf16 %v4119_v47, %v4118_v30  ;;  %v4563_v37 = vld [vmem:[%s6544_s5] ss:$0 sm:$0xff]  ;;  %s1117_s5 = sand.u32 1, %s5613_s10  }
0x12ad   : > { %s4331_s9 = scalar_lea.sflag [#allocation5], %s1117_s5 }
0x12ae   : > { %5063 = vmatmul.mubr.msk.f32.vlgmr.msra.gmra.mrb[40].mxu0 %vm3455_vm11, %v3466_v39  ;;  %v4564_v39 = vld [vmem:[%s6545_s2] ss:$0 sm:$0xff]  ;;  %s1118_s2 = scalar_lea.vmem [#allocation4], %s1117_s5 }
0x12af   : > { %5360 = vmatpush3.bf16.msra.mxu0 %v5359_v38  ;;  %5073 = vmatprep.mubr.msk.f32.mxu0 %vm5662_vm10, %v5663_v58 }
0x12b0   : > { %5361 = vmatprep.subr.bf16.mxu0 %v5661_v48 }
0x12b3   : > { %5363 = vmatpush3.bf16.msra.mxu0 %v5362_v41  ;;  %v4209_v41 = vld [vmem:[%s6546_s6] sm:$0xff] }
0x12b4   : > { %5370 = vmatprep.subr.bf16.mxu0 %v5661_v48  ;;  %v5389_v42 = vpack.c.bf16 %v4210_v59, %v4209_v41 }
0x12b6   : > { %5074 = vmatmul.mubr.msk.f32.vlgmr.msra.gmra.mrb[42].mxu0 %vm1374_vm0, %v6317_v17 }
0x12b7   : > { %5372 = vmatpush3.bf16.msra.mxu0 %v5371_v44  ;;  %5095 = vmatprep.mubr.msk.f32.mxu0 %vm5662_vm10, %v5663_v58  ;;  %v4211_v44 = vld [vmem:[%s6546_s6 + $0x10] sm:$0xff] }
0x12b8   : > { %5373 = vmatprep.subr.bf16.mxu0 %v5661_v48  ;;  %v5392_v46 = vpack.c.bf16 %v4212_v45, %v4211_v44 }
0x12bb   : > { %5375 = vmatpush3.bf16.msra.mxu0 %v5374_v49  ;;  %v4213_v49 = vld [vmem:[%s6546_s6 + $0x20] sm:$0xff] }
0x12bc   : > { %5376 = vmatprep.subr.bf16.mxu0 %v5661_v48 }
0x12be   : > { %5096 = vmatmul.mubr.msk.f32.vlgmr.msra.gmra.mrb[44].mxu0 %vm1374_vm0, %v6317_v17  ;;  %v3541_v17 = vld [vmem:[%s6541_s16 + $0x8] sm:$0xff] }
0x12bf   : > { %5112 = vmatprep.mubr.msk.f32.mxu0 %vm5662_vm10, %v5663_v58  ;;  %5378 = vmatpush3.bf16.msra.mxu0 %v5377_v14  ;;  %v5380_v20 = vpack.c.bf16 %v3541_v17, %v3540_v16 }
0x12c0   : > { %5382 = vmatprep.subr.bf16.mxu0 %v5661_v48 }
0x1381   : > { %v3536_v51 = vpop.f32.mrb[40].mxu0 }
0x1382   : > { %v5064_v52 = vpop.f32.mrb[41].mxu0 }
0x1389   : > { %v3613_v53 = vpop.f32.mrb[42].mxu0 }
0x138a   : > { %v5075_v54 = vpop.f32.mrb[43].mxu0  ;;  %5101 = vmatmul.mubr.msk.f32.vlgmr.msra.gmra.mrb[34].mxu1 %vm1743_vm2, %v3613_v53  ;;  %v4215_v53 = vld [vmem:[%s6546_s6 + $0x30] sm:$0xff] }
0x138b   : > { %5105 = vmatprep.mubr.msk.f32.mxu1 %vm5662_vm10, %v5663_v58  ;;  %v4216_v54 = vld [vmem:[%s6546_s6 + $0x38] sm:$0xff] }
0x1391   : > { %v3763_v56 = vpop.f32.mrb[44].mxu0 }
0x1392   : > { %v5097_v57 = vpop.f32.mrb[45].mxu0  ;;  %5104 = vmatpush3.msra.mxu1 %v3763_v56  ;;  %v5398_v56 = vpack.c.bf16 %v4216_v54, %v4215_v53 }
0x1393   : > { %5379 = vmatprep.subr.bf16.mxu1 %v5661_v48  ;;  %v4565_v57 = vld [vmem:[%s6547_s3] ss:$0 sm:$0xff]  ;;  %s4571_s3 = sshll.u32 %s5881_s0, 4  ;;  %s5664_s0 = smov [#allocation4]  }
0x1394   : > { %s6435_s8 = scalar_lea.hbm %s5858_s4, %s4571_s3 }
0x145d   : > { %v3839_v60 = vpop.f32.mrb[34].mxu1 }
0x145e   : > { %v3843_v61 = vmul.f32 0.25, %v3839_v60  ;;  %v5102_v62 = vpop.f32.mrb[35].mxu1 }
0x1460   : > { %v3844_v63 = vadd.f32 %v3843_v61, %v3122_v8 }
0x1462   : > { %v3845_v0 = vsel %vm3455_vm11, %v3844_v63, -inf }
0x1463   : > { %3846 = vmax.xlane.f32.xlu0 %v3845_v0 }
0x14f0   : > { %v3847_v7 = vpop.xlane.xlu0 %3846 }
0x14f1   : > { %v3848_v9 = vsub.f32 %v3844_v63, %v3847_v7 }
0x14f3   : > { %v3849_v3 = vmul.f32 1.442695, %v3848_v9 }
0x14f5   : > { %5549 = vpow2.f32 %v3849_v3 }
0x14ff   : > { %v5550_v13 = vpop.eup %5549 }
0x1500   : > { %v3851_v18 = vsel %vm3455_vm11, %v5550_v13, 0.0 }
0x1501   : > { %3852 = vadd.xlane.f32.xlu1 %v3851_v18 }
0x158e   : > { %v3853_v15 = vpop.xlane.xlu1 %3852 }
0x158f   : > { %5551 = vrcp.f32 %v3853_v15 }
0x1599   : > { %v5552_v19 = vpop.eup %5551 }
0x159a   : > { %v3855_v22 = vmul.f32 %v5552_v19, %v5550_v13 }
0x159c   : > { %5106 = vmatmul.mubr.msk.f32.vlgmr.msra.gmra.mrb[36].mxu1 %vm3455_vm11, %v3855_v22 }
0x159d   : > { %5381 = vmatpush3.bf16.msra.mxu1 %v5380_v20  ;;  %5119 = vmatprep.mubr.msk.f32.mxu1 %vm5662_vm10, %v5663_v58 }
0x159e   : > { %5388 = vmatprep.subr.bf16.mxu1 %v5661_v48 }
0x15a0   : > { %5120 = vmatmul.mubr.msk.f32.vlgmr.msra.gmra.mrb[38].mxu1 %vm1743_vm2, %v3536_v51  ;;  %v4214_v51 = vld [vmem:[%s6546_s6 + $0x28] sm:$0xff]  ;;  %s4343_s6 = sshll.u32 %s1118_s2, 4  ;;  %s6437_s6 = int_to_ptr.vmem [resolvable:$true] %s4343_s6 }
0x15a1   : > { %5149 = vmatprep.mubr.msk.f32.mxu1 %vm5662_vm10, %v5663_v58  ;;  %5390 = vmatpush3.bf16.msra.mxu1 %v5389_v42  ;;  %v5395_v52 = vpack.c.bf16 %v4214_v51, %v4213_v49  ;;  %s5559_s12 = scalar_lea.vmem %s6437_s6, 16 }
0x15a2   : > { %5391 = vmatprep.subr.bf16.mxu1 %v5661_v48  ;;  %p5560_p11 = scmp.ne.s32.totalorder %s6437_s6, %s5559_s12 }
0x15a4   : > { %p5561_p12 = pnand %p5560_p11, %p5898_p5 }
0x15a5   : > { %5393 = vmatpush3.bf16.msra.mxu1 %v5392_v46 }
0x15a6   : > { %5394 = vmatprep.subr.bf16.mxu1 %v5661_v48  ;;  %p5562_p13 = pneg %p5561_p12 }
0x15a9   : > { %5396 = vmatpush3.bf16.msra.mxu1 %v5395_v52 }
0x15aa   : > { %5397 = vmatprep.subr.bf16.mxu1 %v5661_v48 }
0x15ad   : > { %5399 = vmatpush3.bf16.msra.mxu1 %v5398_v56 }
0x166f   : > { %v3925_v23 = vpop.f32.mrb[36].mxu1 }
0x1670   : > { %v5107_v24 = vpop.f32.mrb[37].mxu1  ;;  %5113 = vmatmul.mubr.msk.f32.vlgmr.msra.gmra.mrb[46].mxu0 %vm1743_vm2, %v3925_v23 }
0x1671   : > { %5130 = vmatprep.mubr.msk.f32.mxu0 %vm5662_vm10, %v5663_v58 }
0x1673   : > { %v4074_v25 = vpop.f32.mrb[38].mxu1 }
0x1674   : > { %v5121_v27 = vpop.f32.mrb[39].mxu1 }
0x1743   : > { %v4001_v28 = vpop.f32.mrb[46].mxu0 }
0x1744   : > { %v4075_v26 = vadd.f32 %v4074_v25, %v4001_v28  ;;  %v5114_v2 = vpop.f32.mrb[47].mxu0 }
0x1746   : > { %v4078_v1 = vadd.f32 %v4075_v26, %v6286_v36  ;;  %v5383_v36 = vpack.c.bf16 %v4117_v32, %v4116_v31 }
0x1748   : > { %v6399_v5 = vadd.f32 %v4562_v29, %v4078_v1  ;;  %5384 = vmatpush3.bf16.msra.mxu0 %v5383_v36  ;;  %v4569_v29 = vld [vmem:[%s5848_s29] ss:$0 sm:$0xff] }
0x1749   : > { %5385 = vmatprep.subr.bf16.mxu0 %v5661_v48  ;;  %v4568_v48 = vld [vmem:[%s6548_s13] ss:$0 sm:$0xff]  ;;  %s5563_s13 = sshll.u32 %s5664_s0, 4  ;;  %s5564_s13 = int_to_ptr.vmem [resolvable:$false] %s5563_s13 }
0x174a   : > { %v4089_v4 = vsel %vm1374_vm0, %v6399_v5, 0.0  ;;  %s5565_s14 = scalar_lea.vmem %s5564_s13, 32  ;;  %p5566_p0 = scmp.lt.s32.totalorder %s6437_s6, %s5564_s13 }
0x174b   : > { %4090 = vadd.xlane.f32.xlu0 %v4089_v4  ;;  %p5567_p1 = scmp.lt.s32.totalorder %s5565_s14, %s5559_s12 }
0x174c   : > { %5387 = vmatpush3.bf16.msra.mxu0 %v5386_v50 }
0x174d   : > { %p5568_p2 = por %p5567_p1, %p5566_p0 }
0x174f   : > { %p5569_p3 = pnand %p5568_p2, %p5562_p13 }
0x17d8   : > { %v4091_v8 = vpop.xlane.xlu0 %4090 }
0x17d9   : > { %v4092_v58 = vmul.f32 0.03125, %v4091_v8 }
0x17db   : > { %v4093_v6 = vsub.f32 %v6399_v5, %v4092_v58 }
0x17dd   : > { %v4094_v43 = vmul.f32 %v4093_v6, %v4093_v6 }
0x17df   : > { %v4095_v11 = vsel %vm1374_vm0, %v4094_v43, 0.0 }
0x17e0   : > { %4096 = vadd.xlane.f32.xlu1 %v4095_v11 }
0x186d   : > { %v4097_v10 = vpop.xlane.xlu1 %4096 }
0x186e   : > { %v4098_v33 = vmul.f32 0.03125, %v4097_v10 }
0x1870   : > { %v4099_v34 = vadd.f32 1e-05, %v4098_v33 }
0x1872   : > { %5553 = vrsqrt.f32 %v4099_v34 }
0x187c   : > { %v5554_v35 = vpop.eup %5553 }
0x187d   : > { %v4101_v38 = vmul.f32 %v5554_v35, %v4093_v6 }
0x187f   : > { %v4108_v40 = vmul.f32 %v4563_v37, %v4101_v38 }
0x1881   : > { %v4115_v55 = vadd.f32 %v4564_v39, %v4108_v40 }
0x1883   : > { %5131 = vmatmul.mubr.msk.f32.vlgmr.msra.gmra.mrb[48].mxu0 %vm1374_vm0, %v4115_v55 }
0x1956   : > { %v4196_v60 = vpop.f32.mrb[48].mxu0 }
0x1957   : > { %v4197_v61 = vadd.f32 %v4565_v57, %v4196_v60  ;;  %v5132_v62 = vpop.f32.mrb[49].mxu0 }
0x1959   : > { %v4201_v63 = vmul.f32 0.044715, %v4197_v61  ;;  %v4200_v18 = vmul.f32 0.5, %v4197_v61 }
0x195b   : > { %v4202_v0 = vmul.f32 %v4201_v63, %v4197_v61 }
0x195d   : > { %v4203_v7 = vmul.f32 %v4202_v0, %v4197_v61 }
0x195f   : > { %v4204_v9 = vadd.f32 %v4203_v7, %v4197_v61 }
0x1961   : > { %v4205_v3 = vmul.f32 0.7978846, %v4204_v9 }
0x1963   : > { %5555 = vtanh.f32 %v4205_v3 }
0x196d   : > { %v5556_v13 = vpop.eup %5555 }
0x196e   : > { %v4207_v21 = vadd.f32 1.0, %v5556_v13 }
0x1970   : > { %v4208_v12 = vmul.f32 %v4207_v21, %v4200_v18 }
0x1972   : > { %5150 = vmatmul.mubr.msk.f32.vlgmr.msra.gmra.mrb[40].mxu1 %vm2979_vm9, %v4208_v12 }
0x1a45   : > { %v4286_v14 = vpop.f32.mrb[40].mxu1 }
0x1a46   : > { %v4290_v15 = vadd.f32 %v4286_v14, %v6399_v5  ;;  %v5151_v16 = vpop.f32.mrb[41].mxu1  ;;  %v4570_v5 = vld [vmem:[%s5853_s20] ss:$0 sm:$0xff] }
0x1a48   : > { %v4298_v17 = vadd.f32 %v4568_v48, %v4290_v15 }
0x1a4a   : > { %v4301_v19 = vsel %vm1374_vm0, %v4298_v17, 0.0 }
0x1a4b   : > { %4302 = vadd.xlane.f32.xlu0 %v4301_v19 }
0x1ad8   : > { %v4303_v20 = vpop.xlane.xlu0 %4302 }
0x1ad9   : > { %v4304_v22 = vmul.f32 0.03125, %v4303_v20 }
0x1adb   : > { %v4305_v23 = vsub.f32 %v4298_v17, %v4304_v22 }
0x1add   : > { %v4306_v24 = vmul.f32 %v4305_v23, %v4305_v23 }
0x1adf   : > { %v4307_v25 = vsel %vm1374_vm0, %v4306_v24, 0.0 }
0x1ae0   : > { %4308 = vadd.xlane.f32.xlu1 %v4307_v25 }
0x1b6d   : > { %v4309_v27 = vpop.xlane.xlu1 %4308 }
0x1b6e   : > { %v4310_v28 = vmul.f32 0.03125, %v4309_v27 }
0x1b70   : > { %v4311_v26 = vadd.f32 1e-05, %v4310_v28 }
0x1b72   : > { %5557 = vrsqrt.f32 %v4311_v26 }
0x1b7c   : > { %v5558_v2 = vpop.eup %5557 }
0x1b7d   : > { %v4313_v1 = vmul.f32 %v5558_v2, %v4305_v23 }
0x1b7f   : > { %v4320_v4 = vmul.f32 %v4569_v29, %v4313_v1 }
0x1b81   : > { %v4327_v8 = vadd.f32 %v4570_v5, %v4320_v4 }
0x1b83   : > { %4329 = vst.msk [vmem:[%s1118_s2 - $0x4] sm:$0x10] %vm4328_vm12, %v4327_v8 }
0x1b84   : > { %5572 = shalt.err (!%p5569_p3)
}
0x1b85   : > { %s5573_s5 = scalar_lea.hbm %s6435_s8, 16  ;;  %s5577_s3 = scalar_lea.hbm %s5858_s4, 32 }
0x1b86   : > { %p5574_p4 = scmp.ne.s32.totalorder %s6435_s8, %s5573_s5  ;;  %p5578_p9 = scmp.lt.u32.totalorder %s6435_s8, %s5858_s4 }
0x1b87   : > { %p5579_p10 = scmp.lt.u32.totalorder %s5577_s3, %s5573_s5  ;;  %p5581_p12 = scmp.lt.u32.totalorder %s5573_s5, %s6435_s8 }
0x1b88   : > { %p5575_p7 = pnand %p5574_p4, %p5898_p5 }
0x1b89   : > { %p5580_p11 = por %p5579_p10, %p5578_p9 }
0x1b8a   : > { %p5576_p8 = pneg %p5575_p7 }
0x1b8b   : > { %p5582_p0 = por %p5581_p12, %p5580_p11 }
0x1b8d   : > { %p5583_p13 = pnand %p5582_p0, %p5576_p8 }
0x1b8f   : > { %5586 = shalt.err (!%p5583_p13)
}
0x1b90   : > { %5405 = dma.vmem_to_hbm [thread:$0]  (%p5898_p5), %s6437_s6, 16, %s6435_s8, %s4331_s9  }
0x1b91 PF: > { %p5411_p1 = scmp.ge.s32.totalorder %s5621_s15, 2  ;;  %s4355_s13 = sand.u32 1, %s5609_s7  }
0x1b92   : > { %s4356_s14 = scalar_lea.sflag [#allocation5], %s4355_s13 }
0x1b93   : > { %p5408_p2 = pnand %p5411_p1, %p5902_p6 }
0x1b95   : > { %5604 = dma.done.wait (!%p5408_p2), %s4356_s14, 16  }
0x1b96   : > { %5606 = vsyncadd (!%p5408_p2), %s4356_s14, 4294967280  ;;  %p85_p3 = scmp.ge.s32.totalorder %s5885_s18, 4   ;;  %s6549_s7 = smov %s5613_s10 }
0x1b97   : > { %s6550_s10 = smov %s5617_s11  ;;  %s6551_s11 = smov %s5896_s26 }
0x1b98   : > { %s6552_s15 = smov %s5885_s18  ;;  %87 = sbr.rel (!%p85_p3) target bundleno = 74 (0x4a), region = 248 }
0x1b9f   :  { %4360 = vsyncpa [#allocation5], 1 }
0x1ba0   :  { %4362 = vsyncpa [#allocation5 + $0x1], 1 }

</bundles_post_ra>
